<compile_context>
chip_gen: v7x
topology: tpu7x:2x2x1
jax: 0.10.0
libtpu: 0.0.40
codegen_flags: <defaults>
</compile_context>

<pallas_src>
import functools
import numpy as np
import jax
import jax.numpy as jnp
from jax.experimental import pallas as pl
from jax.experimental.pallas import tpu as pltpu  # noqa: F401  (TPU backend assumed)


# --------------------------------------------------------------------------
# LSTM cell math (gate order i, f, g, o — PyTorch convention)
# --------------------------------------------------------------------------
def _lstm_cell(gates, c, H):
    """gates: (B, 4H) pre-activations; c: (B, H). Returns (h_new, c_new)."""
    # Full-vreg-width nonlinearities + lane-mask select (4H == 128 lanes):
    # two EUP passes instead of four narrow-sliced ones.
    lane = jax.lax.broadcasted_iota(jnp.int32, gates.shape, 1)
    is_g = jnp.logical_and(lane >= 2 * H, lane < 3 * H)
    act = jnp.where(is_g, jnp.tanh(gates), jax.nn.sigmoid(gates))
    i = act[:, 0 * H:1 * H]
    f = act[:, 1 * H:2 * H]
    g = act[:, 2 * H:3 * H]
    o = act[:, 3 * H:4 * H]
    c_new = f * c + i * g
    h_new = o * jnp.tanh(c_new)
    return h_new, c_new


# --------------------------------------------------------------------------
# Fused LSTMAE kernel (single pallas_call, no grid — everything in VMEM)
# --------------------------------------------------------------------------
def _make_lstmae_kernel(num_layers, T_in, seq_size, H):
    def kernel(*refs):
        it = iter(refs)
        x_ref = next(it)                                     # (B, T, D) batch-first
        enc = [(next(it), next(it), next(it)) for _ in range(num_layers)]
        wih_d, whh_d, b_d = next(it), next(it), next(it)     # decoder LSTM
        wlin, blin = next(it), next(it)                      # reconstruction head
        wcls, bcls = next(it), next(it)                      # classification head
        recon_ref = next(it)                                 # (seq*B, out) time-major rows
        cls_ref = next(it)                                   # (B, class_size)

        B = x_ref.shape[0]

        # Read batch-first input once; assemble time-major rows (row = t*B + b)
        # in VMEM with static slices (no wrapper-side transpose).
        x = x_ref[...].astype(jnp.float32)                   # (B, T, D)
        seq_flat = jnp.concatenate([x[:, t, :] for t in range(T_in)], axis=0)  # (T*B, D)

        # ---------------- Encoder stack ----------------
        h = None
        for l in range(num_layers):
            wih, whh, b = enc[l]
            # Hoisted input projection: one (T*B, D) x (D, 4H) matmul + bias.
            xp = (jnp.dot(seq_flat, wih[...], preferred_element_type=jnp.float32)
                  + b[...])                                  # (T*B, 4H)
            whh_v = whh[...]                                 # (H, 4H), lives in vregs
            h = jnp.zeros((B, H), jnp.float32)
            c = jnp.zeros((B, H), jnp.float32)
            hs = []
            for t in range(T_in):                            # fully unrolled (T small)
                gates = xp[t * B:(t + 1) * B, :] + jnp.dot(
                    h, whh_v, preferred_element_type=jnp.float32)
                h, c = _lstm_cell(gates, c, H)
                if l + 1 < num_layers:
                    hs.append(h)
            if l + 1 < num_layers:
                seq_flat = jnp.concatenate(hs, axis=0)       # (T*B, H) -> next layer input
            # TODO(synk): inter-layer dropout (training-mode only in PyTorch) is skipped.
        encoded = h                                          # (B, H) == h_T of last layer

        # ---------------- Decoder (constant input each step: project once) ----------------
        xp_d = (jnp.dot(encoded, wih_d[...], preferred_element_type=jnp.float32)
                + b_d[...])                                  # (B, 4H), reused every step
        whh_dv = whh_d[...]
        h = jnp.zeros((B, H), jnp.float32)
        c = jnp.zeros((B, H), jnp.float32)
        dec_hs = []
        for _ in range(seq_size):                            # fully unrolled
            gates = xp_d + jnp.dot(h, whh_dv, preferred_element_type=jnp.float32)
            h, c = _lstm_cell(gates, c, H)
            dec_hs.append(h)
        dec_flat = jnp.concatenate(dec_hs, axis=0)           # (seq*B, H), time-major rows
        hidden = h                                           # (B, H) final decoder hidden

        # ---------------- Linear heads (fused; one whole-slab store each) ----------------
        recon_ref[...] = (jnp.dot(dec_flat, wlin[...],
                                  preferred_element_type=jnp.float32)
                          + blin[...]).astype(recon_ref.dtype)
        cls_ref[...] = (jnp.dot(hidden, wcls[...],
                                preferred_element_type=jnp.float32)
                        + bcls[...]).astype(cls_ref.dtype)

    return kernel


def _full_spec(shape):
    nd = len(shape)
    return pl.BlockSpec(shape, lambda *_: (0,) * nd)


@functools.partial(jax.jit, static_argnames=("seq_size",))
def lstmae_forward(params, x, seq_size):
    """x: (B, T_in, input_size) batch-first, like the PyTorch module."""
    B, T_in, _ = x.shape
    enc = params["encoder"]
    num_layers = len(enc)
    H = enc[0]["whh_t"].shape[0]
    dl = params["decoder"]
    lin, lc = params["linear"], params["linear_class"]
    out_size = lin["w_t"].shape[1]
    cls_size = lc["w_t"].shape[1]

    args = [x.astype(jnp.float32)]
    for layer in enc:
        args += [layer["wih_t"], layer["whh_t"], layer["bias"]]
    args += [dl["wih_t"], dl["whh_t"], dl["bias"]]
    args += [lin["w_t"], lin["b"].reshape(1, out_size)]
    args += [lc["w_t"], lc["b"].reshape(1, cls_size)]

    recon_flat, cls_flat = pl.pallas_call(
        _make_lstmae_kernel(num_layers, T_in, seq_size, H),
        out_shape=(jax.ShapeDtypeStruct((seq_size * B, out_size), jnp.float32),
                   jax.ShapeDtypeStruct((B, cls_size), jnp.float32)),
        in_specs=[_full_spec(a.shape) for a in args],
        out_specs=(_full_spec((seq_size * B, out_size)),
                   _full_spec((B, cls_size))),
        # TODO(synk): for large batches on v7x, add a 'parallel' batch grid axis
        # (2 TensorCores); at B=4 the whole problem fits one core trivially.
    )(*args)

    # Tiny (2 KB) output layout plumbing: time-major rows -> batch-first.
    recon = jnp.transpose(recon_flat.reshape(seq_size, B, out_size), (1, 0, 2))
    out_class = cls_flat.reshape(1, B, cls_size)
    return recon, out_class


# --------------------------------------------------------------------------
# Parameter construction (deterministic, PyTorch-style uniform init)
# --------------------------------------------------------------------------
def init_lstm_params(key, input_size, hidden_size, num_layers):
    bound = 1.0 / np.sqrt(hidden_size)
    layers = []
    for l in range(num_layers):
        d = input_size if l == 0 else hidden_size
        key, k1, k2, k3, k4 = jax.random.split(key, 5)
        w_ih = jax.random.uniform(k1, (4 * hidden_size, d), jnp.float32, -bound, bound)
        w_hh = jax.random.uniform(k2, (4 * hidden_size, hidden_size), jnp.float32, -bound, bound)
        b_ih = jax.random.uniform(k3, (4 * hidden_size,), jnp.float32, -bound, bound)
        b_hh = jax.random.uniform(k4, (4 * hidden_size,), jnp.float32, -bound, bound)
        layers.append(dict(
            wih_t=w_ih.T,                                    # (D, 4H)
            whh_t=w_hh.T,                                    # (H, 4H)
            bias=(b_ih + b_hh).reshape(1, 4 * hidden_size),  # (1, 4H)
        ))
    return key, layers


def init_linear_params(key, in_features, out_features):
    bound = 1.0 / np.sqrt(in_features)
    key, k1, k2 = jax.random.split(key, 3)
    w = jax.random.uniform(k1, (out_features, in_features), jnp.float32, -bound, bound)
    b = jax.random.uniform(k2, (out_features,), jnp.float32, -bound, bound)
    return key, dict(w_t=w.T, b=b)


def init_lstmae_params(seed, input_size, num_of_layers, hs_size, output_size, class_size=10):
    key = jax.random.PRNGKey(seed)
    key, enc_layers = init_lstm_params(key, input_size, hs_size, num_of_layers)
    key, dec_layers = init_lstm_params(key, hs_size, hs_size, 1)
    key, lin = init_linear_params(key, hs_size, output_size)
    key, lin_cls = init_linear_params(key, hs_size, class_size)
    return dict(encoder=enc_layers, decoder=dec_layers[0],
                linear=lin, linear_class=lin_cls)


# --------------------------------------------------------------------------
# Pure-JAX reference (highest precision) for correctness check
# --------------------------------------------------------------------------
def _lstm_layer_ref(x_tm, wih_t, whh_t, bias):
    T, B, _ = x_tm.shape
    H = whh_t.shape[0]
    h = jnp.zeros((B, H), jnp.float32)
    c = jnp.zeros((B, H), jnp.float32)
    ys = []
    hi = jax.lax.Precision.HIGHEST
    for t in range(T):
        gates = (jnp.dot(x_tm[t], wih_t, precision=hi)
                 + jnp.dot(h, whh_t, precision=hi) + bias)
        i = jax.nn.sigmoid(gates[:, 0:H])
        f = jax.nn.sigmoid(gates[:, H:2 * H])
        g = jnp.tanh(gates[:, 2 * H:3 * H])
        o = jax.nn.sigmoid(gates[:, 3 * H:4 * H])
        c = f * c + i * g
        h = o * jnp.tanh(c)
        ys.append(h)
    return jnp.stack(ys)


def lstmae_forward_ref(params, x, seq_size):
    hi = jax.lax.Precision.HIGHEST
    B = x.shape[0]
    h = jnp.transpose(x, (1, 0, 2)).astype(jnp.float32)
    for layer in params["encoder"]:
        h = _lstm_layer_ref(h, layer["wih_t"], layer["whh_t"], layer["bias"])
    encoded = h[-1]
    H = encoded.shape[1]
    dec_in = jnp.broadcast_to(encoded[None, :, :], (seq_size, B, H))
    dl = params["decoder"]
    dec_out_tm = _lstm_layer_ref(dec_in, dl["wih_t"], dl["whh_t"], dl["bias"])
    dec_out = jnp.transpose(dec_out_tm, (1, 0, 2))
    hidden = dec_out_tm[-1]
    lin, lc = params["linear"], params["linear_class"]
    out_recon = (jnp.dot(dec_out.reshape(B * seq_size, H), lin["w_t"], precision=hi)
                 + lin["b"]).reshape(B, seq_size, -1)
    out_class = (jnp.dot(hidden, lc["w_t"], precision=hi) + lc["b"]).reshape(1, B, -1)
    return out_recon, out_class


# --------------------------------------------------------------------------
if __name__ == "__main__":
    B = 4            # batch
    T_in = 8         # encoder sequence length
    input_size = 16
    num_of_layers = 2
    seq_size = 8     # decoder sequence length
    hs_size = 32
    output_size = 16

    params = init_lstmae_params(0, input_size, num_of_layers, hs_size, output_size)

    key = jax.random.PRNGKey(0)
    x = jax.random.normal(key, (B, T_in, input_size), dtype=jnp.float32)

    recon, cls = lstmae_forward(params, x, seq_size)
    recon = jax.block_until_ready(recon)
    cls = jax.block_until_ready(cls)

    assert recon.shape == (B, seq_size, output_size), recon.shape
    assert cls.shape == (1, B, 10), cls.shape

    recon_ref, cls_ref = lstmae_forward_ref(params, x, seq_size)
    np.testing.assert_allclose(np.asarray(recon), np.asarray(recon_ref),
                               rtol=1e-3, atol=1e-3)
    np.testing.assert_allclose(np.asarray(cls), np.asarray(cls_ref),
                               rtol=1e-3, atol=1e-3)

    print("KERNEL_OK")
</pallas_src>

<mosaic_0001>
module attributes {stable_mosaic.version = 11 : i64} {
  func.func @kernel(%arg0: memref<4x8x16xf32, #tpu.memory_space<vmem>>, %arg1: memref<16x128xf32, #tpu.memory_space<vmem>>, %arg2: memref<32x128xf32, #tpu.memory_space<vmem>>, %arg3: memref<1x128xf32, #tpu.memory_space<vmem>>, %arg4: memref<32x128xf32, #tpu.memory_space<vmem>>, %arg5: memref<32x128xf32, #tpu.memory_space<vmem>>, %arg6: memref<1x128xf32, #tpu.memory_space<vmem>>, %arg7: memref<32x128xf32, #tpu.memory_space<vmem>>, %arg8: memref<32x128xf32, #tpu.memory_space<vmem>>, %arg9: memref<1x128xf32, #tpu.memory_space<vmem>>, %arg10: memref<32x16xf32, #tpu.memory_space<vmem>>, %arg11: memref<1x16xf32, #tpu.memory_space<vmem>>, %arg12: memref<32x10xf32, #tpu.memory_space<vmem>>, %arg13: memref<1x10xf32, #tpu.memory_space<vmem>>, %arg14: memref<32x16xf32, #tpu.memory_space<vmem>>, %arg15: memref<4x10xf32, #tpu.memory_space<vmem>>) attributes {dimension_semantics = [], scalar_prefetch = 0 : i64, scratch_operands = 0 : i64, tpu.core_type = #tpu.core_type<tc>} {
    %c0 = arith.constant 0 : index
    %c0_0 = arith.constant 0 : index
    %c0_1 = arith.constant 0 : index
    %0 = vector.load %arg0[%c0, %c0_0, %c0_1] : memref<4x8x16xf32, #tpu.memory_space<vmem>>, vector<4x8x16xf32>
    %1 = vector.extract_strided_slice %0 {offsets = [0, 0, 0], sizes = [4, 1, 16], strides = [1, 1, 1]} : vector<4x8x16xf32> to vector<4x1x16xf32>
    %2 = vector.shape_cast %1 : vector<4x1x16xf32> to vector<4x16xf32>
    %3 = vector.extract_strided_slice %0 {offsets = [0, 1, 0], sizes = [4, 1, 16], strides = [1, 1, 1]} : vector<4x8x16xf32> to vector<4x1x16xf32>
    %4 = vector.shape_cast %3 : vector<4x1x16xf32> to vector<4x16xf32>
    %5 = vector.extract_strided_slice %0 {offsets = [0, 2, 0], sizes = [4, 1, 16], strides = [1, 1, 1]} : vector<4x8x16xf32> to vector<4x1x16xf32>
    %6 = vector.shape_cast %5 : vector<4x1x16xf32> to vector<4x16xf32>
    %7 = vector.extract_strided_slice %0 {offsets = [0, 3, 0], sizes = [4, 1, 16], strides = [1, 1, 1]} : vector<4x8x16xf32> to vector<4x1x16xf32>
    %8 = vector.shape_cast %7 : vector<4x1x16xf32> to vector<4x16xf32>
    %9 = vector.extract_strided_slice %0 {offsets = [0, 4, 0], sizes = [4, 1, 16], strides = [1, 1, 1]} : vector<4x8x16xf32> to vector<4x1x16xf32>
    %10 = vector.shape_cast %9 : vector<4x1x16xf32> to vector<4x16xf32>
    %11 = vector.extract_strided_slice %0 {offsets = [0, 5, 0], sizes = [4, 1, 16], strides = [1, 1, 1]} : vector<4x8x16xf32> to vector<4x1x16xf32>
    %12 = vector.shape_cast %11 : vector<4x1x16xf32> to vector<4x16xf32>
    %13 = vector.extract_strided_slice %0 {offsets = [0, 6, 0], sizes = [4, 1, 16], strides = [1, 1, 1]} : vector<4x8x16xf32> to vector<4x1x16xf32>
    %14 = vector.shape_cast %13 : vector<4x1x16xf32> to vector<4x16xf32>
    %15 = vector.extract_strided_slice %0 {offsets = [0, 7, 0], sizes = [4, 1, 16], strides = [1, 1, 1]} : vector<4x8x16xf32> to vector<4x1x16xf32>
    %16 = vector.shape_cast %15 : vector<4x1x16xf32> to vector<4x16xf32>
    %17 = tpu.concatenate %2, %4, %6, %8, %10, %12, %14, %16 in 0 : vector<4x16xf32>, vector<4x16xf32>, vector<4x16xf32>, vector<4x16xf32>, vector<4x16xf32>, vector<4x16xf32>, vector<4x16xf32>, vector<4x16xf32> -> vector<32x16xf32>
    %c0_2 = arith.constant 0 : index
    %c0_3 = arith.constant 0 : index
    %18 = vector.load %arg1[%c0_2, %c0_3] : memref<16x128xf32, #tpu.memory_space<vmem>>, vector<16x128xf32>
    %cst = arith.constant dense<0.000000e+00> : vector<32x128xf32>
    %19 = tpu.matmul %17, %18, %cst {dimension_numbers = #tpu.dot_dimension_numbers<[1], [0], [0], [1], [0, 0, 1, 1], [], []>} : vector<32x16xf32>, vector<16x128xf32>, vector<32x128xf32> -> vector<32x128xf32>
    %c0_4 = arith.constant 0 : index
    %c0_5 = arith.constant 0 : index
    %20 = vector.load %arg3[%c0_4, %c0_5] : memref<1x128xf32, #tpu.memory_space<vmem>>, vector<1x128xf32>
    %21 = vector.broadcast %20 : vector<1x128xf32> to vector<32x128xf32>
    %22 = arith.addf %19, %21 : vector<32x128xf32>
    %c0_6 = arith.constant 0 : index
    %c0_7 = arith.constant 0 : index
    %23 = vector.load %arg2[%c0_6, %c0_7] : memref<32x128xf32, #tpu.memory_space<vmem>>, vector<32x128xf32>
    %cst_8 = arith.constant 0.000000e+00 : f32
    %24 = vector.broadcast %cst_8 : f32 to vector<4x32xf32>
    %cst_9 = arith.constant 0.000000e+00 : f32
    %25 = vector.broadcast %cst_9 : f32 to vector<4x32xf32>
    %26 = vector.extract_strided_slice %22 {offsets = [0, 0], sizes = [4, 128], strides = [1, 1]} : vector<32x128xf32> to vector<4x128xf32>
    %cst_10 = arith.constant dense<0.000000e+00> : vector<4x128xf32>
    %27 = tpu.matmul %24, %23, %cst_10 {dimension_numbers = #tpu.dot_dimension_numbers<[1], [0], [0], [1], [0, 0, 1, 1], [], []>} : vector<4x32xf32>, vector<32x128xf32>, vector<4x128xf32> -> vector<4x128xf32>
    %28 = arith.addf %26, %27 : vector<4x128xf32>
    %29 = tpu.iota {dimensions = array<i32: 1>} : vector<4x128xi32>
    %c64_i32 = arith.constant 64 : i32
    %30 = vector.broadcast %c64_i32 : i32 to vector<4x128xi32>
    %31 = arith.cmpi sge, %29, %30 : vector<4x128xi32>
    %c96_i32 = arith.constant 96 : i32
    %32 = vector.broadcast %c96_i32 : i32 to vector<4x128xi32>
    %33 = arith.cmpi slt, %29, %32 : vector<4x128xi32>
    %34 = arith.andi %31, %33 : vector<4x128xi1>
    %35 = math.tanh %28 : vector<4x128xf32>
    %36 = arith.negf %28 : vector<4x128xf32>
    %37 = math.exp %36 : vector<4x128xf32>
    %cst_11 = arith.constant 1.000000e+00 : f32
    %38 = vector.broadcast %cst_11 : f32 to vector<4x128xf32>
    %39 = arith.addf %38, %37 : vector<4x128xf32>
    %40 = arith.divf %38, %39 : vector<4x128xf32>
    %41 = arith.select %34, %35, %40 : vector<4x128xi1>, vector<4x128xf32>
    %42 = vector.extract_strided_slice %41 {offsets = [0, 0], sizes = [4, 32], strides = [1, 1]} : vector<4x128xf32> to vector<4x32xf32>
    %43 = vector.extract_strided_slice %41 {offsets = [0, 32], sizes = [4, 32], strides = [1, 1]} : vector<4x128xf32> to vector<4x32xf32>
    %44 = vector.extract_strided_slice %41 {offsets = [0, 64], sizes = [4, 32], strides = [1, 1]} : vector<4x128xf32> to vector<4x32xf32>
    %45 = vector.extract_strided_slice %41 {offsets = [0, 96], sizes = [4, 32], strides = [1, 1]} : vector<4x128xf32> to vector<4x32xf32>
    %46 = arith.mulf %43, %25 : vector<4x32xf32>
    %47 = arith.mulf %42, %44 : vector<4x32xf32>
    %48 = arith.addf %46, %47 : vector<4x32xf32>
    %49 = math.tanh %48 : vector<4x32xf32>
    %50 = arith.mulf %45, %49 : vector<4x32xf32>
    %51 = vector.extract_strided_slice %22 {offsets = [4, 0], sizes = [4, 128], strides = [1, 1]} : vector<32x128xf32> to vector<4x128xf32>
    %cst_12 = arith.constant dense<0.000000e+00> : vector<4x128xf32>
    %52 = tpu.matmul %50, %23, %cst_12 {dimension_numbers = #tpu.dot_dimension_numbers<[1], [0], [0], [1], [0, 0, 1, 1], [], []>} : vector<4x32xf32>, vector<32x128xf32>, vector<4x128xf32> -> vector<4x128xf32>
    %53 = arith.addf %51, %52 : vector<4x128xf32>
    %54 = tpu.iota {dimensions = array<i32: 1>} : vector<4x128xi32>
    %c64_i32_13 = arith.constant 64 : i32
    %55 = vector.broadcast %c64_i32_13 : i32 to vector<4x128xi32>
    %56 = arith.cmpi sge, %54, %55 : vector<4x128xi32>
    %c96_i32_14 = arith.constant 96 : i32
    %57 = vector.broadcast %c96_i32_14 : i32 to vector<4x128xi32>
    %58 = arith.cmpi slt, %54, %57 : vector<4x128xi32>
    %59 = arith.andi %56, %58 : vector<4x128xi1>
    %60 = math.tanh %53 : vector<4x128xf32>
    %61 = arith.negf %53 : vector<4x128xf32>
    %62 = math.exp %61 : vector<4x128xf32>
    %cst_15 = arith.constant 1.000000e+00 : f32
    %63 = vector.broadcast %cst_15 : f32 to vector<4x128xf32>
    %64 = arith.addf %63, %62 : vector<4x128xf32>
    %65 = arith.divf %63, %64 : vector<4x128xf32>
    %66 = arith.select %59, %60, %65 : vector<4x128xi1>, vector<4x128xf32>
    %67 = vector.extract_strided_slice %66 {offsets = [0, 0], sizes = [4, 32], strides = [1, 1]} : vector<4x128xf32> to vector<4x32xf32>
    %68 = vector.extract_strided_slice %66 {offsets = [0, 32], sizes = [4, 32], strides = [1, 1]} : vector<4x128xf32> to vector<4x32xf32>
    %69 = vector.extract_strided_slice %66 {offsets = [0, 64], sizes = [4, 32], strides = [1, 1]} : vector<4x128xf32> to vector<4x32xf32>
    %70 = vector.extract_strided_slice %66 {offsets = [0, 96], sizes = [4, 32], strides = [1, 1]} : vector<4x128xf32> to vector<4x32xf32>
    %71 = arith.mulf %68, %48 : vector<4x32xf32>
    %72 = arith.mulf %67, %69 : vector<4x32xf32>
    %73 = arith.addf %71, %72 : vector<4x32xf32>
    %74 = math.tanh %73 : vector<4x32xf32>
    %75 = arith.mulf %70, %74 : vector<4x32xf32>
    %76 = vector.extract_strided_slice %22 {offsets = [8, 0], sizes = [4, 128], strides = [1, 1]} : vector<32x128xf32> to vector<4x128xf32>
    %cst_16 = arith.constant dense<0.000000e+00> : vector<4x128xf32>
    %77 = tpu.matmul %75, %23, %cst_16 {dimension_numbers = #tpu.dot_dimension_numbers<[1], [0], [0], [1], [0, 0, 1, 1], [], []>} : vector<4x32xf32>, vector<32x128xf32>, vector<4x128xf32> -> vector<4x128xf32>
    %78 = arith.addf %76, %77 : vector<4x128xf32>
    %79 = tpu.iota {dimensions = array<i32: 1>} : vector<4x128xi32>
    %c64_i32_17 = arith.constant 64 : i32
    %80 = vector.broadcast %c64_i32_17 : i32 to vector<4x128xi32>
    %81 = arith.cmpi sge, %79, %80 : vector<4x128xi32>
    %c96_i32_18 = arith.constant 96 : i32
    %82 = vector.broadcast %c96_i32_18 : i32 to vector<4x128xi32>
    %83 = arith.cmpi slt, %79, %82 : vector<4x128xi32>
    %84 = arith.andi %81, %83 : vector<4x128xi1>
    %85 = math.tanh %78 : vector<4x128xf32>
    %86 = arith.negf %78 : vector<4x128xf32>
    %87 = math.exp %86 : vector<4x128xf32>
    %cst_19 = arith.constant 1.000000e+00 : f32
    %88 = vector.broadcast %cst_19 : f32 to vector<4x128xf32>
    %89 = arith.addf %88, %87 : vector<4x128xf32>
    %90 = arith.divf %88, %89 : vector<4x128xf32>
    %91 = arith.select %84, %85, %90 : vector<4x128xi1>, vector<4x128xf32>
    %92 = vector.extract_strided_slice %91 {offsets = [0, 0], sizes = [4, 32], strides = [1, 1]} : vector<4x128xf32> to vector<4x32xf32>
    %93 = vector.extract_strided_slice %91 {offsets = [0, 32], sizes = [4, 32], strides = [1, 1]} : vector<4x128xf32> to vector<4x32xf32>
    %94 = vector.extract_strided_slice %91 {offsets = [0, 64], sizes = [4, 32], strides = [1, 1]} : vector<4x128xf32> to vector<4x32xf32>
    %95 = vector.extract_strided_slice %91 {offsets = [0, 96], sizes = [4, 32], strides = [1, 1]} : vector<4x128xf32> to vector<4x32xf32>
    %96 = arith.mulf %93, %73 : vector<4x32xf32>
    %97 = arith.mulf %92, %94 : vector<4x32xf32>
    %98 = arith.addf %96, %97 : vector<4x32xf32>
    %99 = math.tanh %98 : vector<4x32xf32>
    %100 = arith.mulf %95, %99 : vector<4x32xf32>
    %101 = vector.extract_strided_slice %22 {offsets = [12, 0], sizes = [4, 128], strides = [1, 1]} : vector<32x128xf32> to vector<4x128xf32>
    %cst_20 = arith.constant dense<0.000000e+00> : vector<4x128xf32>
    %102 = tpu.matmul %100, %23, %cst_20 {dimension_numbers = #tpu.dot_dimension_numbers<[1], [0], [0], [1], [0, 0, 1, 1], [], []>} : vector<4x32xf32>, vector<32x128xf32>, vector<4x128xf32> -> vector<4x128xf32>
    %103 = arith.addf %101, %102 : vector<4x128xf32>
    %104 = tpu.iota {dimensions = array<i32: 1>} : vector<4x128xi32>
    %c64_i32_21 = arith.constant 64 : i32
    %105 = vector.broadcast %c64_i32_21 : i32 to vector<4x128xi32>
    %106 = arith.cmpi sge, %104, %105 : vector<4x128xi32>
    %c96_i32_22 = arith.constant 96 : i32
    %107 = vector.broadcast %c96_i32_22 : i32 to vector<4x128xi32>
    %108 = arith.cmpi slt, %104, %107 : vector<4x128xi32>
    %109 = arith.andi %106, %108 : vector<4x128xi1>
    %110 = math.tanh %103 : vector<4x128xf32>
    %111 = arith.negf %103 : vector<4x128xf32>
    %112 = math.exp %111 : vector<4x128xf32>
    %cst_23 = arith.constant 1.000000e+00 : f32
    %113 = vector.broadcast %cst_23 : f32 to vector<4x128xf32>
    %114 = arith.addf %113, %112 : vector<4x128xf32>
    %115 = arith.divf %113, %114 : vector<4x128xf32>
    %116 = arith.select %109, %110, %115 : vector<4x128xi1>, vector<4x128xf32>
    %117 = vector.extract_strided_slice %116 {offsets = [0, 0], sizes = [4, 32], strides = [1, 1]} : vector<4x128xf32> to vector<4x32xf32>
    %118 = vector.extract_strided_slice %116 {offsets = [0, 32], sizes = [4, 32], strides = [1, 1]} : vector<4x128xf32> to vector<4x32xf32>
    %119 = vector.extract_strided_slice %116 {offsets = [0, 64], sizes = [4, 32], strides = [1, 1]} : vector<4x128xf32> to vector<4x32xf32>
    %120 = vector.extract_strided_slice %116 {offsets = [0, 96], sizes = [4, 32], strides = [1, 1]} : vector<4x128xf32> to vector<4x32xf32>
    %121 = arith.mulf %118, %98 : vector<4x32xf32>
    %122 = arith.mulf %117, %119 : vector<4x32xf32>
    %123 = arith.addf %121, %122 : vector<4x32xf32>
    %124 = math.tanh %123 : vector<4x32xf32>
    %125 = arith.mulf %120, %124 : vector<4x32xf32>
    %126 = vector.extract_strided_slice %22 {offsets = [16, 0], sizes = [4, 128], strides = [1, 1]} : vector<32x128xf32> to vector<4x128xf32>
    %cst_24 = arith.constant dense<0.000000e+00> : vector<4x128xf32>
    %127 = tpu.matmul %125, %23, %cst_24 {dimension_numbers = #tpu.dot_dimension_numbers<[1], [0], [0], [1], [0, 0, 1, 1], [], []>} : vector<4x32xf32>, vector<32x128xf32>, vector<4x128xf32> -> vector<4x128xf32>
    %128 = arith.addf %126, %127 : vector<4x128xf32>
    %129 = tpu.iota {dimensions = array<i32: 1>} : vector<4x128xi32>
    %c64_i32_25 = arith.constant 64 : i32
    %130 = vector.broadcast %c64_i32_25 : i32 to vector<4x128xi32>
    %131 = arith.cmpi sge, %129, %130 : vector<4x128xi32>
    %c96_i32_26 = arith.constant 96 : i32
    %132 = vector.broadcast %c96_i32_26 : i32 to vector<4x128xi32>
    %133 = arith.cmpi slt, %129, %132 : vector<4x128xi32>
    %134 = arith.andi %131, %133 : vector<4x128xi1>
    %135 = math.tanh %128 : vector<4x128xf32>
    %136 = arith.negf %128 : vector<4x128xf32>
    %137 = math.exp %136 : vector<4x128xf32>
    %cst_27 = arith.constant 1.000000e+00 : f32
    %138 = vector.broadcast %cst_27 : f32 to vector<4x128xf32>
    %139 = arith.addf %138, %137 : vector<4x128xf32>
    %140 = arith.divf %138, %139 : vector<4x128xf32>
    %141 = arith.select %134, %135, %140 : vector<4x128xi1>, vector<4x128xf32>
    %142 = vector.extract_strided_slice %141 {offsets = [0, 0], sizes = [4, 32], strides = [1, 1]} : vector<4x128xf32> to vector<4x32xf32>
    %143 = vector.extract_strided_slice %141 {offsets = [0, 32], sizes = [4, 32], strides = [1, 1]} : vector<4x128xf32> to vector<4x32xf32>
    %144 = vector.extract_strided_slice %141 {offsets = [0, 64], sizes = [4, 32], strides = [1, 1]} : vector<4x128xf32> to vector<4x32xf32>
    %145 = vector.extract_strided_slice %141 {offsets = [0, 96], sizes = [4, 32], strides = [1, 1]} : vector<4x128xf32> to vector<4x32xf32>
    %146 = arith.mulf %143, %123 : vector<4x32xf32>
    %147 = arith.mulf %142, %144 : vector<4x32xf32>
    %148 = arith.addf %146, %147 : vector<4x32xf32>
    %149 = math.tanh %148 : vector<4x32xf32>
    %150 = arith.mulf %145, %149 : vector<4x32xf32>
    %151 = vector.extract_strided_slice %22 {offsets = [20, 0], sizes = [4, 128], strides = [1, 1]} : vector<32x128xf32> to vector<4x128xf32>
    %cst_28 = arith.constant dense<0.000000e+00> : vector<4x128xf32>
    %152 = tpu.matmul %150, %23, %cst_28 {dimension_numbers = #tpu.dot_dimension_numbers<[1], [0], [0], [1], [0, 0, 1, 1], [], []>} : vector<4x32xf32>, vector<32x128xf32>, vector<4x128xf32> -> vector<4x128xf32>
    %153 = arith.addf %151, %152 : vector<4x128xf32>
    %154 = tpu.iota {dimensions = array<i32: 1>} : vector<4x128xi32>
    %c64_i32_29 = arith.constant 64 : i32
    %155 = vector.broadcast %c64_i32_29 : i32 to vector<4x128xi32>
    %156 = arith.cmpi sge, %154, %155 : vector<4x128xi32>
    %c96_i32_30 = arith.constant 96 : i32
    %157 = vector.broadcast %c96_i32_30 : i32 to vector<4x128xi32>
    %158 = arith.cmpi slt, %154, %157 : vector<4x128xi32>
    %159 = arith.andi %156, %158 : vector<4x128xi1>
    %160 = math.tanh %153 : vector<4x128xf32>
    %161 = arith.negf %153 : vector<4x128xf32>
    %162 = math.exp %161 : vector<4x128xf32>
    %cst_31 = arith.constant 1.000000e+00 : f32
    %163 = vector.broadcast %cst_31 : f32 to vector<4x128xf32>
    %164 = arith.addf %163, %162 : vector<4x128xf32>
    %165 = arith.divf %163, %164 : vector<4x128xf32>
    %166 = arith.select %159, %160, %165 : vector<4x128xi1>, vector<4x128xf32>
    %167 = vector.extract_strided_slice %166 {offsets = [0, 0], sizes = [4, 32], strides = [1, 1]} : vector<4x128xf32> to vector<4x32xf32>
    %168 = vector.extract_strided_slice %166 {offsets = [0, 32], sizes = [4, 32], strides = [1, 1]} : vector<4x128xf32> to vector<4x32xf32>
    %169 = vector.extract_strided_slice %166 {offsets = [0, 64], sizes = [4, 32], strides = [1, 1]} : vector<4x128xf32> to vector<4x32xf32>
    %170 = vector.extract_strided_slice %166 {offsets = [0, 96], sizes = [4, 32], strides = [1, 1]} : vector<4x128xf32> to vector<4x32xf32>
    %171 = arith.mulf %168, %148 : vector<4x32xf32>
    %172 = arith.mulf %167, %169 : vector<4x32xf32>
    %173 = arith.addf %171, %172 : vector<4x32xf32>
    %174 = math.tanh %173 : vector<4x32xf32>
    %175 = arith.mulf %170, %174 : vector<4x32xf32>
    %176 = vector.extract_strided_slice %22 {offsets = [24, 0], sizes = [4, 128], strides = [1, 1]} : vector<32x128xf32> to vector<4x128xf32>
    %cst_32 = arith.constant dense<0.000000e+00> : vector<4x128xf32>
    %177 = tpu.matmul %175, %23, %cst_32 {dimension_numbers = #tpu.dot_dimension_numbers<[1], [0], [0], [1], [0, 0, 1, 1], [], []>} : vector<4x32xf32>, vector<32x128xf32>, vector<4x128xf32> -> vector<4x128xf32>
    %178 = arith.addf %176, %177 : vector<4x128xf32>
    %179 = tpu.iota {dimensions = array<i32: 1>} : vector<4x128xi32>
    %c64_i32_33 = arith.constant 64 : i32
    %180 = vector.broadcast %c64_i32_33 : i32 to vector<4x128xi32>
    %181 = arith.cmpi sge, %179, %180 : vector<4x128xi32>
    %c96_i32_34 = arith.constant 96 : i32
    %182 = vector.broadcast %c96_i32_34 : i32 to vector<4x128xi32>
    %183 = arith.cmpi slt, %179, %182 : vector<4x128xi32>
    %184 = arith.andi %181, %183 : vector<4x128xi1>
    %185 = math.tanh %178 : vector<4x128xf32>
    %186 = arith.negf %178 : vector<4x128xf32>
    %187 = math.exp %186 : vector<4x128xf32>
    %cst_35 = arith.constant 1.000000e+00 : f32
    %188 = vector.broadcast %cst_35 : f32 to vector<4x128xf32>
    %189 = arith.addf %188, %187 : vector<4x128xf32>
    %190 = arith.divf %188, %189 : vector<4x128xf32>
    %191 = arith.select %184, %185, %190 : vector<4x128xi1>, vector<4x128xf32>
    %192 = vector.extract_strided_slice %191 {offsets = [0, 0], sizes = [4, 32], strides = [1, 1]} : vector<4x128xf32> to vector<4x32xf32>
    %193 = vector.extract_strided_slice %191 {offsets = [0, 32], sizes = [4, 32], strides = [1, 1]} : vector<4x128xf32> to vector<4x32xf32>
    %194 = vector.extract_strided_slice %191 {offsets = [0, 64], sizes = [4, 32], strides = [1, 1]} : vector<4x128xf32> to vector<4x32xf32>
    %195 = vector.extract_strided_slice %191 {offsets = [0, 96], sizes = [4, 32], strides = [1, 1]} : vector<4x128xf32> to vector<4x32xf32>
    %196 = arith.mulf %193, %173 : vector<4x32xf32>
    %197 = arith.mulf %192, %194 : vector<4x32xf32>
    %198 = arith.addf %196, %197 : vector<4x32xf32>
    %199 = math.tanh %198 : vector<4x32xf32>
    %200 = arith.mulf %195, %199 : vector<4x32xf32>
    %201 = vector.extract_strided_slice %22 {offsets = [28, 0], sizes = [4, 128], strides = [1, 1]} : vector<32x128xf32> to vector<4x128xf32>
    %cst_36 = arith.constant dense<0.000000e+00> : vector<4x128xf32>
    %202 = tpu.matmul %200, %23, %cst_36 {dimension_numbers = #tpu.dot_dimension_numbers<[1], [0], [0], [1], [0, 0, 1, 1], [], []>} : vector<4x32xf32>, vector<32x128xf32>, vector<4x128xf32> -> vector<4x128xf32>
    %203 = arith.addf %201, %202 : vector<4x128xf32>
    %204 = tpu.iota {dimensions = array<i32: 1>} : vector<4x128xi32>
    %c64_i32_37 = arith.constant 64 : i32
    %205 = vector.broadcast %c64_i32_37 : i32 to vector<4x128xi32>
    %206 = arith.cmpi sge, %204, %205 : vector<4x128xi32>
    %c96_i32_38 = arith.constant 96 : i32
    %207 = vector.broadcast %c96_i32_38 : i32 to vector<4x128xi32>
    %208 = arith.cmpi slt, %204, %207 : vector<4x128xi32>
    %209 = arith.andi %206, %208 : vector<4x128xi1>
    %210 = math.tanh %203 : vector<4x128xf32>
    %211 = arith.negf %203 : vector<4x128xf32>
    %212 = math.exp %211 : vector<4x128xf32>
    %cst_39 = arith.constant 1.000000e+00 : f32
    %213 = vector.broadcast %cst_39 : f32 to vector<4x128xf32>
    %214 = arith.addf %213, %212 : vector<4x128xf32>
    %215 = arith.divf %213, %214 : vector<4x128xf32>
    %216 = arith.select %209, %210, %215 : vector<4x128xi1>, vector<4x128xf32>
    %217 = vector.extract_strided_slice %216 {offsets = [0, 0], sizes = [4, 32], strides = [1, 1]} : vector<4x128xf32> to vector<4x32xf32>
    %218 = vector.extract_strided_slice %216 {offsets = [0, 32], sizes = [4, 32], strides = [1, 1]} : vector<4x128xf32> to vector<4x32xf32>
    %219 = vector.extract_strided_slice %216 {offsets = [0, 64], sizes = [4, 32], strides = [1, 1]} : vector<4x128xf32> to vector<4x32xf32>
    %220 = vector.extract_strided_slice %216 {offsets = [0, 96], sizes = [4, 32], strides = [1, 1]} : vector<4x128xf32> to vector<4x32xf32>
    %221 = arith.mulf %218, %198 : vector<4x32xf32>
    %222 = arith.mulf %217, %219 : vector<4x32xf32>
    %223 = arith.addf %221, %222 : vector<4x32xf32>
    %224 = math.tanh %223 : vector<4x32xf32>
    %225 = arith.mulf %220, %224 : vector<4x32xf32>
    %226 = tpu.concatenate %50, %75, %100, %125, %150, %175, %200, %225 in 0 : vector<4x32xf32>, vector<4x32xf32>, vector<4x32xf32>, vector<4x32xf32>, vector<4x32xf32>, vector<4x32xf32>, vector<4x32xf32>, vector<4x32xf32> -> vector<32x32xf32>
    %c0_40 = arith.constant 0 : index
    %c0_41 = arith.constant 0 : index
    %227 = vector.load %arg4[%c0_40, %c0_41] : memref<32x128xf32, #tpu.memory_space<vmem>>, vector<32x128xf32>
    %cst_42 = arith.constant dense<0.000000e+00> : vector<32x128xf32>
    %228 = tpu.matmul %226, %227, %cst_42 {dimension_numbers = #tpu.dot_dimension_numbers<[1], [0], [0], [1], [0, 0, 1, 1], [], []>} : vector<32x32xf32>, vector<32x128xf32>, vector<32x128xf32> -> vector<32x128xf32>
    %c0_43 = arith.constant 0 : index
    %c0_44 = arith.constant 0 : index
    %229 = vector.load %arg6[%c0_43, %c0_44] : memref<1x128xf32, #tpu.memory_space<vmem>>, vector<1x128xf32>
    %230 = vector.broadcast %229 : vector<1x128xf32> to vector<32x128xf32>
    %231 = arith.addf %228, %230 : vector<32x128xf32>
    %c0_45 = arith.constant 0 : index
    %c0_46 = arith.constant 0 : index
    %232 = vector.load %arg5[%c0_45, %c0_46] : memref<32x128xf32, #tpu.memory_space<vmem>>, vector<32x128xf32>
    %cst_47 = arith.constant 0.000000e+00 : f32
    %233 = vector.broadcast %cst_47 : f32 to vector<4x32xf32>
    %cst_48 = arith.constant 0.000000e+00 : f32
    %234 = vector.broadcast %cst_48 : f32 to vector<4x32xf32>
    %235 = vector.extract_strided_slice %231 {offsets = [0, 0], sizes = [4, 128], strides = [1, 1]} : vector<32x128xf32> to vector<4x128xf32>
    %cst_49 = arith.constant dense<0.000000e+00> : vector<4x128xf32>
    %236 = tpu.matmul %233, %232, %cst_49 {dimension_numbers = #tpu.dot_dimension_numbers<[1], [0], [0], [1], [0, 0, 1, 1], [], []>} : vector<4x32xf32>, vector<32x128xf32>, vector<4x128xf32> -> vector<4x128xf32>
    %237 = arith.addf %235, %236 : vector<4x128xf32>
    %238 = tpu.iota {dimensions = array<i32: 1>} : vector<4x128xi32>
    %c64_i32_50 = arith.constant 64 : i32
    %239 = vector.broadcast %c64_i32_50 : i32 to vector<4x128xi32>
    %240 = arith.cmpi sge, %238, %239 : vector<4x128xi32>
    %c96_i32_51 = arith.constant 96 : i32
    %241 = vector.broadcast %c96_i32_51 : i32 to vector<4x128xi32>
    %242 = arith.cmpi slt, %238, %241 : vector<4x128xi32>
    %243 = arith.andi %240, %242 : vector<4x128xi1>
    %244 = math.tanh %237 : vector<4x128xf32>
    %245 = arith.negf %237 : vector<4x128xf32>
    %246 = math.exp %245 : vector<4x128xf32>
    %cst_52 = arith.constant 1.000000e+00 : f32
    %247 = vector.broadcast %cst_52 : f32 to vector<4x128xf32>
    %248 = arith.addf %247, %246 : vector<4x128xf32>
    %249 = arith.divf %247, %248 : vector<4x128xf32>
    %250 = arith.select %243, %244, %249 : vector<4x128xi1>, vector<4x128xf32>
    %251 = vector.extract_strided_slice %250 {offsets = [0, 0], sizes = [4, 32], strides = [1, 1]} : vector<4x128xf32> to vector<4x32xf32>
    %252 = vector.extract_strided_slice %250 {offsets = [0, 32], sizes = [4, 32], strides = [1, 1]} : vector<4x128xf32> to vector<4x32xf32>
    %253 = vector.extract_strided_slice %250 {offsets = [0, 64], sizes = [4, 32], strides = [1, 1]} : vector<4x128xf32> to vector<4x32xf32>
    %254 = vector.extract_strided_slice %250 {offsets = [0, 96], sizes = [4, 32], strides = [1, 1]} : vector<4x128xf32> to vector<4x32xf32>
    %255 = arith.mulf %252, %234 : vector<4x32xf32>
    %256 = arith.mulf %251, %253 : vector<4x32xf32>
    %257 = arith.addf %255, %256 : vector<4x32xf32>
    %258 = math.tanh %257 : vector<4x32xf32>
    %259 = arith.mulf %254, %258 : vector<4x32xf32>
    %260 = vector.extract_strided_slice %231 {offsets = [4, 0], sizes = [4, 128], strides = [1, 1]} : vector<32x128xf32> to vector<4x128xf32>
    %cst_53 = arith.constant dense<0.000000e+00> : vector<4x128xf32>
    %261 = tpu.matmul %259, %232, %cst_53 {dimension_numbers = #tpu.dot_dimension_numbers<[1], [0], [0], [1], [0, 0, 1, 1], [], []>} : vector<4x32xf32>, vector<32x128xf32>, vector<4x128xf32> -> vector<4x128xf32>
    %262 = arith.addf %260, %261 : vector<4x128xf32>
    %263 = tpu.iota {dimensions = array<i32: 1>} : vector<4x128xi32>
    %c64_i32_54 = arith.constant 64 : i32
    %264 = vector.broadcast %c64_i32_54 : i32 to vector<4x128xi32>
    %265 = arith.cmpi sge, %263, %264 : vector<4x128xi32>
    %c96_i32_55 = arith.constant 96 : i32
    %266 = vector.broadcast %c96_i32_55 : i32 to vector<4x128xi32>
    %267 = arith.cmpi slt, %263, %266 : vector<4x128xi32>
    %268 = arith.andi %265, %267 : vector<4x128xi1>
    %269 = math.tanh %262 : vector<4x128xf32>
    %270 = arith.negf %262 : vector<4x128xf32>
    %271 = math.exp %270 : vector<4x128xf32>
    %cst_56 = arith.constant 1.000000e+00 : f32
    %272 = vector.broadcast %cst_56 : f32 to vector<4x128xf32>
    %273 = arith.addf %272, %271 : vector<4x128xf32>
    %274 = arith.divf %272, %273 : vector<4x128xf32>
    %275 = arith.select %268, %269, %274 : vector<4x128xi1>, vector<4x128xf32>
    %276 = vector.extract_strided_slice %275 {offsets = [0, 0], sizes = [4, 32], strides = [1, 1]} : vector<4x128xf32> to vector<4x32xf32>
    %277 = vector.extract_strided_slice %275 {offsets = [0, 32], sizes = [4, 32], strides = [1, 1]} : vector<4x128xf32> to vector<4x32xf32>
    %278 = vector.extract_strided_slice %275 {offsets = [0, 64], sizes = [4, 32], strides = [1, 1]} : vector<4x128xf32> to vector<4x32xf32>
    %279 = vector.extract_strided_slice %275 {offsets = [0, 96], sizes = [4, 32], strides = [1, 1]} : vector<4x128xf32> to vector<4x32xf32>
    %280 = arith.mulf %277, %257 : vector<4x32xf32>
    %281 = arith.mulf %276, %278 : vector<4x32xf32>
    %282 = arith.addf %280, %281 : vector<4x32xf32>
    %283 = math.tanh %282 : vector<4x32xf32>
    %284 = arith.mulf %279, %283 : vector<4x32xf32>
    %285 = vector.extract_strided_slice %231 {offsets = [8, 0], sizes = [4, 128], strides = [1, 1]} : vector<32x128xf32> to vector<4x128xf32>
    %cst_57 = arith.constant dense<0.000000e+00> : vector<4x128xf32>
    %286 = tpu.matmul %284, %232, %cst_57 {dimension_numbers = #tpu.dot_dimension_numbers<[1], [0], [0], [1], [0, 0, 1, 1], [], []>} : vector<4x32xf32>, vector<32x128xf32>, vector<4x128xf32> -> vector<4x128xf32>
    %287 = arith.addf %285, %286 : vector<4x128xf32>
    %288 = tpu.iota {dimensions = array<i32: 1>} : vector<4x128xi32>
    %c64_i32_58 = arith.constant 64 : i32
    %289 = vector.broadcast %c64_i32_58 : i32 to vector<4x128xi32>
    %290 = arith.cmpi sge, %288, %289 : vector<4x128xi32>
    %c96_i32_59 = arith.constant 96 : i32
    %291 = vector.broadcast %c96_i32_59 : i32 to vector<4x128xi32>
    %292 = arith.cmpi slt, %288, %291 : vector<4x128xi32>
    %293 = arith.andi %290, %292 : vector<4x128xi1>
    %294 = math.tanh %287 : vector<4x128xf32>
    %295 = arith.negf %287 : vector<4x128xf32>
    %296 = math.exp %295 : vector<4x128xf32>
    %cst_60 = arith.constant 1.000000e+00 : f32
    %297 = vector.broadcast %cst_60 : f32 to vector<4x128xf32>
    %298 = arith.addf %297, %296 : vector<4x128xf32>
    %299 = arith.divf %297, %298 : vector<4x128xf32>
    %300 = arith.select %293, %294, %299 : vector<4x128xi1>, vector<4x128xf32>
    %301 = vector.extract_strided_slice %300 {offsets = [0, 0], sizes = [4, 32], strides = [1, 1]} : vector<4x128xf32> to vector<4x32xf32>
    %302 = vector.extract_strided_slice %300 {offsets = [0, 32], sizes = [4, 32], strides = [1, 1]} : vector<4x128xf32> to vector<4x32xf32>
    %303 = vector.extract_strided_slice %300 {offsets = [0, 64], sizes = [4, 32], strides = [1, 1]} : vector<4x128xf32> to vector<4x32xf32>
    %304 = vector.extract_strided_slice %300 {offsets = [0, 96], sizes = [4, 32], strides = [1, 1]} : vector<4x128xf32> to vector<4x32xf32>
    %305 = arith.mulf %302, %282 : vector<4x32xf32>
    %306 = arith.mulf %301, %303 : vector<4x32xf32>
    %307 = arith.addf %305, %306 : vector<4x32xf32>
    %308 = math.tanh %307 : vector<4x32xf32>
    %309 = arith.mulf %304, %308 : vector<4x32xf32>
    %310 = vector.extract_strided_slice %231 {offsets = [12, 0], sizes = [4, 128], strides = [1, 1]} : vector<32x128xf32> to vector<4x128xf32>
    %cst_61 = arith.constant dense<0.000000e+00> : vector<4x128xf32>
    %311 = tpu.matmul %309, %232, %cst_61 {dimension_numbers = #tpu.dot_dimension_numbers<[1], [0], [0], [1], [0, 0, 1, 1], [], []>} : vector<4x32xf32>, vector<32x128xf32>, vector<4x128xf32> -> vector<4x128xf32>
    %312 = arith.addf %310, %311 : vector<4x128xf32>
    %313 = tpu.iota {dimensions = array<i32: 1>} : vector<4x128xi32>
    %c64_i32_62 = arith.constant 64 : i32
    %314 = vector.broadcast %c64_i32_62 : i32 to vector<4x128xi32>
    %315 = arith.cmpi sge, %313, %314 : vector<4x128xi32>
    %c96_i32_63 = arith.constant 96 : i32
    %316 = vector.broadcast %c96_i32_63 : i32 to vector<4x128xi32>
    %317 = arith.cmpi slt, %313, %316 : vector<4x128xi32>
    %318 = arith.andi %315, %317 : vector<4x128xi1>
    %319 = math.tanh %312 : vector<4x128xf32>
    %320 = arith.negf %312 : vector<4x128xf32>
    %321 = math.exp %320 : vector<4x128xf32>
    %cst_64 = arith.constant 1.000000e+00 : f32
    %322 = vector.broadcast %cst_64 : f32 to vector<4x128xf32>
    %323 = arith.addf %322, %321 : vector<4x128xf32>
    %324 = arith.divf %322, %323 : vector<4x128xf32>
    %325 = arith.select %318, %319, %324 : vector<4x128xi1>, vector<4x128xf32>
    %326 = vector.extract_strided_slice %325 {offsets = [0, 0], sizes = [4, 32], strides = [1, 1]} : vector<4x128xf32> to vector<4x32xf32>
    %327 = vector.extract_strided_slice %325 {offsets = [0, 32], sizes = [4, 32], strides = [1, 1]} : vector<4x128xf32> to vector<4x32xf32>
    %328 = vector.extract_strided_slice %325 {offsets = [0, 64], sizes = [4, 32], strides = [1, 1]} : vector<4x128xf32> to vector<4x32xf32>
    %329 = vector.extract_strided_slice %325 {offsets = [0, 96], sizes = [4, 32], strides = [1, 1]} : vector<4x128xf32> to vector<4x32xf32>
    %330 = arith.mulf %327, %307 : vector<4x32xf32>
    %331 = arith.mulf %326, %328 : vector<4x32xf32>
    %332 = arith.addf %330, %331 : vector<4x32xf32>
    %333 = math.tanh %332 : vector<4x32xf32>
    %334 = arith.mulf %329, %333 : vector<4x32xf32>
    %335 = vector.extract_strided_slice %231 {offsets = [16, 0], sizes = [4, 128], strides = [1, 1]} : vector<32x128xf32> to vector<4x128xf32>
    %cst_65 = arith.constant dense<0.000000e+00> : vector<4x128xf32>
    %336 = tpu.matmul %334, %232, %cst_65 {dimension_numbers = #tpu.dot_dimension_numbers<[1], [0], [0], [1], [0, 0, 1, 1], [], []>} : vector<4x32xf32>, vector<32x128xf32>, vector<4x128xf32> -> vector<4x128xf32>
    %337 = arith.addf %335, %336 : vector<4x128xf32>
    %338 = tpu.iota {dimensions = array<i32: 1>} : vector<4x128xi32>
    %c64_i32_66 = arith.constant 64 : i32
    %339 = vector.broadcast %c64_i32_66 : i32 to vector<4x128xi32>
    %340 = arith.cmpi sge, %338, %339 : vector<4x128xi32>
    %c96_i32_67 = arith.constant 96 : i32
    %341 = vector.broadcast %c96_i32_67 : i32 to vector<4x128xi32>
    %342 = arith.cmpi slt, %338, %341 : vector<4x128xi32>
    %343 = arith.andi %340, %342 : vector<4x128xi1>
    %344 = math.tanh %337 : vector<4x128xf32>
    %345 = arith.negf %337 : vector<4x128xf32>
    %346 = math.exp %345 : vector<4x128xf32>
    %cst_68 = arith.constant 1.000000e+00 : f32
    %347 = vector.broadcast %cst_68 : f32 to vector<4x128xf32>
    %348 = arith.addf %347, %346 : vector<4x128xf32>
    %349 = arith.divf %347, %348 : vector<4x128xf32>
    %350 = arith.select %343, %344, %349 : vector<4x128xi1>, vector<4x128xf32>
    %351 = vector.extract_strided_slice %350 {offsets = [0, 0], sizes = [4, 32], strides = [1, 1]} : vector<4x128xf32> to vector<4x32xf32>
    %352 = vector.extract_strided_slice %350 {offsets = [0, 32], sizes = [4, 32], strides = [1, 1]} : vector<4x128xf32> to vector<4x32xf32>
    %353 = vector.extract_strided_slice %350 {offsets = [0, 64], sizes = [4, 32], strides = [1, 1]} : vector<4x128xf32> to vector<4x32xf32>
    %354 = vector.extract_strided_slice %350 {offsets = [0, 96], sizes = [4, 32], strides = [1, 1]} : vector<4x128xf32> to vector<4x32xf32>
    %355 = arith.mulf %352, %332 : vector<4x32xf32>
    %356 = arith.mulf %351, %353 : vector<4x32xf32>
    %357 = arith.addf %355, %356 : vector<4x32xf32>
    %358 = math.tanh %357 : vector<4x32xf32>
    %359 = arith.mulf %354, %358 : vector<4x32xf32>
    %360 = vector.extract_strided_slice %231 {offsets = [20, 0], sizes = [4, 128], strides = [1, 1]} : vector<32x128xf32> to vector<4x128xf32>
    %cst_69 = arith.constant dense<0.000000e+00> : vector<4x128xf32>
    %361 = tpu.matmul %359, %232, %cst_69 {dimension_numbers = #tpu.dot_dimension_numbers<[1], [0], [0], [1], [0, 0, 1, 1], [], []>} : vector<4x32xf32>, vector<32x128xf32>, vector<4x128xf32> -> vector<4x128xf32>
    %362 = arith.addf %360, %361 : vector<4x128xf32>
    %363 = tpu.iota {dimensions = array<i32: 1>} : vector<4x128xi32>
    %c64_i32_70 = arith.constant 64 : i32
    %364 = vector.broadcast %c64_i32_70 : i32 to vector<4x128xi32>
    %365 = arith.cmpi sge, %363, %364 : vector<4x128xi32>
    %c96_i32_71 = arith.constant 96 : i32
    %366 = vector.broadcast %c96_i32_71 : i32 to vector<4x128xi32>
    %367 = arith.cmpi slt, %363, %366 : vector<4x128xi32>
    %368 = arith.andi %365, %367 : vector<4x128xi1>
    %369 = math.tanh %362 : vector<4x128xf32>
    %370 = arith.negf %362 : vector<4x128xf32>
    %371 = math.exp %370 : vector<4x128xf32>
    %cst_72 = arith.constant 1.000000e+00 : f32
    %372 = vector.broadcast %cst_72 : f32 to vector<4x128xf32>
    %373 = arith.addf %372, %371 : vector<4x128xf32>
    %374 = arith.divf %372, %373 : vector<4x128xf32>
    %375 = arith.select %368, %369, %374 : vector<4x128xi1>, vector<4x128xf32>
    %376 = vector.extract_strided_slice %375 {offsets = [0, 0], sizes = [4, 32], strides = [1, 1]} : vector<4x128xf32> to vector<4x32xf32>
    %377 = vector.extract_strided_slice %375 {offsets = [0, 32], sizes = [4, 32], strides = [1, 1]} : vector<4x128xf32> to vector<4x32xf32>
    %378 = vector.extract_strided_slice %375 {offsets = [0, 64], sizes = [4, 32], strides = [1, 1]} : vector<4x128xf32> to vector<4x32xf32>
    %379 = vector.extract_strided_slice %375 {offsets = [0, 96], sizes = [4, 32], strides = [1, 1]} : vector<4x128xf32> to vector<4x32xf32>
    %380 = arith.mulf %377, %357 : vector<4x32xf32>
    %381 = arith.mulf %376, %378 : vector<4x32xf32>
    %382 = arith.addf %380, %381 : vector<4x32xf32>
    %383 = math.tanh %382 : vector<4x32xf32>
    %384 = arith.mulf %379, %383 : vector<4x32xf32>
    %385 = vector.extract_strided_slice %231 {offsets = [24, 0], sizes = [4, 128], strides = [1, 1]} : vector<32x128xf32> to vector<4x128xf32>
    %cst_73 = arith.constant dense<0.000000e+00> : vector<4x128xf32>
    %386 = tpu.matmul %384, %232, %cst_73 {dimension_numbers = #tpu.dot_dimension_numbers<[1], [0], [0], [1], [0, 0, 1, 1], [], []>} : vector<4x32xf32>, vector<32x128xf32>, vector<4x128xf32> -> vector<4x128xf32>
    %387 = arith.addf %385, %386 : vector<4x128xf32>
    %388 = tpu.iota {dimensions = array<i32: 1>} : vector<4x128xi32>
    %c64_i32_74 = arith.constant 64 : i32
    %389 = vector.broadcast %c64_i32_74 : i32 to vector<4x128xi32>
    %390 = arith.cmpi sge, %388, %389 : vector<4x128xi32>
    %c96_i32_75 = arith.constant 96 : i32
    %391 = vector.broadcast %c96_i32_75 : i32 to vector<4x128xi32>
    %392 = arith.cmpi slt, %388, %391 : vector<4x128xi32>
    %393 = arith.andi %390, %392 : vector<4x128xi1>
    %394 = math.tanh %387 : vector<4x128xf32>
    %395 = arith.negf %387 : vector<4x128xf32>
    %396 = math.exp %395 : vector<4x128xf32>
    %cst_76 = arith.constant 1.000000e+00 : f32
    %397 = vector.broadcast %cst_76 : f32 to vector<4x128xf32>
    %398 = arith.addf %397, %396 : vector<4x128xf32>
    %399 = arith.divf %397, %398 : vector<4x128xf32>
    %400 = arith.select %393, %394, %399 : vector<4x128xi1>, vector<4x128xf32>
    %401 = vector.extract_strided_slice %400 {offsets = [0, 0], sizes = [4, 32], strides = [1, 1]} : vector<4x128xf32> to vector<4x32xf32>
    %402 = vector.extract_strided_slice %400 {offsets = [0, 32], sizes = [4, 32], strides = [1, 1]} : vector<4x128xf32> to vector<4x32xf32>
    %403 = vector.extract_strided_slice %400 {offsets = [0, 64], sizes = [4, 32], strides = [1, 1]} : vector<4x128xf32> to vector<4x32xf32>
    %404 = vector.extract_strided_slice %400 {offsets = [0, 96], sizes = [4, 32], strides = [1, 1]} : vector<4x128xf32> to vector<4x32xf32>
    %405 = arith.mulf %402, %382 : vector<4x32xf32>
    %406 = arith.mulf %401, %403 : vector<4x32xf32>
    %407 = arith.addf %405, %406 : vector<4x32xf32>
    %408 = math.tanh %407 : vector<4x32xf32>
    %409 = arith.mulf %404, %408 : vector<4x32xf32>
    %410 = vector.extract_strided_slice %231 {offsets = [28, 0], sizes = [4, 128], strides = [1, 1]} : vector<32x128xf32> to vector<4x128xf32>
    %cst_77 = arith.constant dense<0.000000e+00> : vector<4x128xf32>
    %411 = tpu.matmul %409, %232, %cst_77 {dimension_numbers = #tpu.dot_dimension_numbers<[1], [0], [0], [1], [0, 0, 1, 1], [], []>} : vector<4x32xf32>, vector<32x128xf32>, vector<4x128xf32> -> vector<4x128xf32>
    %412 = arith.addf %410, %411 : vector<4x128xf32>
    %413 = tpu.iota {dimensions = array<i32: 1>} : vector<4x128xi32>
    %c64_i32_78 = arith.constant 64 : i32
    %414 = vector.broadcast %c64_i32_78 : i32 to vector<4x128xi32>
    %415 = arith.cmpi sge, %413, %414 : vector<4x128xi32>
    %c96_i32_79 = arith.constant 96 : i32
    %416 = vector.broadcast %c96_i32_79 : i32 to vector<4x128xi32>
    %417 = arith.cmpi slt, %413, %416 : vector<4x128xi32>
    %418 = arith.andi %415, %417 : vector<4x128xi1>
    %419 = math.tanh %412 : vector<4x128xf32>
    %420 = arith.negf %412 : vector<4x128xf32>
    %421 = math.exp %420 : vector<4x128xf32>
    %cst_80 = arith.constant 1.000000e+00 : f32
    %422 = vector.broadcast %cst_80 : f32 to vector<4x128xf32>
    %423 = arith.addf %422, %421 : vector<4x128xf32>
    %424 = arith.divf %422, %423 : vector<4x128xf32>
    %425 = arith.select %418, %419, %424 : vector<4x128xi1>, vector<4x128xf32>
    %426 = vector.extract_strided_slice %425 {offsets = [0, 0], sizes = [4, 32], strides = [1, 1]} : vector<4x128xf32> to vector<4x32xf32>
    %427 = vector.extract_strided_slice %425 {offsets = [0, 32], sizes = [4, 32], strides = [1, 1]} : vector<4x128xf32> to vector<4x32xf32>
    %428 = vector.extract_strided_slice %425 {offsets = [0, 64], sizes = [4, 32], strides = [1, 1]} : vector<4x128xf32> to vector<4x32xf32>
    %429 = vector.extract_strided_slice %425 {offsets = [0, 96], sizes = [4, 32], strides = [1, 1]} : vector<4x128xf32> to vector<4x32xf32>
    %430 = arith.mulf %427, %407 : vector<4x32xf32>
    %431 = arith.mulf %426, %428 : vector<4x32xf32>
    %432 = arith.addf %430, %431 : vector<4x32xf32>
    %433 = math.tanh %432 : vector<4x32xf32>
    %434 = arith.mulf %429, %433 : vector<4x32xf32>
    %c0_81 = arith.constant 0 : index
    %c0_82 = arith.constant 0 : index
    %435 = vector.load %arg7[%c0_81, %c0_82] : memref<32x128xf32, #tpu.memory_space<vmem>>, vector<32x128xf32>
    %cst_83 = arith.constant dense<0.000000e+00> : vector<4x128xf32>
    %436 = tpu.matmul %434, %435, %cst_83 {dimension_numbers = #tpu.dot_dimension_numbers<[1], [0], [0], [1], [0, 0, 1, 1], [], []>} : vector<4x32xf32>, vector<32x128xf32>, vector<4x128xf32> -> vector<4x128xf32>
    %c0_84 = arith.constant 0 : index
    %c0_85 = arith.constant 0 : index
    %437 = vector.load %arg9[%c0_84, %c0_85] : memref<1x128xf32, #tpu.memory_space<vmem>>, vector<1x128xf32>
    %438 = vector.broadcast %437 : vector<1x128xf32> to vector<4x128xf32>
    %439 = arith.addf %436, %438 : vector<4x128xf32>
    %c0_86 = arith.constant 0 : index
    %c0_87 = arith.constant 0 : index
    %440 = vector.load %arg8[%c0_86, %c0_87] : memref<32x128xf32, #tpu.memory_space<vmem>>, vector<32x128xf32>
    %cst_88 = arith.constant 0.000000e+00 : f32
    %441 = vector.broadcast %cst_88 : f32 to vector<4x32xf32>
    %cst_89 = arith.constant 0.000000e+00 : f32
    %442 = vector.broadcast %cst_89 : f32 to vector<4x32xf32>
    %cst_90 = arith.constant dense<0.000000e+00> : vector<4x128xf32>
    %443 = tpu.matmul %441, %440, %cst_90 {dimension_numbers = #tpu.dot_dimension_numbers<[1], [0], [0], [1], [0, 0, 1, 1], [], []>} : vector<4x32xf32>, vector<32x128xf32>, vector<4x128xf32> -> vector<4x128xf32>
    %444 = arith.addf %439, %443 : vector<4x128xf32>
    %445 = tpu.iota {dimensions = array<i32: 1>} : vector<4x128xi32>
    %c64_i32_91 = arith.constant 64 : i32
    %446 = vector.broadcast %c64_i32_91 : i32 to vector<4x128xi32>
    %447 = arith.cmpi sge, %445, %446 : vector<4x128xi32>
    %c96_i32_92 = arith.constant 96 : i32
    %448 = vector.broadcast %c96_i32_92 : i32 to vector<4x128xi32>
    %449 = arith.cmpi slt, %445, %448 : vector<4x128xi32>
    %450 = arith.andi %447, %449 : vector<4x128xi1>
    %451 = math.tanh %444 : vector<4x128xf32>
    %452 = arith.negf %444 : vector<4x128xf32>
    %453 = math.exp %452 : vector<4x128xf32>
    %cst_93 = arith.constant 1.000000e+00 : f32
    %454 = vector.broadcast %cst_93 : f32 to vector<4x128xf32>
    %455 = arith.addf %454, %453 : vector<4x128xf32>
    %456 = arith.divf %454, %455 : vector<4x128xf32>
    %457 = arith.select %450, %451, %456 : vector<4x128xi1>, vector<4x128xf32>
    %458 = vector.extract_strided_slice %457 {offsets = [0, 0], sizes = [4, 32], strides = [1, 1]} : vector<4x128xf32> to vector<4x32xf32>
    %459 = vector.extract_strided_slice %457 {offsets = [0, 32], sizes = [4, 32], strides = [1, 1]} : vector<4x128xf32> to vector<4x32xf32>
    %460 = vector.extract_strided_slice %457 {offsets = [0, 64], sizes = [4, 32], strides = [1, 1]} : vector<4x128xf32> to vector<4x32xf32>
    %461 = vector.extract_strided_slice %457 {offsets = [0, 96], sizes = [4, 32], strides = [1, 1]} : vector<4x128xf32> to vector<4x32xf32>
    %462 = arith.mulf %459, %442 : vector<4x32xf32>
    %463 = arith.mulf %458, %460 : vector<4x32xf32>
    %464 = arith.addf %462, %463 : vector<4x32xf32>
    %465 = math.tanh %464 : vector<4x32xf32>
    %466 = arith.mulf %461, %465 : vector<4x32xf32>
    %cst_94 = arith.constant dense<0.000000e+00> : vector<4x128xf32>
    %467 = tpu.matmul %466, %440, %cst_94 {dimension_numbers = #tpu.dot_dimension_numbers<[1], [0], [0], [1], [0, 0, 1, 1], [], []>} : vector<4x32xf32>, vector<32x128xf32>, vector<4x128xf32> -> vector<4x128xf32>
    %468 = arith.addf %439, %467 : vector<4x128xf32>
    %469 = tpu.iota {dimensions = array<i32: 1>} : vector<4x128xi32>
    %c64_i32_95 = arith.constant 64 : i32
    %470 = vector.broadcast %c64_i32_95 : i32 to vector<4x128xi32>
    %471 = arith.cmpi sge, %469, %470 : vector<4x128xi32>
    %c96_i32_96 = arith.constant 96 : i32
    %472 = vector.broadcast %c96_i32_96 : i32 to vector<4x128xi32>
    %473 = arith.cmpi slt, %469, %472 : vector<4x128xi32>
    %474 = arith.andi %471, %473 : vector<4x128xi1>
    %475 = math.tanh %468 : vector<4x128xf32>
    %476 = arith.negf %468 : vector<4x128xf32>
    %477 = math.exp %476 : vector<4x128xf32>
    %cst_97 = arith.constant 1.000000e+00 : f32
    %478 = vector.broadcast %cst_97 : f32 to vector<4x128xf32>
    %479 = arith.addf %478, %477 : vector<4x128xf32>
    %480 = arith.divf %478, %479 : vector<4x128xf32>
    %481 = arith.select %474, %475, %480 : vector<4x128xi1>, vector<4x128xf32>
    %482 = vector.extract_strided_slice %481 {offsets = [0, 0], sizes = [4, 32], strides = [1, 1]} : vector<4x128xf32> to vector<4x32xf32>
    %483 = vector.extract_strided_slice %481 {offsets = [0, 32], sizes = [4, 32], strides = [1, 1]} : vector<4x128xf32> to vector<4x32xf32>
    %484 = vector.extract_strided_slice %481 {offsets = [0, 64], sizes = [4, 32], strides = [1, 1]} : vector<4x128xf32> to vector<4x32xf32>
    %485 = vector.extract_strided_slice %481 {offsets = [0, 96], sizes = [4, 32], strides = [1, 1]} : vector<4x128xf32> to vector<4x32xf32>
    %486 = arith.mulf %483, %464 : vector<4x32xf32>
    %487 = arith.mulf %482, %484 : vector<4x32xf32>
    %488 = arith.addf %486, %487 : vector<4x32xf32>
    %489 = math.tanh %488 : vector<4x32xf32>
    %490 = arith.mulf %485, %489 : vector<4x32xf32>
    %cst_98 = arith.constant dense<0.000000e+00> : vector<4x128xf32>
    %491 = tpu.matmul %490, %440, %cst_98 {dimension_numbers = #tpu.dot_dimension_numbers<[1], [0], [0], [1], [0, 0, 1, 1], [], []>} : vector<4x32xf32>, vector<32x128xf32>, vector<4x128xf32> -> vector<4x128xf32>
    %492 = arith.addf %439, %491 : vector<4x128xf32>
    %493 = tpu.iota {dimensions = array<i32: 1>} : vector<4x128xi32>
    %c64_i32_99 = arith.constant 64 : i32
    %494 = vector.broadcast %c64_i32_99 : i32 to vector<4x128xi32>
    %495 = arith.cmpi sge, %493, %494 : vector<4x128xi32>
    %c96_i32_100 = arith.constant 96 : i32
    %496 = vector.broadcast %c96_i32_100 : i32 to vector<4x128xi32>
    %497 = arith.cmpi slt, %493, %496 : vector<4x128xi32>
    %498 = arith.andi %495, %497 : vector<4x128xi1>
    %499 = math.tanh %492 : vector<4x128xf32>
    %500 = arith.negf %492 : vector<4x128xf32>
    %501 = math.exp %500 : vector<4x128xf32>
    %cst_101 = arith.constant 1.000000e+00 : f32
    %502 = vector.broadcast %cst_101 : f32 to vector<4x128xf32>
    %503 = arith.addf %502, %501 : vector<4x128xf32>
    %504 = arith.divf %502, %503 : vector<4x128xf32>
    %505 = arith.select %498, %499, %504 : vector<4x128xi1>, vector<4x128xf32>
    %506 = vector.extract_strided_slice %505 {offsets = [0, 0], sizes = [4, 32], strides = [1, 1]} : vector<4x128xf32> to vector<4x32xf32>
    %507 = vector.extract_strided_slice %505 {offsets = [0, 32], sizes = [4, 32], strides = [1, 1]} : vector<4x128xf32> to vector<4x32xf32>
    %508 = vector.extract_strided_slice %505 {offsets = [0, 64], sizes = [4, 32], strides = [1, 1]} : vector<4x128xf32> to vector<4x32xf32>
    %509 = vector.extract_strided_slice %505 {offsets = [0, 96], sizes = [4, 32], strides = [1, 1]} : vector<4x128xf32> to vector<4x32xf32>
    %510 = arith.mulf %507, %488 : vector<4x32xf32>
    %511 = arith.mulf %506, %508 : vector<4x32xf32>
    %512 = arith.addf %510, %511 : vector<4x32xf32>
    %513 = math.tanh %512 : vector<4x32xf32>
    %514 = arith.mulf %509, %513 : vector<4x32xf32>
    %cst_102 = arith.constant dense<0.000000e+00> : vector<4x128xf32>
    %515 = tpu.matmul %514, %440, %cst_102 {dimension_numbers = #tpu.dot_dimension_numbers<[1], [0], [0], [1], [0, 0, 1, 1], [], []>} : vector<4x32xf32>, vector<32x128xf32>, vector<4x128xf32> -> vector<4x128xf32>
    %516 = arith.addf %439, %515 : vector<4x128xf32>
    %517 = tpu.iota {dimensions = array<i32: 1>} : vector<4x128xi32>
    %c64_i32_103 = arith.constant 64 : i32
    %518 = vector.broadcast %c64_i32_103 : i32 to vector<4x128xi32>
    %519 = arith.cmpi sge, %517, %518 : vector<4x128xi32>
    %c96_i32_104 = arith.constant 96 : i32
    %520 = vector.broadcast %c96_i32_104 : i32 to vector<4x128xi32>
    %521 = arith.cmpi slt, %517, %520 : vector<4x128xi32>
    %522 = arith.andi %519, %521 : vector<4x128xi1>
    %523 = math.tanh %516 : vector<4x128xf32>
    %524 = arith.negf %516 : vector<4x128xf32>
    %525 = math.exp %524 : vector<4x128xf32>
    %cst_105 = arith.constant 1.000000e+00 : f32
    %526 = vector.broadcast %cst_105 : f32 to vector<4x128xf32>
    %527 = arith.addf %526, %525 : vector<4x128xf32>
    %528 = arith.divf %526, %527 : vector<4x128xf32>
    %529 = arith.select %522, %523, %528 : vector<4x128xi1>, vector<4x128xf32>
    %530 = vector.extract_strided_slice %529 {offsets = [0, 0], sizes = [4, 32], strides = [1, 1]} : vector<4x128xf32> to vector<4x32xf32>
    %531 = vector.extract_strided_slice %529 {offsets = [0, 32], sizes = [4, 32], strides = [1, 1]} : vector<4x128xf32> to vector<4x32xf32>
    %532 = vector.extract_strided_slice %529 {offsets = [0, 64], sizes = [4, 32], strides = [1, 1]} : vector<4x128xf32> to vector<4x32xf32>
    %533 = vector.extract_strided_slice %529 {offsets = [0, 96], sizes = [4, 32], strides = [1, 1]} : vector<4x128xf32> to vector<4x32xf32>
    %534 = arith.mulf %531, %512 : vector<4x32xf32>
    %535 = arith.mulf %530, %532 : vector<4x32xf32>
    %536 = arith.addf %534, %535 : vector<4x32xf32>
    %537 = math.tanh %536 : vector<4x32xf32>
    %538 = arith.mulf %533, %537 : vector<4x32xf32>
    %cst_106 = arith.constant dense<0.000000e+00> : vector<4x128xf32>
    %539 = tpu.matmul %538, %440, %cst_106 {dimension_numbers = #tpu.dot_dimension_numbers<[1], [0], [0], [1], [0, 0, 1, 1], [], []>} : vector<4x32xf32>, vector<32x128xf32>, vector<4x128xf32> -> vector<4x128xf32>
    %540 = arith.addf %439, %539 : vector<4x128xf32>
    %541 = tpu.iota {dimensions = array<i32: 1>} : vector<4x128xi32>
    %c64_i32_107 = arith.constant 64 : i32
    %542 = vector.broadcast %c64_i32_107 : i32 to vector<4x128xi32>
    %543 = arith.cmpi sge, %541, %542 : vector<4x128xi32>
    %c96_i32_108 = arith.constant 96 : i32
    %544 = vector.broadcast %c96_i32_108 : i32 to vector<4x128xi32>
    %545 = arith.cmpi slt, %541, %544 : vector<4x128xi32>
    %546 = arith.andi %543, %545 : vector<4x128xi1>
    %547 = math.tanh %540 : vector<4x128xf32>
    %548 = arith.negf %540 : vector<4x128xf32>
    %549 = math.exp %548 : vector<4x128xf32>
    %cst_109 = arith.constant 1.000000e+00 : f32
    %550 = vector.broadcast %cst_109 : f32 to vector<4x128xf32>
    %551 = arith.addf %550, %549 : vector<4x128xf32>
    %552 = arith.divf %550, %551 : vector<4x128xf32>
    %553 = arith.select %546, %547, %552 : vector<4x128xi1>, vector<4x128xf32>
    %554 = vector.extract_strided_slice %553 {offsets = [0, 0], sizes = [4, 32], strides = [1, 1]} : vector<4x128xf32> to vector<4x32xf32>
    %555 = vector.extract_strided_slice %553 {offsets = [0, 32], sizes = [4, 32], strides = [1, 1]} : vector<4x128xf32> to vector<4x32xf32>
    %556 = vector.extract_strided_slice %553 {offsets = [0, 64], sizes = [4, 32], strides = [1, 1]} : vector<4x128xf32> to vector<4x32xf32>
    %557 = vector.extract_strided_slice %553 {offsets = [0, 96], sizes = [4, 32], strides = [1, 1]} : vector<4x128xf32> to vector<4x32xf32>
    %558 = arith.mulf %555, %536 : vector<4x32xf32>
    %559 = arith.mulf %554, %556 : vector<4x32xf32>
    %560 = arith.addf %558, %559 : vector<4x32xf32>
    %561 = math.tanh %560 : vector<4x32xf32>
    %562 = arith.mulf %557, %561 : vector<4x32xf32>
    %cst_110 = arith.constant dense<0.000000e+00> : vector<4x128xf32>
    %563 = tpu.matmul %562, %440, %cst_110 {dimension_numbers = #tpu.dot_dimension_numbers<[1], [0], [0], [1], [0, 0, 1, 1], [], []>} : vector<4x32xf32>, vector<32x128xf32>, vector<4x128xf32> -> vector<4x128xf32>
    %564 = arith.addf %439, %563 : vector<4x128xf32>
    %565 = tpu.iota {dimensions = array<i32: 1>} : vector<4x128xi32>
    %c64_i32_111 = arith.constant 64 : i32
    %566 = vector.broadcast %c64_i32_111 : i32 to vector<4x128xi32>
    %567 = arith.cmpi sge, %565, %566 : vector<4x128xi32>
    %c96_i32_112 = arith.constant 96 : i32
    %568 = vector.broadcast %c96_i32_112 : i32 to vector<4x128xi32>
    %569 = arith.cmpi slt, %565, %568 : vector<4x128xi32>
    %570 = arith.andi %567, %569 : vector<4x128xi1>
    %571 = math.tanh %564 : vector<4x128xf32>
    %572 = arith.negf %564 : vector<4x128xf32>
    %573 = math.exp %572 : vector<4x128xf32>
    %cst_113 = arith.constant 1.000000e+00 : f32
    %574 = vector.broadcast %cst_113 : f32 to vector<4x128xf32>
    %575 = arith.addf %574, %573 : vector<4x128xf32>
    %576 = arith.divf %574, %575 : vector<4x128xf32>
    %577 = arith.select %570, %571, %576 : vector<4x128xi1>, vector<4x128xf32>
    %578 = vector.extract_strided_slice %577 {offsets = [0, 0], sizes = [4, 32], strides = [1, 1]} : vector<4x128xf32> to vector<4x32xf32>
    %579 = vector.extract_strided_slice %577 {offsets = [0, 32], sizes = [4, 32], strides = [1, 1]} : vector<4x128xf32> to vector<4x32xf32>
    %580 = vector.extract_strided_slice %577 {offsets = [0, 64], sizes = [4, 32], strides = [1, 1]} : vector<4x128xf32> to vector<4x32xf32>
    %581 = vector.extract_strided_slice %577 {offsets = [0, 96], sizes = [4, 32], strides = [1, 1]} : vector<4x128xf32> to vector<4x32xf32>
    %582 = arith.mulf %579, %560 : vector<4x32xf32>
    %583 = arith.mulf %578, %580 : vector<4x32xf32>
    %584 = arith.addf %582, %583 : vector<4x32xf32>
    %585 = math.tanh %584 : vector<4x32xf32>
    %586 = arith.mulf %581, %585 : vector<4x32xf32>
    %cst_114 = arith.constant dense<0.000000e+00> : vector<4x128xf32>
    %587 = tpu.matmul %586, %440, %cst_114 {dimension_numbers = #tpu.dot_dimension_numbers<[1], [0], [0], [1], [0, 0, 1, 1], [], []>} : vector<4x32xf32>, vector<32x128xf32>, vector<4x128xf32> -> vector<4x128xf32>
    %588 = arith.addf %439, %587 : vector<4x128xf32>
    %589 = tpu.iota {dimensions = array<i32: 1>} : vector<4x128xi32>
    %c64_i32_115 = arith.constant 64 : i32
    %590 = vector.broadcast %c64_i32_115 : i32 to vector<4x128xi32>
    %591 = arith.cmpi sge, %589, %590 : vector<4x128xi32>
    %c96_i32_116 = arith.constant 96 : i32
    %592 = vector.broadcast %c96_i32_116 : i32 to vector<4x128xi32>
    %593 = arith.cmpi slt, %589, %592 : vector<4x128xi32>
    %594 = arith.andi %591, %593 : vector<4x128xi1>
    %595 = math.tanh %588 : vector<4x128xf32>
    %596 = arith.negf %588 : vector<4x128xf32>
    %597 = math.exp %596 : vector<4x128xf32>
    %cst_117 = arith.constant 1.000000e+00 : f32
    %598 = vector.broadcast %cst_117 : f32 to vector<4x128xf32>
    %599 = arith.addf %598, %597 : vector<4x128xf32>
    %600 = arith.divf %598, %599 : vector<4x128xf32>
    %601 = arith.select %594, %595, %600 : vector<4x128xi1>, vector<4x128xf32>
    %602 = vector.extract_strided_slice %601 {offsets = [0, 0], sizes = [4, 32], strides = [1, 1]} : vector<4x128xf32> to vector<4x32xf32>
    %603 = vector.extract_strided_slice %601 {offsets = [0, 32], sizes = [4, 32], strides = [1, 1]} : vector<4x128xf32> to vector<4x32xf32>
    %604 = vector.extract_strided_slice %601 {offsets = [0, 64], sizes = [4, 32], strides = [1, 1]} : vector<4x128xf32> to vector<4x32xf32>
    %605 = vector.extract_strided_slice %601 {offsets = [0, 96], sizes = [4, 32], strides = [1, 1]} : vector<4x128xf32> to vector<4x32xf32>
    %606 = arith.mulf %603, %584 : vector<4x32xf32>
    %607 = arith.mulf %602, %604 : vector<4x32xf32>
    %608 = arith.addf %606, %607 : vector<4x32xf32>
    %609 = math.tanh %608 : vector<4x32xf32>
    %610 = arith.mulf %605, %609 : vector<4x32xf32>
    %cst_118 = arith.constant dense<0.000000e+00> : vector<4x128xf32>
    %611 = tpu.matmul %610, %440, %cst_118 {dimension_numbers = #tpu.dot_dimension_numbers<[1], [0], [0], [1], [0, 0, 1, 1], [], []>} : vector<4x32xf32>, vector<32x128xf32>, vector<4x128xf32> -> vector<4x128xf32>
    %612 = arith.addf %439, %611 : vector<4x128xf32>
    %613 = tpu.iota {dimensions = array<i32: 1>} : vector<4x128xi32>
    %c64_i32_119 = arith.constant 64 : i32
    %614 = vector.broadcast %c64_i32_119 : i32 to vector<4x128xi32>
    %615 = arith.cmpi sge, %613, %614 : vector<4x128xi32>
    %c96_i32_120 = arith.constant 96 : i32
    %616 = vector.broadcast %c96_i32_120 : i32 to vector<4x128xi32>
    %617 = arith.cmpi slt, %613, %616 : vector<4x128xi32>
    %618 = arith.andi %615, %617 : vector<4x128xi1>
    %619 = math.tanh %612 : vector<4x128xf32>
    %620 = arith.negf %612 : vector<4x128xf32>
    %621 = math.exp %620 : vector<4x128xf32>
    %cst_121 = arith.constant 1.000000e+00 : f32
    %622 = vector.broadcast %cst_121 : f32 to vector<4x128xf32>
    %623 = arith.addf %622, %621 : vector<4x128xf32>
    %624 = arith.divf %622, %623 : vector<4x128xf32>
    %625 = arith.select %618, %619, %624 : vector<4x128xi1>, vector<4x128xf32>
    %626 = vector.extract_strided_slice %625 {offsets = [0, 0], sizes = [4, 32], strides = [1, 1]} : vector<4x128xf32> to vector<4x32xf32>
    %627 = vector.extract_strided_slice %625 {offsets = [0, 32], sizes = [4, 32], strides = [1, 1]} : vector<4x128xf32> to vector<4x32xf32>
    %628 = vector.extract_strided_slice %625 {offsets = [0, 64], sizes = [4, 32], strides = [1, 1]} : vector<4x128xf32> to vector<4x32xf32>
    %629 = vector.extract_strided_slice %625 {offsets = [0, 96], sizes = [4, 32], strides = [1, 1]} : vector<4x128xf32> to vector<4x32xf32>
    %630 = arith.mulf %627, %608 : vector<4x32xf32>
    %631 = arith.mulf %626, %628 : vector<4x32xf32>
    %632 = arith.addf %630, %631 : vector<4x32xf32>
    %633 = math.tanh %632 : vector<4x32xf32>
    %634 = arith.mulf %629, %633 : vector<4x32xf32>
    %635 = tpu.concatenate %466, %490, %514, %538, %562, %586, %610, %634 in 0 : vector<4x32xf32>, vector<4x32xf32>, vector<4x32xf32>, vector<4x32xf32>, vector<4x32xf32>, vector<4x32xf32>, vector<4x32xf32>, vector<4x32xf32> -> vector<32x32xf32>
    %c0_122 = arith.constant 0 : index
    %c0_123 = arith.constant 0 : index
    %636 = vector.load %arg10[%c0_122, %c0_123] : memref<32x16xf32, #tpu.memory_space<vmem>>, vector<32x16xf32>
    %cst_124 = arith.constant dense<0.000000e+00> : vector<32x16xf32>
    %637 = tpu.matmul %635, %636, %cst_124 {dimension_numbers = #tpu.dot_dimension_numbers<[1], [0], [0], [1], [0, 0, 1, 1], [], []>} : vector<32x32xf32>, vector<32x16xf32>, vector<32x16xf32> -> vector<32x16xf32>
    %c0_125 = arith.constant 0 : index
    %c0_126 = arith.constant 0 : index
    %638 = vector.load %arg11[%c0_125, %c0_126] : memref<1x16xf32, #tpu.memory_space<vmem>>, vector<1x16xf32>
    %639 = vector.broadcast %638 : vector<1x16xf32> to vector<32x16xf32>
    %640 = arith.addf %637, %639 : vector<32x16xf32>
    %c0_127 = arith.constant 0 : index
    %c0_128 = arith.constant 0 : index
    %641 = vector.load %arg14[%c0_127, %c0_128] : memref<32x16xf32, #tpu.memory_space<vmem>>, vector<32x16xf32>
    tpu.vector_store %arg14[%c0_127, %c0_128], %640 {strides = array<i32>} : memref<32x16xf32, #tpu.memory_space<vmem>>, vector<32x16xf32>,
    %c0_129 = arith.constant 0 : index
    %c0_130 = arith.constant 0 : index
    %642 = vector.load %arg12[%c0_129, %c0_130] : memref<32x10xf32, #tpu.memory_space<vmem>>, vector<32x10xf32>
    %cst_131 = arith.constant dense<0.000000e+00> : vector<4x10xf32>
    %643 = tpu.matmul %634, %642, %cst_131 {dimension_numbers = #tpu.dot_dimension_numbers<[1], [0], [0], [1], [0, 0, 1, 1], [], []>} : vector<4x32xf32>, vector<32x10xf32>, vector<4x10xf32> -> vector<4x10xf32>
    %c0_132 = arith.constant 0 : index
    %c0_133 = arith.constant 0 : index
    %644 = vector.load %arg13[%c0_132, %c0_133] : memref<1x10xf32, #tpu.memory_space<vmem>>, vector<1x10xf32>
    %645 = vector.broadcast %644 : vector<1x10xf32> to vector<4x10xf32>
    %646 = arith.addf %643, %645 : vector<4x10xf32>
    %c0_134 = arith.constant 0 : index
    %c0_135 = arith.constant 0 : index
    %647 = vector.load %arg15[%c0_134, %c0_135] : memref<4x10xf32, #tpu.memory_space<vmem>>, vector<4x10xf32>
    tpu.vector_store %arg15[%c0_134, %c0_135], %646 {strides = array<i32>} : memref<4x10xf32, #tpu.memory_space<vmem>>, vector<4x10xf32>,
    return
  }
}

</mosaic_0001>

<bundles_post_ra>
// kernel: lstmae_forward.1
= control target key start
LH: loop header
LB: loop body
LE: loop exit
PB: predicated region body
PF: predicated region fallthrough
CT: control target
= control target key end

     0   :  { %21 = vsyncpa [#allocation3], 0  ;;  %s5219_s0 = inlined_call_operand.vmem [shape: f32[4,8,16], index: 0, kind: input, shape index: {}]   ;;  %s5220_s1 = inlined_call_operand.hbm [shape: f32[16,128], index: 1, kind: input, shape index: {}]   ;;  %s5221_s2 = inlined_call_operand.vmem [shape: f32[32,128], index: 2, kind: input, shape index: {}]   ;;  %s5222_s3 = inlined_call_operand.vmem [shape: f32[1,128], index: 3, kind: input, shape index: {}]   ;;  %s5223_s4 = inlined_call_operand.vmem [shape: f32[32,128], index: 4, kind: input, shape index: {}]   ;;  %s5224_s5 = inlined_call_operand.vmem [shape: f32[32,128], index: 5, kind: input, shape index: {}]   ;;  %s5225_s6 = inlined_call_operand.hbm [shape: f32[1,128], index: 6, kind: input, shape index: {}]   ;;  %s5226_s7 = inlined_call_operand.hbm [shape: f32[32,128], index: 7, kind: input, shape index: {}]   ;;  %s5227_s8 = inlined_call_operand.hbm [shape: f32[32,128], index: 8, kind: input, shape index: {}]   ;;  %s5228_s9 = inlined_call_operand.hbm [shape: f32[1,128], index: 9, kind: input, shape index: {}]   ;;  %s5229_s10 = inlined_call_operand.vmem [shape: f32[32,16], index: 10, kind: input, shape index: {}]   ;;  %s5230_s11 = inlined_call_operand.hbm [shape: f32[1,16], index: 11, kind: input, shape index: {}]   ;;  %s5231_s12 = inlined_call_operand.vmem [shape: f32[32,10], index: 12, kind: input, shape index: {}]   ;;  %s5232_s13 = inlined_call_operand.hbm [shape: f32[1,10], index: 13, kind: input, shape index: {}]   ;;  %s5233_s14 = inlined_call_operand.vmem [shape: f32[32,16], index: 14, kind: output, shape index: {0}]   ;;  %s5234_s15 = inlined_call_operand.hbm [shape: f32[4,10], index: 15, kind: output, shape index: {1}]  }
   0x1   :  { %22 = vsyncpa [#allocation6], 0 }
   0x2   :  { %23 = vsyncpa [#allocation9], 0 }
   0x3   :  { %24 = vsyncpa [#allocation12], 0 }
   0x4   :  { %25 = vsyncpa [#allocation4], 0  ;;  %s4383_s18 = smov [#allocation5]   ;;  %s4197_s22 = scalar_lea.hbm %s5225_s6, 16 }
   0x5   :  { %s54_s19 = sshll.u32 %s4383_s18, 4  ;;  %p4198_p0 = scmp.ne.s32.totalorder %s5225_s6, %s4197_s22  ;;  %s55_s19 = int_to_ptr.vmem [resolvable:$true] %s54_s19 }
   0x6   :  { %p4201_p1 = scmp.lt.u32.totalorder %s4197_s22, %s5225_s6 }
   0x8   :  { %p4203_p2 = pnand %p4201_p1, %p4198_p0 }
   0xa   :  { %4206 = shalt.err (!%p4203_p2)
}
   0xb   :  { %s4207_s27 = scalar_lea.vmem %s55_s19, 16  ;;  %s4211_s28 = scalar_lea.vmem %s55_s19, 32 }
   0xc   :  { %p4208_p3 = scmp.ne.s32.totalorder %s55_s19, %s4207_s27  ;;  %p4212_p4 = scmp.lt.s32.totalorder %s55_s19, %s55_s19 }
   0xd   :  { %p4213_p5 = scmp.lt.s32.totalorder %s4211_s28, %s4207_s27 }
   0xf   :  { %p4214_p6 = por %p4213_p5, %p4212_p4 }
  0x11   :  { %p4215_p7 = pnand %p4214_p6, %p4208_p3 }
  0x13   :  { %4218 = shalt.err (!%p4215_p7)
}
  0x14   :  { %57 = dma.hbm_to_vmem [thread:$0]  %s5225_s6, 16, %s55_s19, [#allocation6]  }
  0x15   :  { %s4384_s16 = smov [#allocation8]   ;;  %s4385_s18 = smov [#allocation11]  }
  0x16   :  { %s75_s17 = sshll.u32 %s4384_s16, 4  ;;  %s100_s20 = sshll.u32 %s4385_s18, 4  ;;  %s76_s17 = int_to_ptr.vmem [resolvable:$true] %s75_s17  ;;  %s101_s20 = int_to_ptr.vmem [resolvable:$true] %s100_s20 }
  0x17   :  { %s4219_s23 = scalar_lea.hbm %s5227_s8, 512 }
  0x18   :  { %p4220_p8 = scmp.ne.s32.totalorder %s5227_s8, %s4219_s23  ;;  %p4223_p9 = scmp.lt.u32.totalorder %s4219_s23, %s5227_s8 }
  0x1a   :  { %p4225_p10 = pnand %p4223_p9, %p4220_p8 }
  0x1c   :  { %4228 = shalt.err (!%p4225_p10)
}
  0x1d   :  { %s4229_s6 = scalar_lea.vmem %s76_s17, 512  ;;  %p4234_p12 = scmp.lt.s32.totalorder %s76_s17, %s76_s17 }
  0x1e   :  { %p4230_p11 = scmp.ne.s32.totalorder %s76_s17, %s4229_s6  ;;  %p4235_p13 = scmp.lt.s32.totalorder %s4229_s6, %s4229_s6 }
  0x20   :  { %p4236_p0 = por %p4235_p13, %p4234_p12 }
  0x22   :  { %p4237_p1 = pnand %p4236_p0, %p4230_p11 }
  0x24   :  { %4240 = shalt.err (!%p4237_p1)
}
  0x25   :  { %s4386_s19 = smov 128   ;;  %s4387_s28 = smov 8  }
  0x26   :  { %81 = dma.hbm_to_vmem [thread:$0]  %s5227_s8, 512, %s76_s17, [#allocation9], %s4386_s19, %s4386_s19, %s4387_s28  }
  0x27   :  { %s4241_s21 = scalar_lea.hbm %s5230_s11, 16 }
  0x28   :  { %p4242_p2 = scmp.ne.s32.totalorder %s5230_s11, %s4241_s21  ;;  %p4245_p3 = scmp.lt.u32.totalorder %s4241_s21, %s5230_s11 }
  0x2a   :  { %p4247_p4 = pnand %p4245_p3, %p4242_p2 }
  0x2c   :  { %4250 = shalt.err (!%p4247_p4)
}
  0x2d   :  { %s4251_s26 = scalar_lea.vmem %s101_s20, 16  ;;  %s4255_s27 = scalar_lea.vmem %s101_s20, 32 }
  0x2e   :  { %p4252_p5 = scmp.ne.s32.totalorder %s101_s20, %s4251_s26  ;;  %p4256_p6 = scmp.lt.s32.totalorder %s101_s20, %s101_s20 }
  0x2f   :  { %p4257_p7 = scmp.lt.s32.totalorder %s4255_s27, %s4251_s26 }
  0x31   :  { %p4258_p8 = por %p4257_p7, %p4256_p6 }
  0x33   :  { %p4259_p9 = pnand %p4258_p8, %p4252_p5 }
  0x35   :  { %4262 = shalt.err (!%p4259_p9)
}
  0x36   :  { %103 = dma.hbm_to_vmem [thread:$0]  %s5230_s11, 16, %s101_s20, [#allocation12]  }
  0x37   :  { %s4388_s6 = smov [#allocation2]   ;;  %s4389_s30 = smov [#allocation7]  }
  0x38   :  { %s33_s29 = sshll.u32 %s4388_s6, 4  ;;  %s63_s16 = sshll.u32 %s4389_s30, 4  ;;  %s34_s29 = int_to_ptr.vmem [resolvable:$true] %s33_s29  ;;  %s64_s16 = int_to_ptr.vmem [resolvable:$true] %s63_s16 }
  0x39   :  { %s4263_s22 = scalar_lea.hbm %s5220_s1, 256 }
  0x3a   :  { %p4264_p10 = scmp.ne.s32.totalorder %s5220_s1, %s4263_s22  ;;  %p4267_p11 = scmp.lt.u32.totalorder %s4263_s22, %s5220_s1 }
  0x3c   :  { %p4269_p12 = pnand %p4267_p11, %p4264_p10 }
  0x3e   :  { %4272 = shalt.err (!%p4269_p12)
}
  0x3f   :  { %s4273_s11 = scalar_lea.vmem %s34_s29, 256  ;;  %p4278_p0 = scmp.lt.s32.totalorder %s34_s29, %s34_s29 }
  0x40   :  { %p4274_p13 = scmp.ne.s32.totalorder %s34_s29, %s4273_s11  ;;  %p4279_p1 = scmp.lt.s32.totalorder %s4273_s11, %s4273_s11 }
  0x42   :  { %p4280_p2 = por %p4279_p1, %p4278_p0 }
  0x44   :  { %p4281_p3 = pnand %p4280_p2, %p4274_p13 }
  0x46   :  { %4284 = shalt.err (!%p4281_p3)
}
  0x47   :  { %39 = dma.hbm_to_vmem [thread:$0]  %s5220_s1, 256, %s34_s29, [#allocation3], %s4386_s19, %s4386_s19, %s4387_s28  }
  0x48   :  { %s4285_s6 = scalar_lea.hbm %s5226_s7, 512 }
  0x49   :  { %p4286_p4 = scmp.ne.s32.totalorder %s5226_s7, %s4285_s6  ;;  %p4289_p5 = scmp.lt.u32.totalorder %s4285_s6, %s5226_s7 }
  0x4b   :  { %p4291_p6 = pnand %p4289_p5, %p4286_p4 }
  0x4d   :  { %4294 = shalt.err (!%p4291_p6)
}
  0x4e   :  { %s4295_s23 = scalar_lea.vmem %s64_s16, 512  ;;  %p4300_p8 = scmp.lt.s32.totalorder %s64_s16, %s64_s16 }
  0x4f   :  { %p4296_p7 = scmp.ne.s32.totalorder %s64_s16, %s4295_s23  ;;  %p4301_p9 = scmp.lt.s32.totalorder %s4295_s23, %s4295_s23 }
  0x51   :  { %p4302_p10 = por %p4301_p9, %p4300_p8 }
  0x53   :  { %p4303_p11 = pnand %p4302_p10, %p4296_p7 }
  0x55   :  { %4306 = shalt.err (!%p4303_p11)
}
  0x56   :  { %69 = dma.hbm_to_vmem [thread:$0]  %s5226_s7, 512, %s64_s16, [#allocation6], %s4386_s19, %s4386_s19, %s4387_s28  }
  0x57   :  { %s4390_s24 = smov [#allocation10]   ;;  %s4391_s26 = smov [#allocation13]  }
  0x58   :  { %s88_s25 = sshll.u32 %s4390_s24, 4  ;;  %s112_s11 = sshll.u32 %s4391_s26, 4  ;;  %s89_s25 = int_to_ptr.vmem [resolvable:$true] %s88_s25  ;;  %s113_s11 = int_to_ptr.vmem [resolvable:$true] %s112_s11 }
  0x59   :  { %s4307_s8 = scalar_lea.hbm %s5228_s9, 16 }
  0x5a   :  { %p4308_p12 = scmp.ne.s32.totalorder %s5228_s9, %s4307_s8  ;;  %p4311_p13 = scmp.lt.u32.totalorder %s4307_s8, %s5228_s9 }
  0x5c   :  { %p4313_p0 = pnand %p4311_p13, %p4308_p12 }
  0x5e   :  { %4316 = shalt.err (!%p4313_p0)
}
  0x5f   :  { %s4317_s7 = scalar_lea.vmem %s89_s25, 16  ;;  %s4321_s19 = scalar_lea.vmem %s89_s25, 32 }
  0x60   :  { %p4318_p1 = scmp.ne.s32.totalorder %s89_s25, %s4317_s7  ;;  %p4322_p2 = scmp.lt.s32.totalorder %s89_s25, %s89_s25 }
  0x61   :  { %p4323_p3 = scmp.lt.s32.totalorder %s4321_s19, %s4317_s7 }
  0x63   :  { %p4324_p4 = por %p4323_p3, %p4322_p2 }
  0x65   :  { %p4325_p5 = pnand %p4324_p4, %p4318_p1 }
  0x67   :  { %4328 = shalt.err (!%p4325_p5)
}
  0x68   :  { %91 = dma.hbm_to_vmem [thread:$0]  %s5228_s9, 16, %s89_s25, [#allocation9]  }
  0x69   :  { %s4329_s23 = scalar_lea.hbm %s5232_s13, 16 }
  0x6a   :  { %p4330_p6 = scmp.ne.s32.totalorder %s5232_s13, %s4329_s23  ;;  %p4333_p7 = scmp.lt.u32.totalorder %s4329_s23, %s5232_s13 }
  0x6c   :  { %p4335_p8 = pnand %p4333_p7, %p4330_p6 }
  0x6e   :  { %4338 = shalt.err (!%p4335_p8)
}
  0x6f   :  { %s4339_s20 = scalar_lea.vmem %s113_s11, 16  ;;  %s4343_s27 = scalar_lea.vmem %s113_s11, 32 }
  0x70   :  { %p4340_p9 = scmp.ne.s32.totalorder %s113_s11, %s4339_s20  ;;  %p4344_p10 = scmp.lt.s32.totalorder %s113_s11, %s113_s11 }
  0x71   :  { %p4345_p11 = scmp.lt.s32.totalorder %s4343_s27, %s4339_s20 }
  0x73   :  { %p4346_p12 = por %p4345_p11, %p4344_p10 }
  0x75   :  { %p4347_p13 = pnand %p4346_p12, %p4340_p9 }
  0x77   :  { %4350 = shalt.err (!%p4347_p13)
}
  0x78   :  { %115 = dma.hbm_to_vmem [thread:$0]  %s5232_s13, 16, %s113_s11, [#allocation12]  }
  0x79   :  { %4373 = dma.done.wait [#allocation3], 256  }
  0x7a   :  { %4374 = vsyncadd [#allocation3], 4294967040 }
  0x7b   :  { %4375 = dma.done.wait [#allocation6], 528  }
  0x7c   :  { %4376 = vsyncadd [#allocation6], 4294966768 }
  0x7d   :  { %4377 = dma.done.wait [#allocation9], 528  }
  0x7e   :  { %4378 = vsyncadd [#allocation9], 4294966768 }
  0x7f   :  { %4379 = dma.done.wait [#allocation12], 32  }
  0x80   :  { %4380 = vsyncadd [#allocation12], 4294967264  ;;  %v4392_v0 = vmov 0.0|0.0   ;;  %vm4393_vm0 = vmmov 0   ;;  %v4394_v1 = vmov 0.0   ;;  %vm146_vm1 = vcmask 1041409  }
  0x81   :  { %3818 = vmatprep.subr.bf16.mxu1 %v4392_v0  ;;  %3508 = vmatprep.mubr.msk.f32.mxu1 %vm4393_vm0, %v4394_v1  ;;  %vm149_vm2 = vcmask 1042434   ;;  %v323_v2 = vld [vmem:[%s5221_s2] sm:$0xff]  ;;  %v324_v3 = vld [vmem:[%s5221_s2 + $0x8] sm:$0xff]  ;;  %vm152_vm3 = vcmask 1043459   ;;  %vm157_vm4 = vcmask 1045509   ;;  %vm160_vm5 = vcmask 1046534  }
  0x82   :  { %v216_v4 = vld [vmem:[#allocation2] sm:$0xff]  ;;  %v4580_v5 = vpack.c.bf16 %v324_v3, %v323_v2  ;;  %v217_v6 = vld [vmem:[#allocation2 + $0x8] sm:$0xff]  ;;  %vm163_vm6 = vcmask 1047559   ;;  %vm211_vm7 = vcmask 1043456   ;;  %vm225_vm8 = vcmask 130048   ;;  %v4595_v10 = vld [vmem:[%s5219_s0 + $0x10] sm:$0xff] }
  0x83   :  { %v4585_v7 = vld [vmem:[%s5219_s0] sm:$0xff]  ;;  %v4590_v8 = vld [vmem:[%s5219_s0 + $0x8] sm:$0xff]  ;;  %v3814_v9 = vpack.c.bf16 %v217_v6, %v216_v4  ;;  %v4600_v11 = vld [vmem:[%s5219_s0 + $0x18] sm:$0xff]  ;;  %v148_v16 = vrot.slane %v4595_v10, 6  ;;  %v159_v18 = vrot.slane %v4595_v10, 3  ;;  %v176_v35 = vrot.slane %v4595_v10, 5 }
  0x84   :  { %v145_v12 = vrot.slane %v4590_v8, 7  ;;  %v155_v13 = vrot.slane %v4585_v7, 5  ;;  %v156_v14 = vrot.slane %v4590_v8, 4  ;;  %v325_v15 = vld [vmem:[%s5221_s2 + $0x10] sm:$0xff]  ;;  %3820 = vmatpush3.bf16.msra.mxu1 %v4580_v5  ;;  %v151_v17 = vrot.slane %v4600_v11, 5  ;;  %v326_v20 = vld [vmem:[%s5221_s2 + $0x18] sm:$0xff] }
  0x85   :  { %v162_v19 = vrot.slane %v4600_v11, 2  ;;  %3815 = vmatprep.subr.bf16.mxu0 %v3814_v9  ;;  %3821 = vmatprep.subr.bf16.mxu1 %v4392_v0  ;;  %v4620_v23 = vpack.c.bf16 %v326_v20, %v325_v15  ;;  %v166_v24 = vrot.slane %v4585_v7, 2  ;;  %v167_v27 = vrot.slane %v4590_v8, 1  ;;  %v4661_v44 = vld [vmem:[%s5222_s3] ss:$0 sm:$0xff]  ;;  %s4395_s3 = smov 64  }
  0x86   :  { %v147_v21 = vsel %vm146_vm1, %v145_v12, %v4585_v7  ;;  %v158_v22 = vsel %vm157_vm4, %v156_v14, %v155_v13  ;;  %3817 = vmatpush3.bf16.msra.mxu0 %v3814_v9  ;;  %v170_v28 = vrot.slane %v4600_v11, 7  ;;  %v173_v31 = vrot.slane %v4585_v7, 7  ;;  %s4396_s24 = smov 32   ;;  %v3046_v55 = vld [vmem:[%s5229_s10 + $0x8] sm:$0xff]  ;;  %s4397_s11 = smov [#allocation14]  }
  0x87   :  { %v150_v25 = vsel %vm149_vm2, %v148_v16, %v147_v21  ;;  %v161_v26 = vsel %vm160_vm5, %v159_v18, %v158_v22  ;;  %v174_v32 = vrot.slane %v4590_v8, 6  ;;  %3824 = vmatprep.subr.bf16.mxu0 %v4392_v0  ;;  %v168_v34 = vsel %vm146_vm1, %v167_v27, %v166_v24 }
  0x88   :  { %v153_v29 = vsel %vm152_vm3, %v151_v17, %v150_v25  ;;  %v164_v30 = vsel %vm163_vm6, %v162_v19, %v161_v26  ;;  %3823 = vmatpush3.bf16.msra.mxu1 %v4620_v23  ;;  %v178_v36 = vrot.slane %v4600_v11, 4  ;;  %v169_v37 = vsel %vm149_vm2, %v4595_v10, %v168_v34 }
  0x89   :  { %v212_v33 = vsel %vm211_vm7, %v153_v29, %v164_v30  ;;  %v175_v38 = vsel %vm157_vm4, %v174_v32, %v173_v31  ;;  %3830 = vmatprep.subr.bf16.mxu1 %v4392_v0  ;;  %v171_v39 = vsel %vm152_vm3, %v170_v28, %v169_v37  ;;  %v402_v52 = vlaneseq }
  0x8a   :  { %3494 = vmatprep.mubr.msk.f32.mxu0 %vm225_vm8, %v212_v33  ;;  %v177_v40 = vsel %vm160_vm5, %v176_v35, %v175_v38  ;;  %v181_v2 = vrot.slane %v4585_v7, 4  ;;  %v182_v3 = vrot.slane %v4590_v8, 3  ;;  %v184_v4 = vrot.slane %v4595_v10, 2 }
  0x8b   :  { %v179_v41 = vsel %vm163_vm6, %v178_v36, %v177_v40  ;;  %3509 = vmatmul.mubr.f32.vlgmr.msra.gmra.mrb[0].mxu1 %v4394_v1  ;;  %v403_v54 = vand.u32 127, %v402_v52  ;;  %v186_v6 = vrot.slane %v4600_v11, 1  ;;  %v189_v9 = vrot.slane %v4585_v7, 1 }
  0x8c   :  { %v213_v42 = vsel %vm211_vm7, %v171_v39, %v179_v41  ;;  %3832 = vmatpush3.bf16.msra.mxu1 %v4580_v5  ;;  %3530 = vmatprep.mubr.msk.f32.mxu1 %vm4393_vm0, %v4394_v1  ;;  %v191_v12 = vrot.slane %v4595_v10, 7  ;;  %v183_v13 = vsel %vm146_vm1, %v182_v3, %v181_v2  ;;  %v193_v14 = vrot.slane %v4600_v11, 6 }
  0x8d   :  { %3495 = vmatmul.mubr.msk.f32.vlgmr.msra.gmra.mrb[0].mxu0 %vm225_vm8, %v213_v42  ;;  %3833 = vmatprep.subr.bf16.mxu1 %v4392_v0  ;;  %vm404_vm9 = vcmp.ge.s32.totalorder %v403_v54, 64  ;;  %vm405_vm10 = vcmp.lt.s32.totalorder %v403_v54, 96  ;;  %v196_v15 = vrot.slane %v4585_v7, 6  ;;  %v197_v16 = vrot.slane %v4590_v8, 5 }
  0x8e   :  { %3826 = vmatpush3.bf16.msra.mxu0 %v4580_v5  ;;  %vm4669_vm11 = vmand %vm404_vm9, %vm405_vm10  ;;  %v185_v17 = vsel %vm149_vm2, %v184_v4, %v183_v13  ;;  %v190_v18 = vsel %vm157_vm4, %v4590_v8, %v189_v9  ;;  %v199_v19 = vrot.slane %v4595_v10, 4  ;;  %v201_v20 = vrot.slane %v4600_v11, 3 }
  0x8f   :  { %3827 = vmatprep.subr.bf16.mxu0 %v4392_v0  ;;  %v187_v21 = vsel %vm152_vm3, %v186_v6, %v185_v17  ;;  %v192_v22 = vsel %vm160_vm5, %v191_v12, %v190_v18  ;;  %v198_v24 = vsel %vm146_vm1, %v197_v16, %v196_v15  ;;  %v204_v25 = vrot.slane %v4585_v7, 3 }
  0x90   :  { %3835 = vmatpush3.bf16.msra.mxu1 %v4620_v23  ;;  %v194_v26 = vsel %vm163_vm6, %v193_v14, %v192_v22  ;;  %v200_v27 = vsel %vm149_vm2, %v199_v19, %v198_v24  ;;  %v205_v28 = vrot.slane %v4590_v8, 2  ;;  %v207_v29 = vrot.slane %v4595_v10, 1 }
  0x91   :  { %3842 = vmatprep.subr.bf16.mxu1 %v4392_v0  ;;  %v214_v30 = vsel %vm211_vm7, %v187_v21, %v194_v26  ;;  %v202_v31 = vsel %vm152_vm3, %v201_v20, %v200_v27  ;;  %vm327_vm12 = vcmask 261120   ;;  %vm3250_vm13 = vcmask 76800  }
  0x92   :  { %3829 = vmatpush3.bf16.msra.mxu0 %v4620_v23  ;;  %3497 = vmatprep.mubr.msk.f32.mxu0 %vm225_vm8, %v214_v30  ;;  %v206_v32 = vsel %vm157_vm4, %v205_v28, %v204_v25 }
  0x93   :  { %3836 = vmatprep.subr.bf16.mxu0 %v4392_v0  ;;  %v208_v33 = vsel %vm160_vm5, %v207_v29, %v206_v32 }
  0x94   :  { %v209_v7 = vsel %vm163_vm6, %v4600_v11, %v208_v33 }
  0x95   :  { %v215_v35 = vsel %vm211_vm7, %v202_v31, %v209_v7 }
  0x96   :  { %3498 = vmatmul.mubr.msk.f32.gmra.mrb[2].mxu0 %vm225_vm8, %v215_v35 }
  0x97   :  { %3519 = vmatprep.mubr.msk.f32.mxu0 %vm4393_vm0, %v4394_v1 }
 0x15e   :  { %v397_v43 = vpop.f32.mrb[0].mxu1 }
 0x15f   :  { %v3510_v45 = vpop.f32.mrb[1].mxu1 }
 0x160   :  { %v4663_v46 = vpop.f32.mrb[0].mxu0 }
 0x161   :  { %v304_v47 = vpop.f32.mrb[1].mxu0 }
 0x162   :  { %v4666_v48 = vadd.f32 %v4661_v44, %v304_v47 }
 0x164   :  { %v401_v49 = vadd.f32 %v397_v43, %v4666_v48 }
 0x166   :  { %v3279_v50 = vmul.f32 -1.442695, %v401_v49 }
 0x168   :  { %4005 = vpow2.f32 %v3279_v50 }
 0x169   :  { %4007 = vtanh.f32 %v401_v49  ;;  %v4719_v36 = vpop.f32.mrb[2].mxu0 }
 0x16a   :  { %v4721_v37 = vpop.f32.mrb[3].mxu0 }
 0x172   :  { %v4006_v51 = vpop.eup %4005 }
 0x173   :  { %v411_v53 = vadd.f32 1.0, %v4006_v51  ;;  %v4008_v56 = vpop.eup %4007 }
 0x175   :  { %4009 = vrcp.f32 %v411_v53 }
 0x17f   :  { %v4010_v57 = vpop.eup %4009 }
 0x180   :  { %v414_v58 = vsel %vm4669_vm11, %v4008_v56, %v4010_v57 }
 0x181   :  { %417 = vrot.lane.b32.xlu0 %v414_v58, %s4395_s3  ;;  %v415_v61 = vmul.f32 0.0, %v414_v58 }
 0x1f3   :  { %v418_v59 = vpop.permute.xlu0 %417 }
 0x1f4   :  { %v420_v60 = vmul.f32 %v418_v59, %v414_v58 }
 0x1f6   :  { %422 = vrot.lane.b32.xlu0 %v420_v60, %s4396_s24 }
 0x268   :  { %v423_v62 = vpop.permute.xlu0 %422 }
 0x269   :  { %v4677_v63 = vadd.f32 %v423_v62, %v415_v61  ;;  %v310_v62 = vadd.f32 %v4663_v46, %v4661_v44 }
 0x26b   :  { %4011 = vtanh.f32 %v4677_v63  ;;  %v520_v53 = vrot.slane %v4677_v63, 4 }
 0x275   :  { %v4012_v34 = vpop.eup %4011 }
 0x276   :  { %428 = vrot.lane.b32.xlu1 %v4012_v34, %s4395_s3 }
 0x2e8   :  { %v429_v8 = vpop.permute.xlu1 %428 }
 0x2e9   :  { %v4715_v10 = vmul.f32 %v429_v8, %v414_v58 }
 0x2eb   :  { %433 = vrot.lane.b32.xlu1 %v4715_v10, %s4396_s24 }
 0x35d   :  { %v434_v11 = vpop.permute.xlu1 %433 }
 0x35e   :  { %3520 = vmatmul.mubr.msk.f32.vlgmr.msra.gmra.mrb[4].mxu0 %vm327_vm12, %v434_v11 }
 0x35f   :  { %3838 = vmatpush3.bf16.msra.mxu0 %v4580_v5  ;;  %3541 = vmatprep.mubr.msk.f32.mxu0 %vm4393_vm0, %v4394_v1 }
 0x360   :  { %3839 = vmatprep.subr.bf16.mxu0 %v4392_v0 }
 0x363   :  { %3841 = vmatpush3.bf16.msra.mxu0 %v4620_v23 }
 0x364   :  { %3848 = vmatprep.subr.bf16.mxu0 %v4392_v0 }
 0x431   :  { %v503_v38 = vpop.f32.mrb[4].mxu0 }
 0x432   :  { %v508_v39 = vrot.slane %v503_v38, 4  ;;  %v3521_v40 = vpop.f32.mrb[5].mxu0 }
 0x434   :  { %v510_v41 = vadd.f32 %v508_v39, %v4666_v48 }
 0x436   :  { %v3281_v42 = vmul.f32 -1.442695, %v510_v41 }
 0x438   :  { %4013 = vpow2.f32 %v3281_v42 }
 0x439   :  { %4015 = vtanh.f32 %v510_v41 }
 0x442   :  { %v4014_v43 = vpop.eup %4013 }
 0x443   :  { %v515_v45 = vadd.f32 1.0, %v4014_v43  ;;  %v4016_v47 = vpop.eup %4015 }
 0x445   :  { %4017 = vrcp.f32 %v515_v45 }
 0x44f   :  { %v4018_v49 = vpop.eup %4017 }
 0x450   :  { %v518_v50 = vsel %vm4669_vm11, %v4016_v47, %v4018_v49  ;;  %v315_v47 = vadd.f32 %v4661_v44, %v4721_v37 }
 0x451   :  { %524 = vrot.lane.b32.xlu0 %v518_v50, %s4395_s3  ;;  %v522_v48 = vmul.f32 %v520_v53, %v518_v50 }
 0x4c3   :  { %v525_v51 = vpop.permute.xlu0 %524 }
 0x4c4   :  { %v527_v52 = vmul.f32 %v525_v51, %v518_v50 }
 0x4c6   :  { %529 = vrot.lane.b32.xlu1 %v527_v52, %s4396_s24 }
 0x538   :  { %v530_v54 = vpop.permute.xlu1 %529 }
 0x539   :  { %v532_v56 = vadd.f32 %v530_v54, %v522_v48 }
 0x53b   :  { %4019 = vtanh.f32 %v532_v56  ;;  %v625_v46 = vrot.slane %v532_v56, 4 }
 0x545   :  { %v4020_v57 = vpop.eup %4019 }
 0x546   :  { %535 = vrot.lane.b32.xlu0 %v4020_v57, %s4395_s3 }
 0x5b8   :  { %v536_v58 = vpop.permute.xlu0 %535 }
 0x5b9   :  { %v4737_v59 = vmul.f32 %v536_v58, %v518_v50 }
 0x5bb   :  { %v540_v60 = vrot.slane %v4737_v59, 4 }
 0x5bd   :  { %541 = vrot.lane.b32.xlu1 %v540_v60, %s4396_s24 }
 0x62f   :  { %v542_v61 = vpop.permute.xlu1 %541 }
 0x630   :  { %3531 = vmatmul.mubr.msk.f32.vlgmr.msra.gmra.mrb[2].mxu1 %vm327_vm12, %v542_v61 }
 0x631   :  { %3844 = vmatpush3.bf16.msra.mxu1 %v4580_v5  ;;  %3552 = vmatprep.mubr.msk.f32.mxu1 %vm4393_vm0, %v4394_v1 }
 0x632   :  { %3845 = vmatprep.subr.bf16.mxu1 %v4392_v0 }
 0x635   :  { %3847 = vmatpush3.bf16.msra.mxu1 %v4620_v23 }
 0x636   :  { %3854 = vmatprep.subr.bf16.mxu1 %v4392_v0 }
 0x703   :  { %v611_v63 = vpop.f32.mrb[2].mxu1 }
 0x704   :  { %v615_v2 = vadd.f32 %v611_v63, %v310_v62  ;;  %v3532_v3 = vpop.f32.mrb[3].mxu1 }
 0x706   :  { %v3283_v4 = vmul.f32 -1.442695, %v615_v2 }
 0x708   :  { %4021 = vpow2.f32 %v3283_v4 }
 0x709   :  { %4023 = vtanh.f32 %v615_v2 }
 0x712   :  { %v4022_v6 = vpop.eup %4021 }
 0x713   :  { %v620_v9 = vadd.f32 1.0, %v4022_v6  ;;  %v4024_v12 = vpop.eup %4023 }
 0x715   :  { %4025 = vrcp.f32 %v620_v9 }
 0x71f   :  { %v4026_v13 = vpop.eup %4025 }
 0x720   :  { %v623_v14 = vsel %vm4669_vm11, %v4024_v12, %v4026_v13 }
 0x721   :  { %629 = vrot.lane.b32.xlu0 %v623_v14, %s4395_s3  ;;  %v627_v17 = vmul.f32 %v625_v46, %v623_v14 }
 0x793   :  { %v630_v15 = vpop.permute.xlu0 %629 }
 0x794   :  { %v632_v16 = vmul.f32 %v630_v15, %v623_v14 }
 0x796   :  { %634 = vrot.lane.b32.xlu1 %v632_v16, %s4396_s24 }
 0x808   :  { %v635_v18 = vpop.permute.xlu1 %634 }
 0x809   :  { %v637_v19 = vadd.f32 %v635_v18, %v627_v17 }
 0x80b   :  { %4027 = vtanh.f32 %v637_v19  ;;  %v732_v8 = vrot.slane %v637_v19, 4 }
 0x815   :  { %v4028_v20 = vpop.eup %4027 }
 0x816   :  { %640 = vrot.lane.b32.xlu0 %v4028_v20, %s4395_s3 }
 0x888   :  { %v641_v21 = vpop.permute.xlu0 %640 }
 0x889   :  { %v4755_v22 = vmul.f32 %v641_v21, %v623_v14 }
 0x88b   :  { %645 = vrot.lane.b32.xlu1 %v4755_v22, %s4396_s24 }
 0x8fd   :  { %v646_v24 = vpop.permute.xlu1 %645 }
 0x8fe   :  { %3542 = vmatmul.mubr.msk.f32.vlgmr.msra.gmra.mrb[6].mxu0 %vm327_vm12, %v646_v24 }
 0x8ff   :  { %3850 = vmatpush3.bf16.msra.mxu0 %v4580_v5  ;;  %3563 = vmatprep.mubr.msk.f32.mxu0 %vm4393_vm0, %v4394_v1 }
 0x900   :  { %3851 = vmatprep.subr.bf16.mxu0 %v4392_v0 }
 0x903   :  { %3853 = vmatpush3.bf16.msra.mxu0 %v4620_v23 }
 0x904   :  { %3860 = vmatprep.subr.bf16.mxu0 %v4392_v0 }
 0x9d1   :  { %v715_v25 = vpop.f32.mrb[6].mxu0 }
 0x9d2   :  { %v720_v26 = vrot.slane %v715_v25, 4  ;;  %v3543_v27 = vpop.f32.mrb[7].mxu0 }
 0x9d4   :  { %v722_v28 = vadd.f32 %v720_v26, %v310_v62 }
 0x9d6   :  { %v3285_v29 = vmul.f32 -1.442695, %v722_v28 }
 0x9d8   :  { %4029 = vpow2.f32 %v3285_v29 }
 0x9d9   :  { %4031 = vtanh.f32 %v722_v28 }
 0x9e2   :  { %v4030_v30 = vpop.eup %4029 }
 0x9e3   :  { %v727_v31 = vadd.f32 1.0, %v4030_v30  ;;  %v4032_v32 = vpop.eup %4031 }
 0x9e5   :  { %4033 = vrcp.f32 %v727_v31  ;;  %v4811_v31 = vadd.f32 %v4719_v36, %v4661_v44 }
 0x9ef   :  { %v4034_v33 = vpop.eup %4033 }
 0x9f0   :  { %v730_v7 = vsel %vm4669_vm11, %v4032_v32, %v4034_v33 }
 0x9f1   :  { %736 = vrot.lane.b32.xlu0 %v730_v7, %s4395_s3  ;;  %v734_v11 = vmul.f32 %v732_v8, %v730_v7 }
 0xa63   :  { %v737_v34 = vpop.permute.xlu0 %736 }
 0xa64   :  { %v739_v35 = vmul.f32 %v737_v34, %v730_v7 }
 0xa66   :  { %741 = vrot.lane.b32.xlu1 %v739_v35, %s4396_s24 }
 0xad8   :  { %v742_v38 = vpop.permute.xlu1 %741 }
 0xad9   :  { %v744_v39 = vadd.f32 %v742_v38, %v734_v11 }
 0xadb   :  { %4035 = vtanh.f32 %v744_v39  ;;  %v837_v37 = vrot.slane %v744_v39, 4 }
 0xae5   :  { %v4036_v40 = vpop.eup %4035 }
 0xae6   :  { %747 = vrot.lane.b32.xlu0 %v4036_v40, %s4395_s3 }
 0xb58   :  { %v748_v41 = vpop.permute.xlu0 %747 }
 0xb59   :  { %v4771_v42 = vmul.f32 %v748_v41, %v730_v7 }
 0xb5b   :  { %v752_v43 = vrot.slane %v4771_v42, 4 }
 0xb5d   :  { %753 = vrot.lane.b32.xlu1 %v752_v43, %s4396_s24 }
 0xbcf   :  { %v754_v45 = vpop.permute.xlu1 %753 }
 0xbd0   :  { %3553 = vmatmul.mubr.msk.f32.vlgmr.msra.gmra.mrb[4].mxu1 %vm327_vm12, %v754_v45 }
 0xbd1   :  { %3856 = vmatpush3.bf16.msra.mxu1 %v4580_v5  ;;  %3574 = vmatprep.mubr.msk.f32.mxu1 %vm4393_vm0, %v4394_v1 }
 0xbd2   :  { %3857 = vmatprep.subr.bf16.mxu1 %v4392_v0 }
 0xbd5   :  { %3859 = vmatpush3.bf16.msra.mxu1 %v4620_v23 }
 0xca3   :  { %v823_v49 = vpop.f32.mrb[4].mxu1 }
 0xca4   :  { %v827_v50 = vadd.f32 %v823_v49, %v315_v47  ;;  %v3554_v51 = vpop.f32.mrb[5].mxu1  ;;  %v1180_v49 = vld [vmem:[%s5223_s4 + $0x8] sm:$0xff] }
 0xca6   :  { %v3287_v52 = vmul.f32 -1.442695, %v827_v50 }
 0xca8   :  { %4037 = vpow2.f32 %v3287_v52  ;;  %v1175_v52 = vsel %vm211_vm7, %v4715_v10, %v4737_v59  ;;  %v1176_v59 = vsel %vm211_vm7, %v4755_v22, %v4771_v42  ;;  %v1298_v22 = vld [vmem:[%s5224_s5 + $0x18] sm:$0xff] }
 0xca9   :  { %4039 = vtanh.f32 %v827_v50 }
 0xcb2   :  { %v4038_v53 = vpop.eup %4037 }
 0xcb3   :  { %v832_v48 = vadd.f32 1.0, %v4038_v53  ;;  %v4040_v54 = vpop.eup %4039  ;;  %v1181_v53 = vld [vmem:[%s5223_s4 + $0x10] sm:$0xff] }
 0xcb5   :  { %4041 = vrcp.f32 %v832_v48  ;;  %v1182_v48 = vld [vmem:[%s5223_s4 + $0x18] sm:$0xff] }
 0xcbf   :  { %v4042_v56 = vpop.eup %4041 }
 0xcc0   :  { %v835_v57 = vsel %vm4669_vm11, %v4040_v54, %v4042_v56  ;;  %v3870_v54 = vpack.c.bf16 %v1182_v48, %v1181_v53 }
 0xcc1   :  { %841 = vrot.lane.b32.xlu0 %v835_v57, %s4395_s3  ;;  %v839_v61 = vmul.f32 %v837_v37, %v835_v57 }
 0xd33   :  { %v842_v58 = vpop.permute.xlu0 %841 }
 0xd34   :  { %v844_v60 = vmul.f32 %v842_v58, %v835_v57  ;;  %v1295_v58 = vld [vmem:[%s5224_s5] sm:$0xff] }
 0xd36   :  { %846 = vrot.lane.b32.xlu1 %v844_v60, %s4396_s24  ;;  %v1296_v60 = vld [vmem:[%s5224_s5 + $0x8] sm:$0xff] }
 0xd37   :  { %v4854_v37 = vpack.c.bf16 %v1296_v60, %v1295_v58 }
 0xda8   :  { %v847_v62 = vpop.permute.xlu1 %846 }
 0xda9   :  { %v849_v63 = vadd.f32 %v847_v62, %v839_v61  ;;  %v1297_v61 = vld [vmem:[%s5224_s5 + $0x10] sm:$0xff] }
 0xdaa   :  { %v4864_v62 = vpack.c.bf16 %v1298_v22, %v1297_v61 }
 0xdab   :  { %4043 = vtanh.f32 %v849_v63  ;;  %v944_v20 = vrot.slane %v849_v63, 4 }
 0xdb5   :  { %v4044_v2 = vpop.eup %4043 }
 0xdb6   :  { %852 = vrot.lane.b32.xlu0 %v4044_v2, %s4395_s3 }
 0xe28   :  { %v853_v3 = vpop.permute.xlu0 %852 }
 0xe29   :  { %v4788_v4 = vmul.f32 %v853_v3, %v835_v57 }
 0xe2b   :  { %857 = vrot.lane.b32.xlu1 %v4788_v4, %s4396_s24 }
 0xe9d   :  { %v858_v6 = vpop.permute.xlu1 %857 }
 0xe9e   :  { %3564 = vmatmul.mubr.msk.f32.vlgmr.msra.gmra.mrb[8].mxu0 %vm327_vm12, %v858_v6 }
 0xe9f   :  { %3862 = vmatpush3.bf16.msra.mxu0 %v4580_v5  ;;  %3585 = vmatprep.mubr.msk.f32.mxu0 %vm4393_vm0, %v4394_v1 }
 0xea0   :  { %3863 = vmatprep.subr.bf16.mxu0 %v4392_v0 }
 0xea3   :  { %3865 = vmatpush3.bf16.msra.mxu0 %v4620_v23 }
 0xea4   :  { %3874 = vmatprep.subr.bf16.mxu0 %v4392_v0 }
 0xf71   :  { %v927_v9 = vpop.f32.mrb[8].mxu0 }
 0xf72   :  { %v932_v12 = vrot.slane %v927_v9, 4  ;;  %v3565_v13 = vpop.f32.mrb[9].mxu0 }
 0xf74   :  { %v934_v14 = vadd.f32 %v932_v12, %v315_v47  ;;  %v1179_v47 = vld [vmem:[%s5223_s4] sm:$0xff]  ;;  %v4884_v12 = vld [vmem:[#allocation5] ss:$0 sm:$0xff]  ;;  %s3260_s4 = sshll.u32 %s4397_s11, 4  ;;  %s3261_s4 = int_to_ptr.vmem [resolvable:$true] %s3260_s4 }
 0xf75   :  { %v3866_v50 = vpack.c.bf16 %v1180_v49, %v1179_v47  ;;  %s4351_s17 = scalar_lea.vmem %s3261_s4, 64  ;;  %p4356_p1 = scmp.lt.s32.totalorder %s3261_s4, %s3261_s4 }
 0xf76   :  { %v3289_v15 = vmul.f32 -1.442695, %v934_v14  ;;  %p4352_p0 = scmp.ne.s32.totalorder %s3261_s4, %s4351_s17  ;;  %p4357_p2 = scmp.lt.s32.totalorder %s4351_s17, %s4351_s17 }
 0xf77   :  { %3867 = vmatprep.subr.bf16.mxu1 %v3866_v50 }
 0xf78   :  { %4045 = vpow2.f32 %v3289_v15  ;;  %p4358_p3 = por %p4357_p2, %p4356_p1 }
 0xf79   :  { %4047 = vtanh.f32 %v934_v14 }
 0xf7a   :  { %p4359_p4 = pnand %p4358_p3, %p4352_p0 }
 0xf82   :  { %v4046_v16 = vpop.eup %4045 }
 0xf83   :  { %v939_v46 = vadd.f32 1.0, %v4046_v16  ;;  %v4048_v5 = vpop.eup %4047 }
 0xf85   :  { %4049 = vrcp.f32 %v939_v46 }
 0xf8f   :  { %v4050_v17 = vpop.eup %4049 }
 0xf90   :  { %v942_v18 = vsel %vm4669_vm11, %v4048_v5, %v4050_v17 }
 0xf91   :  { %948 = vrot.lane.b32.xlu0 %v942_v18, %s4395_s3  ;;  %v946_v21 = vmul.f32 %v944_v20, %v942_v18 }
0x1003   :  { %v949_v23 = vpop.permute.xlu0 %948 }
0x1004   :  { %v951_v19 = vmul.f32 %v949_v23, %v942_v18 }
0x1006   :  { %953 = vrot.lane.b32.xlu1 %v951_v19, %s4396_s24 }
0x1078   :  { %v954_v24 = vpop.permute.xlu1 %953 }
0x1079   :  { %v956_v25 = vadd.f32 %v954_v24, %v946_v21 }
0x107b   :  { %4051 = vtanh.f32 %v956_v25  ;;  %v1049_v36 = vrot.slane %v956_v25, 4 }
0x1085   :  { %v4052_v26 = vpop.eup %4051 }
0x1086   :  { %959 = vrot.lane.b32.xlu0 %v4052_v26, %s4395_s3 }
0x10f8   :  { %v960_v27 = vpop.permute.xlu0 %959 }
0x10f9   :  { %v4804_v28 = vmul.f32 %v960_v27, %v942_v18 }
0x10fb   :  { %v964_v29 = vrot.slane %v4804_v28, 4 }
0x10fd   :  { %965 = vrot.lane.b32.xlu1 %v964_v29, %s4396_s24 }
0x116f   :  { %v966_v30 = vpop.permute.xlu1 %965 }
0x1170   :  { %3575 = vmatmul.mubr.msk.f32.vlgmr.msra.gmra.mrb[6].mxu1 %vm327_vm12, %v966_v30 }
0x1171   :  { %3869 = vmatpush3.bf16.msra.mxu1 %v3866_v50 }
0x1172   :  { %3871 = vmatprep.subr.bf16.mxu1 %v3870_v54 }
0x1175   :  { %3873 = vmatpush3.bf16.msra.mxu1 %v3870_v54 }
0x1176   :  { %3880 = vmatprep.subr.bf16.mxu1 %v4392_v0 }
0x1243   :  { %v1035_v32 = vpop.f32.mrb[6].mxu1 }
0x1244   :  { %v1039_v33 = vadd.f32 %v1035_v32, %v4811_v31  ;;  %v3576_v7 = vpop.f32.mrb[7].mxu1 }
0x1246   :  { %v3291_v34 = vmul.f32 -1.442695, %v1039_v33 }
0x1248   :  { %4053 = vpow2.f32 %v3291_v34 }
0x1249   :  { %4055 = vtanh.f32 %v1039_v33 }
0x1252   :  { %v4054_v35 = vpop.eup %4053 }
0x1253   :  { %v1044_v8 = vadd.f32 1.0, %v4054_v35  ;;  %v4056_v11 = vpop.eup %4055 }
0x1255   :  { %4057 = vrcp.f32 %v1044_v8 }
0x125f   :  { %v4058_v38 = vpop.eup %4057 }
0x1260   :  { %v1047_v39 = vsel %vm4669_vm11, %v4056_v11, %v4058_v38 }
0x1261   :  { %1053 = vrot.lane.b32.xlu0 %v1047_v39, %s4395_s3  ;;  %v1051_v41 = vmul.f32 %v1049_v36, %v1047_v39  ;;  %v1177_v36 = vsel %vm211_vm7, %v4788_v4, %v4804_v28 }
0x12d3   :  { %v1054_v40 = vpop.permute.xlu0 %1053 }
0x12d4   :  { %v1056_v44 = vmul.f32 %v1054_v40, %v1047_v39 }
0x12d6   :  { %1058 = vrot.lane.b32.xlu1 %v1056_v44, %s4396_s24 }
0x1348   :  { %v1059_v43 = vpop.permute.xlu1 %1058 }
0x1349   :  { %v4818_v45 = vadd.f32 %v1059_v43, %v1051_v41 }
0x134b   :  { %4059 = vtanh.f32 %v4818_v45  ;;  %v1156_v34 = vrot.slane %v4818_v45, 4 }
0x1355   :  { %v4060_v51 = vpop.eup %4059 }
0x1356   :  { %1064 = vrot.lane.b32.xlu0 %v4060_v51, %s4395_s3 }
0x135a   :  { %1194 = vrot.lane.b32.xlu0 %v1175_v52, %s4396_s24 }
0x13c8   :  { %v1065_v56 = vpop.permute.xlu0 %1064 }
0x13c9   :  { %v4839_v57 = vmul.f32 %v1065_v56, %v1047_v39 }
0x13cb   :  { %1069 = vrot.lane.b32.xlu1 %v4839_v57, %s4396_s24 }
0x13cc   :  { %v1195_v10 = vpop.permute.xlu0 %1194 }
0x13cd   :  { %3596 = vmatprep.mubr.msk.f32.mxu1 %vm327_vm12, %v1195_v10 }
0x13cf   :  { %1196 = vrot.lane.b32.xlu1 %v1176_v59, %s4396_s24 }
0x143d   :  { %v1070_v42 = vpop.permute.xlu1 %1069 }
0x143e   :  { %3586 = vmatmul.mubr.msk.f32.vlgmr.msra.gmra.mrb[10].mxu0 %vm327_vm12, %v1070_v42 }
0x143f   :  { %3876 = vmatpush3.bf16.msra.mxu0 %v4854_v37  ;;  %3610 = vmatprep.mubr.msk.f32.mxu0 %vm4393_vm0, %v4394_v1 }
0x1440   :  { %3877 = vmatprep.subr.bf16.mxu0 %v4392_v0 }
0x1441   :  { %v1197_v63 = vpop.permute.xlu1 %1196 }
0x1442   :  { %3597 = vmatmul.mubr.msk.f32.vlgmr.msra.gmra.mrb[8].mxu1 %vm327_vm12, %v1197_v63 }
0x1443   :  { %3879 = vmatpush3.bf16.msra.mxu0 %v4864_v62  ;;  %3882 = vmatpush3.bf16.msra.mxu1 %v4854_v37 }
0x1444   :  { %3883 = vmatprep.subr.bf16.mxu1 %v4392_v0  ;;  %3886 = vmatprep.subr.bf16.mxu0 %v4392_v0 }
0x1446   :  { %3611 = vmatmul.mubr.f32.vlgmr.msra.gmra.mrb[12].mxu0 %v4394_v1 }
0x1447   :  { %3885 = vmatpush3.bf16.msra.mxu1 %v4864_v62  ;;  %3888 = vmatpush3.bf16.msra.mxu0 %v4854_v37 }
0x1448   :  { %3889 = vmatprep.subr.bf16.mxu0 %v4392_v0  ;;  %3632 = vmatprep.mubr.msk.f32.mxu0 %vm4393_vm0, %v4394_v1 }
0x1449   :  { %3892 = vmatprep.subr.bf16.mxu1 %v4392_v0 }
0x144b   :  { %3891 = vmatpush3.bf16.msra.mxu0 %v4864_v62 }
0x144c   :  { %3898 = vmatprep.subr.bf16.mxu0 %v4392_v0 }
0x1511   :  { %v1139_v2 = vpop.f32.mrb[10].mxu0 }
0x1512   :  { %v1144_v3 = vrot.slane %v1139_v2, 4  ;;  %v3587_v6 = vpop.f32.mrb[11].mxu0 }
0x1514   :  { %v1146_v9 = vadd.f32 %v1144_v3, %v4811_v31 }
0x1515   :  { %v4886_v13 = vpop.f32.mrb[8].mxu1 }
0x1516   :  { %v3293_v14 = vmul.f32 -1.442695, %v1146_v9  ;;  %v1276_v15 = vpop.f32.mrb[9].mxu1 }
0x1517   :  { %v4889_v16 = vadd.f32 %v4884_v12, %v1276_v15 }
0x1518   :  { %4061 = vpow2.f32 %v3293_v14 }
0x1519   :  { %v1365_v46 = vpop.f32.mrb[12].mxu0 }
0x151a   :  { %v1369_v5 = vadd.f32 %v1365_v46, %v4889_v16  ;;  %v3612_v17 = vpop.f32.mrb[13].mxu0 }
0x151b   :  { %v1282_v17 = vadd.f32 %v4886_v13, %v4884_v12 }
0x151c   :  { %v3299_v18 = vmul.f32 -1.442695, %v1369_v5 }
0x151e   :  { %4063 = vpow2.f32 %v3299_v18 }
0x151f   :  { %4065 = vtanh.f32 %v1146_v9 }
0x1522   :  { %v4062_v23 = vpop.eup %4061 }
0x1523   :  { %v1151_v19 = vadd.f32 1.0, %v4062_v23 }
0x1525   :  { %4067 = vrcp.f32 %v1151_v19 }
0x1526   :  { %4069 = vtanh.f32 %v1369_v5 }
0x1528   :  { %v4064_v20 = vpop.eup %4063 }
0x1529   :  { %v1374_v21 = vadd.f32 1.0, %v4064_v20  ;;  %v4066_v24 = vpop.eup %4065 }
0x152b   :  { %4071 = vrcp.f32 %v1374_v21 }
0x152f   :  { %v4068_v25 = vpop.eup %4067 }
0x1530   :  { %v1154_v26 = vsel %vm4669_vm11, %v4066_v24, %v4068_v25  ;;  %v4070_v27 = vpop.eup %4069 }
0x1531   :  { %1160 = vrot.lane.b32.xlu0 %v1154_v26, %s4395_s3  ;;  %v1158_v35 = vmul.f32 %v1156_v34, %v1154_v26 }
0x1535   :  { %v4072_v29 = vpop.eup %4071 }
0x1536   :  { %v1377_v30 = vsel %vm4669_vm11, %v4070_v27, %v4072_v29 }
0x1537   :  { %1380 = vrot.lane.b32.xlu1 %v1377_v30, %s4395_s3  ;;  %v1378_v38 = vmul.f32 0.0, %v1377_v30 }
0x15a3   :  { %v1161_v31 = vpop.permute.xlu0 %1160 }
0x15a4   :  { %v1163_v32 = vmul.f32 %v1161_v31, %v1154_v26 }
0x15a6   :  { %1165 = vrot.lane.b32.xlu0 %v1163_v32, %s4396_s24 }
0x15a9   :  { %v1381_v33 = vpop.permute.xlu1 %1380 }
0x15aa   :  { %v1383_v7 = vmul.f32 %v1381_v33, %v1377_v30 }
0x15ac   :  { %1385 = vrot.lane.b32.xlu1 %v1383_v7, %s4396_s24 }
0x1618   :  { %v1166_v8 = vpop.permute.xlu0 %1165 }
0x1619   :  { %v1168_v11 = vadd.f32 %v1166_v8, %v1158_v35 }
0x161b   :  { %4073 = vtanh.f32 %v1168_v11 }
0x161e   :  { %v1386_v39 = vpop.permute.xlu1 %1385 }
0x161f   :  { %v1388_v40 = vadd.f32 %v1386_v39, %v1378_v38 }
0x1621   :  { %4075 = vtanh.f32 %v1388_v40  ;;  %v1483_v2 = vrot.slane %v1388_v40, 4 }
0x1625   :  { %v4074_v44 = vpop.eup %4073 }
0x1626   :  { %1171 = vrot.lane.b32.xlu0 %v4074_v44, %s4395_s3 }
0x162a   :  { %1198 = vrot.lane.b32.xlu0 %v1177_v36, %s4396_s24 }
0x162b   :  { %v4076_v41 = vpop.eup %4075 }
0x162c   :  { %1391 = vrot.lane.b32.xlu1 %v4076_v41, %s4395_s3 }
0x1698   :  { %v1172_v43 = vpop.permute.xlu0 %1171 }
0x1699   :  { %v1174_v45 = vmul.f32 %v1172_v43, %v1154_v26 }
0x169b   :  { %v1178_v47 = vsel %vm211_vm7, %v4839_v57, %v1174_v45 }
0x169c   :  { %v1199_v49 = vpop.permute.xlu0 %1198  ;;  %1200 = vrot.lane.b32.xlu1 %v1178_v47, %s4396_s24 }
0x169d   :  { %3599 = vmatprep.mubr.msk.f32.mxu1 %vm327_vm12, %v1199_v49 }
0x169e   :  { %v1392_v50 = vpop.permute.xlu1 %1391 }
0x169f   :  { %v1394_v51 = vmul.f32 %v1392_v50, %v1377_v30 }
0x16a1   :  { %1396 = vrot.lane.b32.xlu0 %v1394_v51, %s4396_s24 }
0x170e   :  { %v1201_v4 = vpop.permute.xlu1 %1200 }
0x170f   :  { %3600 = vmatmul.mubr.msk.f32.gmra.mrb[10].mxu1 %vm327_vm12, %v1201_v4 }
0x1710   :  { %3621 = vmatprep.mubr.msk.f32.mxu1 %vm4393_vm0, %v4394_v1 }
0x1713   :  { %v1397_v28 = vpop.permute.xlu0 %1396 }
0x1714   :  { %3622 = vmatmul.mubr.msk.f32.vlgmr.msra.gmra.mrb[12].mxu1 %vm327_vm12, %v1397_v28 }
0x1715   :  { %3894 = vmatpush3.bf16.msra.mxu1 %v4854_v37  ;;  %3643 = vmatprep.mubr.msk.f32.mxu1 %vm4393_vm0, %v4394_v1 }
0x1716   :  { %3895 = vmatprep.subr.bf16.mxu1 %v4392_v0 }
0x1719   :  { %3897 = vmatpush3.bf16.msra.mxu1 %v4864_v62 }
0x171a   :  { %3904 = vmatprep.subr.bf16.mxu1 %v4392_v0 }
0x17e2   :  { %v4922_v52 = vpop.f32.mrb[10].mxu1 }
0x17e3   :  { %v4924_v53 = vpop.f32.mrb[11].mxu1 }
0x17e7   :  { %v1466_v48 = vpop.f32.mrb[12].mxu1 }
0x17e8   :  { %v1471_v54 = vrot.slane %v1466_v48, 4  ;;  %v3623_v56 = vpop.f32.mrb[13].mxu1 }
0x17ea   :  { %v1473_v57 = vadd.f32 %v1471_v54, %v4889_v16 }
0x17ec   :  { %v3301_v10 = vmul.f32 -1.442695, %v1473_v57 }
0x17ee   :  { %4077 = vpow2.f32 %v3301_v10 }
0x17ef   :  { %4079 = vtanh.f32 %v1473_v57 }
0x17f8   :  { %v4078_v59 = vpop.eup %4077 }
0x17f9   :  { %v1478_v58 = vadd.f32 1.0, %v4078_v59  ;;  %v4080_v60 = vpop.eup %4079 }
0x17fb   :  { %4081 = vrcp.f32 %v1478_v58  ;;  %v1287_v58 = vadd.f32 %v4884_v12, %v4924_v53 }
0x1805   :  { %v4082_v61 = vpop.eup %4081 }
0x1806   :  { %v1481_v22 = vsel %vm4669_vm11, %v4080_v60, %v4082_v61 }
0x1807   :  { %1487 = vrot.lane.b32.xlu1 %v1481_v22, %s4395_s3  ;;  %v1485_v3 = vmul.f32 %v1483_v2, %v1481_v22 }
0x1879   :  { %v1488_v42 = vpop.permute.xlu1 %1487 }
0x187a   :  { %v1490_v63 = vmul.f32 %v1488_v42, %v1481_v22 }
0x187c   :  { %1492 = vrot.lane.b32.xlu0 %v1490_v63, %s4396_s24 }
0x18ee   :  { %v1493_v6 = vpop.permute.xlu0 %1492 }
0x18ef   :  { %v1495_v9 = vadd.f32 %v1493_v6, %v1485_v3 }
0x18f1   :  { %4083 = vtanh.f32 %v1495_v9  ;;  %v1588_v13 = vrot.slane %v1495_v9, 4 }
0x18fb   :  { %v4084_v14 = vpop.eup %4083 }
0x18fc   :  { %1498 = vrot.lane.b32.xlu1 %v4084_v14, %s4395_s3 }
0x196e   :  { %v1499_v15 = vpop.permute.xlu1 %1498 }
0x196f   :  { %v1501_v16 = vmul.f32 %v1499_v15, %v1481_v22 }
0x1971   :  { %v1503_v46 = vrot.slane %v1501_v16, 4 }
0x1973   :  { %1504 = vrot.lane.b32.xlu0 %v1503_v46, %s4396_s24 }
0x19e5   :  { %v1505_v5 = vpop.permute.xlu0 %1504 }
0x19e6   :  { %3633 = vmatmul.mubr.msk.f32.vlgmr.msra.gmra.mrb[14].mxu0 %vm327_vm12, %v1505_v5 }
0x19e7   :  { %3900 = vmatpush3.bf16.msra.mxu0 %v4854_v37  ;;  %3654 = vmatprep.mubr.msk.f32.mxu0 %vm4393_vm0, %v4394_v1 }
0x19e8   :  { %3901 = vmatprep.subr.bf16.mxu0 %v4392_v0 }
0x19eb   :  { %3903 = vmatpush3.bf16.msra.mxu0 %v4864_v62 }
0x19ec   :  { %3910 = vmatprep.subr.bf16.mxu0 %v4392_v0 }
0x1ab9   :  { %v1574_v18 = vpop.f32.mrb[14].mxu0 }
0x1aba   :  { %v1578_v23 = vadd.f32 %v1574_v18, %v1282_v17  ;;  %v3634_v19 = vpop.f32.mrb[15].mxu0 }
0x1abc   :  { %v3303_v20 = vmul.f32 -1.442695, %v1578_v23 }
0x1abe   :  { %4085 = vpow2.f32 %v3303_v20 }
0x1abf   :  { %4087 = vtanh.f32 %v1578_v23 }
0x1ac8   :  { %v4086_v21 = vpop.eup %4085 }
0x1ac9   :  { %v1583_v24 = vadd.f32 1.0, %v4086_v21  ;;  %v4088_v25 = vpop.eup %4087 }
0x1acb   :  { %4089 = vrcp.f32 %v1583_v24 }
0x1ad5   :  { %v4090_v26 = vpop.eup %4089 }
0x1ad6   :  { %v1586_v27 = vsel %vm4669_vm11, %v4088_v25, %v4090_v26 }
0x1ad7   :  { %1592 = vrot.lane.b32.xlu1 %v1586_v27, %s4395_s3  ;;  %v1590_v31 = vmul.f32 %v1588_v13, %v1586_v27 }
0x1b49   :  { %v1593_v29 = vpop.permute.xlu1 %1592 }
0x1b4a   :  { %v1595_v30 = vmul.f32 %v1593_v29, %v1586_v27 }
0x1b4c   :  { %1597 = vrot.lane.b32.xlu0 %v1595_v30, %s4396_s24 }
0x1bbe   :  { %v1598_v32 = vpop.permute.xlu0 %1597 }
0x1bbf   :  { %v1600_v33 = vadd.f32 %v1598_v32, %v1590_v31 }
0x1bc1   :  { %4091 = vtanh.f32 %v1600_v33  ;;  %v1695_v51 = vrot.slane %v1600_v33, 4 }
0x1bcb   :  { %v4092_v7 = vpop.eup %4091 }
0x1bcc   :  { %1603 = vrot.lane.b32.xlu1 %v4092_v7, %s4395_s3 }
0x1c3e   :  { %v1604_v34 = vpop.permute.xlu1 %1603 }
0x1c3f   :  { %v1606_v35 = vmul.f32 %v1604_v34, %v1586_v27 }
0x1c41   :  { %1608 = vrot.lane.b32.xlu0 %v1606_v35, %s4396_s24 }
0x1cb3   :  { %v1609_v8 = vpop.permute.xlu0 %1608 }
0x1cb4   :  { %3644 = vmatmul.mubr.msk.f32.vlgmr.msra.gmra.mrb[14].mxu1 %vm327_vm12, %v1609_v8 }
0x1cb5   :  { %3906 = vmatpush3.bf16.msra.mxu1 %v4854_v37  ;;  %3665 = vmatprep.mubr.msk.f32.mxu1 %vm4393_vm0, %v4394_v1 }
0x1cb6   :  { %3907 = vmatprep.subr.bf16.mxu1 %v4392_v0 }
0x1cb9   :  { %3909 = vmatpush3.bf16.msra.mxu1 %v4864_v62 }
0x1cba   :  { %3916 = vmatprep.subr.bf16.mxu1 %v4392_v0 }
0x1d87   :  { %v1678_v11 = vpop.f32.mrb[14].mxu1 }
0x1d88   :  { %v1683_v38 = vrot.slane %v1678_v11, 4  ;;  %v3645_v39 = vpop.f32.mrb[15].mxu1 }
0x1d8a   :  { %v1685_v40 = vadd.f32 %v1683_v38, %v1282_v17 }
0x1d8c   :  { %v3305_v44 = vmul.f32 -1.442695, %v1685_v40 }
0x1d8e   :  { %4093 = vpow2.f32 %v3305_v44 }
0x1d8f   :  { %4095 = vtanh.f32 %v1685_v40  ;;  %v1292_v40 = vadd.f32 %v4922_v52, %v4884_v12 }
0x1d98   :  { %v4094_v36 = vpop.eup %4093 }
0x1d99   :  { %v1690_v41 = vadd.f32 1.0, %v4094_v36  ;;  %v4096_v43 = vpop.eup %4095 }
0x1d9b   :  { %4097 = vrcp.f32 %v1690_v41 }
0x1da5   :  { %v4098_v45 = vpop.eup %4097 }
0x1da6   :  { %v1693_v47 = vsel %vm4669_vm11, %v4096_v43, %v4098_v45 }
0x1da7   :  { %1699 = vrot.lane.b32.xlu1 %v1693_v47, %s4395_s3  ;;  %v1697_v4 = vmul.f32 %v1695_v51, %v1693_v47 }
0x1e19   :  { %v1700_v49 = vpop.permute.xlu1 %1699 }
0x1e1a   :  { %v1702_v50 = vmul.f32 %v1700_v49, %v1693_v47 }
0x1e1c   :  { %1704 = vrot.lane.b32.xlu0 %v1702_v50, %s4396_s24 }
0x1e8e   :  { %v1705_v28 = vpop.permute.xlu0 %1704 }
0x1e8f   :  { %v1707_v48 = vadd.f32 %v1705_v28, %v1697_v4 }
0x1e91   :  { %4099 = vtanh.f32 %v1707_v48  ;;  %v1800_v53 = vrot.slane %v1707_v48, 4 }
0x1e9b   :  { %v4100_v54 = vpop.eup %4099 }
0x1e9c   :  { %1710 = vrot.lane.b32.xlu1 %v4100_v54, %s4395_s3 }
0x1f0e   :  { %v1711_v56 = vpop.permute.xlu1 %1710 }
0x1f0f   :  { %v1713_v57 = vmul.f32 %v1711_v56, %v1693_v47 }
0x1f11   :  { %v1715_v10 = vrot.slane %v1713_v57, 4 }
0x1f13   :  { %1716 = vrot.lane.b32.xlu0 %v1715_v10, %s4396_s24 }
0x1f85   :  { %v1717_v59 = vpop.permute.xlu0 %1716 }
0x1f86   :  { %3655 = vmatmul.mubr.msk.f32.vlgmr.msra.gmra.mrb[16].mxu0 %vm327_vm12, %v1717_v59 }
0x1f87   :  { %3912 = vmatpush3.bf16.msra.mxu0 %v4854_v37  ;;  %3676 = vmatprep.mubr.msk.f32.mxu0 %vm4393_vm0, %v4394_v1 }
0x1f88   :  { %3913 = vmatprep.subr.bf16.mxu0 %v4392_v0 }
0x1f8b   :  { %3915 = vmatpush3.bf16.msra.mxu0 %v4864_v62 }
0x1f8c   :  { %3922 = vmatprep.subr.bf16.mxu0 %v4392_v0 }
0x2059   :  { %v1786_v60 = vpop.f32.mrb[16].mxu0 }
0x205a   :  { %v1790_v61 = vadd.f32 %v1786_v60, %v1287_v58  ;;  %v3656_v22 = vpop.f32.mrb[17].mxu0 }
0x205c   :  { %v3307_v42 = vmul.f32 -1.442695, %v1790_v61 }
0x205e   :  { %4101 = vpow2.f32 %v3307_v42 }
0x205f   :  { %4103 = vtanh.f32 %v1790_v61 }
0x2068   :  { %v4102_v63 = vpop.eup %4101 }
0x2069   :  { %v1795_v2 = vadd.f32 1.0, %v4102_v63  ;;  %v4104_v3 = vpop.eup %4103 }
0x206b   :  { %4105 = vrcp.f32 %v1795_v2 }
0x2075   :  { %v4106_v6 = vpop.eup %4105 }
0x2076   :  { %v1798_v9 = vsel %vm4669_vm11, %v4104_v3, %v4106_v6 }
0x2077   :  { %1804 = vrot.lane.b32.xlu1 %v1798_v9, %s4395_s3  ;;  %v1802_v16 = vmul.f32 %v1800_v53, %v1798_v9 }
0x20e9   :  { %v1805_v14 = vpop.permute.xlu1 %1804 }
0x20ea   :  { %v1807_v15 = vmul.f32 %v1805_v14, %v1798_v9 }
0x20ec   :  { %1809 = vrot.lane.b32.xlu0 %v1807_v15, %s4396_s24 }
0x215e   :  { %v1810_v46 = vpop.permute.xlu0 %1809 }
0x215f   :  { %v1812_v5 = vadd.f32 %v1810_v46, %v1802_v16 }
0x2161   :  { %4107 = vtanh.f32 %v1812_v5  ;;  %v1907_v32 = vrot.slane %v1812_v5, 4 }
0x216b   :  { %v4108_v17 = vpop.eup %4107 }
0x216c   :  { %1815 = vrot.lane.b32.xlu1 %v4108_v17, %s4395_s3  ;;  %v2138_v17 = vld [vmem:[#allocation7] sm:$0xff] }
0x21de   :  { %v1816_v18 = vpop.permute.xlu1 %1815 }
0x21df   :  { %v1818_v23 = vmul.f32 %v1816_v18, %v1798_v9  ;;  %v2139_v18 = vld [vmem:[#allocation7 + $0x8] sm:$0xff] }
0x21e1   :  { %1820 = vrot.lane.b32.xlu0 %v1818_v23, %s4396_s24  ;;  %v2225_v23 = vld [vmem:[#allocation8] sm:$0xff] }
0x2253   :  { %v1821_v19 = vpop.permute.xlu0 %1820 }
0x2254   :  { %3666 = vmatmul.mubr.msk.f32.vlgmr.msra.gmra.mrb[16].mxu1 %vm327_vm12, %v1821_v19  ;;  %v3923_v19 = vpack.c.bf16 %v2139_v18, %v2138_v17 }
0x2255   :  { %3918 = vmatpush3.bf16.msra.mxu1 %v4854_v37  ;;  %3687 = vmatprep.mubr.msk.f32.mxu1 %vm4393_vm0, %v4394_v1 }
0x2256   :  { %3919 = vmatprep.subr.bf16.mxu1 %v4392_v0 }
0x2259   :  { %3921 = vmatpush3.bf16.msra.mxu1 %v4864_v62 }
0x225a   :  { %3928 = vmatprep.subr.bf16.mxu1 %v4392_v0 }
0x2327   :  { %v1890_v20 = vpop.f32.mrb[16].mxu1 }
0x2328   :  { %v1895_v21 = vrot.slane %v1890_v20, 4  ;;  %v3667_v24 = vpop.f32.mrb[17].mxu1  ;;  %v2226_v20 = vld [vmem:[#allocation8 + $0x8] sm:$0xff] }
0x2329   :  { %v2141_v24 = vld [vmem:[#allocation7 + $0x18] sm:$0xff] }
0x232a   :  { %v1897_v25 = vadd.f32 %v1895_v21, %v1287_v58  ;;  %v2140_v21 = vld [vmem:[#allocation7 + $0x10] sm:$0xff] }
0x232c   :  { %v3309_v26 = vmul.f32 -1.442695, %v1897_v25 }
0x232e   :  { %4109 = vpow2.f32 %v3309_v26  ;;  %v2227_v26 = vld [vmem:[#allocation8 + $0x10] sm:$0xff] }
0x232f   :  { %4111 = vtanh.f32 %v1897_v25  ;;  %v5007_v25 = vpack.c.bf16 %v2226_v20, %v2225_v23 }
0x2338   :  { %v4110_v27 = vpop.eup %4109 }
0x2339   :  { %v1902_v29 = vadd.f32 1.0, %v4110_v27  ;;  %v4112_v37 = vpop.eup %4111  ;;  %v2228_v27 = vld [vmem:[#allocation8 + $0x18] sm:$0xff] }
0x233b   :  { %4113 = vrcp.f32 %v1902_v29  ;;  %v3926_v29 = vpack.c.bf16 %v2141_v24, %v2140_v21 }
0x2345   :  { %v4114_v30 = vpop.eup %4113 }
0x2346   :  { %v1905_v13 = vsel %vm4669_vm11, %v4112_v37, %v4114_v30  ;;  %v5011_v37 = vpack.c.bf16 %v2228_v27, %v2227_v26 }
0x2347   :  { %1911 = vrot.lane.b32.xlu1 %v1905_v13, %s4395_s3  ;;  %v1909_v33 = vmul.f32 %v1907_v32, %v1905_v13 }
0x23b9   :  { %v1912_v62 = vpop.permute.xlu1 %1911 }
0x23ba   :  { %v1914_v31 = vmul.f32 %v1912_v62, %v1905_v13 }
0x23bc   :  { %1916 = vrot.lane.b32.xlu0 %v1914_v31, %s4396_s24 }
0x242e   :  { %v1917_v7 = vpop.permute.xlu0 %1916 }
0x242f   :  { %v1919_v34 = vadd.f32 %v1917_v7, %v1909_v33 }
0x2431   :  { %4115 = vtanh.f32 %v1919_v34  ;;  %v2012_v12 = vrot.slane %v1919_v34, 4  ;;  %v3314_v34 = vld [vmem:[#allocation10] ss:$0 sm:$0xff] }
0x243b   :  { %v4116_v35 = vpop.eup %4115 }
0x243c   :  { %1922 = vrot.lane.b32.xlu1 %v4116_v35, %s4395_s3 }
0x24ae   :  { %v1923_v8 = vpop.permute.xlu1 %1922 }
0x24af   :  { %v1925_v11 = vmul.f32 %v1923_v8, %v1905_v13 }
0x24b1   :  { %v1927_v38 = vrot.slane %v1925_v11, 4 }
0x24b3   :  { %1928 = vrot.lane.b32.xlu0 %v1927_v38, %s4396_s24 }
0x2525   :  { %v1929_v39 = vpop.permute.xlu0 %1928 }
0x2526   :  { %3677 = vmatmul.mubr.msk.f32.vlgmr.msra.gmra.mrb[18].mxu0 %vm327_vm12, %v1929_v39 }
0x2527   :  { %3698 = vmatprep.mubr.msk.f32.mxu0 %vm4393_vm0, %v4394_v1  ;;  %3924 = vmatpush3.bf16.msra.mxu0 %v3923_v19 }
0x2528   :  { %3925 = vmatprep.subr.bf16.mxu0 %v4392_v0 }
0x252b   :  { %3927 = vmatpush3.bf16.msra.mxu0 %v3926_v29 }
0x252c   :  { %3934 = vmatprep.subr.bf16.mxu0 %v4392_v0 }
0x25f9   :  { %v1998_v44 = vpop.f32.mrb[18].mxu0 }
0x25fa   :  { %v2002_v36 = vadd.f32 %v1998_v44, %v1292_v40  ;;  %v3678_v41 = vpop.f32.mrb[19].mxu0 }
0x25fc   :  { %v3311_v43 = vmul.f32 -1.442695, %v2002_v36 }
0x25fe   :  { %4117 = vpow2.f32 %v3311_v43 }
0x25ff   :  { %4119 = vtanh.f32 %v2002_v36 }
0x2608   :  { %v4118_v45 = vpop.eup %4117 }
0x2609   :  { %v2007_v47 = vadd.f32 1.0, %v4118_v45  ;;  %v4120_v49 = vpop.eup %4119 }
0x260b   :  { %4121 = vrcp.f32 %v2007_v47 }
0x2615   :  { %v4122_v50 = vpop.eup %4121 }
0x2616   :  { %v2010_v51 = vsel %vm4669_vm11, %v4120_v49, %v4122_v50 }
0x2617   :  { %2016 = vrot.lane.b32.xlu1 %v2010_v51, %s4395_s3  ;;  %v2014_v52 = vmul.f32 %v2012_v12, %v2010_v51 }
0x2689   :  { %v2017_v4 = vpop.permute.xlu1 %2016 }
0x268a   :  { %v2019_v28 = vmul.f32 %v2017_v4, %v2010_v51 }
0x268c   :  { %2021 = vrot.lane.b32.xlu0 %v2019_v28, %s4396_s24 }
0x26fe   :  { %v2022_v48 = vpop.permute.xlu0 %2021 }
0x26ff   :  { %v2024_v54 = vadd.f32 %v2022_v48, %v2014_v52 }
0x2701   :  { %4123 = vtanh.f32 %v2024_v54  ;;  %v2119_v53 = vrot.slane %v2024_v54, 4 }
0x270b   :  { %v4124_v56 = vpop.eup %4123 }
0x270c   :  { %2027 = vrot.lane.b32.xlu1 %v4124_v56, %s4395_s3 }
0x277e   :  { %v2028_v57 = vpop.permute.xlu1 %2027 }
0x277f   :  { %v2030_v10 = vmul.f32 %v2028_v57, %v2010_v51 }
0x2781   :  { %2032 = vrot.lane.b32.xlu0 %v2030_v10, %s4396_s24 }
0x27f3   :  { %v2033_v59 = vpop.permute.xlu0 %2032 }
0x27f4   :  { %3688 = vmatmul.mubr.msk.f32.vlgmr.msra.gmra.mrb[18].mxu1 %vm327_vm12, %v2033_v59 }
0x27f5   :  { %3709 = vmatprep.mubr.msk.f32.mxu1 %vm4393_vm0, %v4394_v1  ;;  %3930 = vmatpush3.bf16.msra.mxu1 %v5007_v25 }
0x27f6   :  { %3931 = vmatprep.subr.bf16.mxu1 %v4392_v0 }
0x27f9   :  { %3933 = vmatpush3.bf16.msra.mxu1 %v5011_v37 }
0x27fa   :  { %3940 = vmatprep.subr.bf16.mxu1 %v4392_v0 }
0x27fc   :  { %3710 = vmatmul.mubr.f32.vlgmr.msra.gmra.mrb[20].mxu1 %v4394_v1 }
0x27fd   :  { %3942 = vmatpush3.bf16.msra.mxu1 %v5007_v25  ;;  %3731 = vmatprep.mubr.msk.f32.mxu1 %vm4393_vm0, %v4394_v1 }
0x27fe   :  { %3943 = vmatprep.subr.bf16.mxu1 %v4392_v0 }
0x2801   :  { %3945 = vmatpush3.bf16.msra.mxu1 %v5011_v37 }
0x2802   :  { %3952 = vmatprep.subr.bf16.mxu1 %v4392_v0 }
0x28c7   :  { %v2102_v58 = vpop.f32.mrb[18].mxu1 }
0x28c8   :  { %v2107_v60 = vrot.slane %v2102_v58, 4  ;;  %v3689_v61 = vpop.f32.mrb[19].mxu1 }
0x28ca   :  { %v2109_v22 = vadd.f32 %v2107_v60, %v1292_v40 }
0x28cc   :  { %v3313_v42 = vmul.f32 -1.442695, %v2109_v22 }
0x28ce   :  { %4125 = vpow2.f32 %v3313_v42 }
0x28cf   :  { %4127 = vtanh.f32 %v2109_v22  ;;  %v2295_v33 = vpop.f32.mrb[20].mxu1 }
0x28d0   :  { %v3711_v7 = vpop.f32.mrb[21].mxu1 }
0x28d8   :  { %v4126_v63 = vpop.eup %4125 }
0x28d9   :  { %v2114_v2 = vadd.f32 1.0, %v4126_v63  ;;  %v4128_v3 = vpop.eup %4127 }
0x28db   :  { %4129 = vrcp.f32 %v2114_v2 }
0x28e5   :  { %v4130_v6 = vpop.eup %4129 }
0x28e6   :  { %v2117_v9 = vsel %vm4669_vm11, %v4128_v3, %v4130_v6 }
0x28e7   :  { %2123 = vrot.lane.b32.xlu1 %v2117_v9, %s4395_s3  ;;  %v2121_v16 = vmul.f32 %v2119_v53, %v2117_v9 }
0x2959   :  { %v2124_v14 = vpop.permute.xlu1 %2123 }
0x295a   :  { %v2126_v15 = vmul.f32 %v2124_v14, %v2117_v9 }
0x295c   :  { %2128 = vrot.lane.b32.xlu0 %v2126_v15, %s4396_s24 }
0x29ce   :  { %v2129_v46 = vpop.permute.xlu0 %2128 }
0x29cf   :  { %v2131_v5 = vadd.f32 %v2129_v46, %v2121_v16 }
0x29d1   :  { %4131 = vtanh.f32 %v2131_v5 }
0x29db   :  { %v4132_v30 = vpop.eup %4131 }
0x29dc   :  { %2134 = vrot.lane.b32.xlu1 %v4132_v30, %s4395_s3 }
0x2a4e   :  { %v2135_v13 = vpop.permute.xlu1 %2134 }
0x2a4f   :  { %v2137_v62 = vmul.f32 %v2135_v13, %v2117_v9 }
0x2a51   :  { %v2150_v31 = vrot.slane %v2137_v62, 4 }
0x2a53   :  { %2151 = vrot.lane.b32.xlu0 %v2150_v31, %s4396_s24 }
0x2ac5   :  { %v2152_v32 = vpop.permute.xlu0 %2151 }
0x2ac6   :  { %3699 = vmatmul.mubr.msk.f32.vlgmr.msra.gmra.mrb[20].mxu0 %vm327_vm12, %v2152_v32 }
0x2ac7   :  { %3936 = vmatpush3.bf16.msra.mxu0 %v5007_v25  ;;  %3720 = vmatprep.mubr.msk.f32.mxu0 %vm4393_vm0, %v4394_v1 }
0x2ac8   :  { %3937 = vmatprep.subr.bf16.mxu0 %v4392_v0 }
0x2acb   :  { %3939 = vmatpush3.bf16.msra.mxu0 %v5011_v37 }
0x2acc   :  { %3946 = vmatprep.subr.bf16.mxu0 %v4392_v0 }
0x2b99   :  { %v2221_v35 = vpop.f32.mrb[20].mxu0 }
0x2b9a   :  { %v5033_v8 = vadd.f32 %v3314_v34, %v2221_v35  ;;  %v3700_v11 = vpop.f32.mrb[21].mxu0 }
0x2b9c   :  { %v2299_v38 = vadd.f32 %v2295_v33, %v5033_v8 }
0x2b9e   :  { %v3316_v39 = vmul.f32 -1.442695, %v2299_v38 }
0x2ba0   :  { %4133 = vpow2.f32 %v3316_v39 }
0x2ba1   :  { %4135 = vtanh.f32 %v2299_v38 }
0x2baa   :  { %v4134_v40 = vpop.eup %4133 }
0x2bab   :  { %v2304_v44 = vadd.f32 1.0, %v4134_v40  ;;  %v4136_v36 = vpop.eup %4135 }
0x2bad   :  { %4137 = vrcp.f32 %v2304_v44 }
0x2bb7   :  { %v4138_v41 = vpop.eup %4137 }
0x2bb8   :  { %v2307_v43 = vsel %vm4669_vm11, %v4136_v36, %v4138_v41 }
0x2bb9   :  { %2310 = vrot.lane.b32.xlu1 %v2307_v43, %s4395_s3  ;;  %v2308_v49 = vmul.f32 0.0, %v2307_v43 }
0x2c2b   :  { %v2311_v45 = vpop.permute.xlu1 %2310 }
0x2c2c   :  { %v2313_v47 = vmul.f32 %v2311_v45, %v2307_v43 }
0x2c2e   :  { %2315 = vrot.lane.b32.xlu0 %v2313_v47, %s4396_s24 }
0x2ca0   :  { %v2316_v50 = vpop.permute.xlu0 %2315 }
0x2ca1   :  { %v2318_v51 = vadd.f32 %v2316_v50, %v2308_v49 }
0x2ca3   :  { %4139 = vtanh.f32 %v2318_v51 }
0x2cad   :  { %v4140_v4 = vpop.eup %4139 }
0x2cae   :  { %2321 = vrot.lane.b32.xlu1 %v4140_v4, %s4395_s3 }
0x2d20   :  { %v2322_v28 = vpop.permute.xlu1 %2321 }
0x2d21   :  { %v5041_v12 = vmul.f32 %v2322_v28, %v2307_v43 }
0x2d23   :  { %2326 = vrot.lane.b32.xlu0 %v5041_v12, %s4396_s24 }
0x2d95   :  { %v2327_v52 = vpop.permute.xlu0 %2326 }
0x2d96   :  { %3721 = vmatmul.mubr.msk.f32.vlgmr.msra.gmra.mrb[22].mxu0 %vm327_vm12, %v2327_v52 }
0x2d97   :  { %3948 = vmatpush3.bf16.msra.mxu0 %v5007_v25  ;;  %3742 = vmatprep.mubr.msk.f32.mxu0 %vm4393_vm0, %v4394_v1 }
0x2d98   :  { %3949 = vmatprep.subr.bf16.mxu0 %v4392_v0 }
0x2d9b   :  { %3951 = vmatpush3.bf16.msra.mxu0 %v5011_v37 }
0x2d9c   :  { %3958 = vmatprep.subr.bf16.mxu0 %v4392_v0 }
0x2e69   :  { %v2396_v48 = vpop.f32.mrb[22].mxu0 }
0x2e6a   :  { %v2400_v54 = vadd.f32 %v2396_v48, %v5033_v8  ;;  %v3722_v56 = vpop.f32.mrb[23].mxu0 }
0x2e6c   :  { %v3318_v57 = vmul.f32 -1.442695, %v2400_v54 }
0x2e6e   :  { %4141 = vpow2.f32 %v3318_v57 }
0x2e6f   :  { %4143 = vtanh.f32 %v2400_v54 }
0x2e78   :  { %v4142_v10 = vpop.eup %4141 }
0x2e79   :  { %v2405_v59 = vadd.f32 1.0, %v4142_v10  ;;  %v4144_v58 = vpop.eup %4143 }
0x2e7b   :  { %4145 = vrcp.f32 %v2405_v59 }
0x2e85   :  { %v4146_v60 = vpop.eup %4145 }
0x2e86   :  { %v2408_v61 = vsel %vm4669_vm11, %v4144_v58, %v4146_v60 }
0x2e87   :  { %2411 = vrot.lane.b32.xlu1 %v2408_v61, %s4395_s3  ;;  %v2409_v63 = vmul.f32 %v2408_v61, %v2318_v51 }
0x2ef9   :  { %v2412_v22 = vpop.permute.xlu1 %2411 }
0x2efa   :  { %v2414_v42 = vmul.f32 %v2412_v22, %v2408_v61 }
0x2efc   :  { %2416 = vrot.lane.b32.xlu0 %v2414_v42, %s4396_s24 }
0x2f6e   :  { %v2417_v2 = vpop.permute.xlu0 %2416 }
0x2f6f   :  { %v2419_v3 = vadd.f32 %v2417_v2, %v2409_v63 }
0x2f71   :  { %4147 = vtanh.f32 %v2419_v3 }
0x2f7b   :  { %v4148_v6 = vpop.eup %4147 }
0x2f7c   :  { %2422 = vrot.lane.b32.xlu1 %v4148_v6, %s4395_s3 }
0x2fee   :  { %v2423_v9 = vpop.permute.xlu1 %2422 }
0x2fef   :  { %v5058_v14 = vmul.f32 %v2423_v9, %v2408_v61 }
0x2ff1   :  { %2427 = vrot.lane.b32.xlu0 %v5058_v14, %s4396_s24 }
0x3063   :  { %v2428_v15 = vpop.permute.xlu0 %2427 }
0x3064   :  { %3732 = vmatmul.mubr.msk.f32.vlgmr.msra.gmra.mrb[22].mxu1 %vm327_vm12, %v2428_v15 }
0x3065   :  { %3954 = vmatpush3.bf16.msra.mxu1 %v5007_v25  ;;  %3753 = vmatprep.mubr.msk.f32.mxu1 %vm4393_vm0, %v4394_v1 }
0x3066   :  { %3955 = vmatprep.subr.bf16.mxu1 %v4392_v0 }
0x3069   :  { %3957 = vmatpush3.bf16.msra.mxu1 %v5011_v37 }
0x306a   :  { %3964 = vmatprep.subr.bf16.mxu1 %v4392_v0 }
0x3137   :  { %v2497_v53 = vpop.f32.mrb[22].mxu1 }
0x3138   :  { %v2501_v16 = vadd.f32 %v2497_v53, %v5033_v8  ;;  %v3733_v46 = vpop.f32.mrb[23].mxu1 }
0x313a   :  { %v3320_v5 = vmul.f32 -1.442695, %v2501_v16 }
0x313c   :  { %4149 = vpow2.f32 %v3320_v5 }
0x313d   :  { %4151 = vtanh.f32 %v2501_v16 }
0x3146   :  { %v4150_v17 = vpop.eup %4149 }
0x3147   :  { %v2506_v18 = vadd.f32 1.0, %v4150_v17  ;;  %v4152_v23 = vpop.eup %4151 }
0x3149   :  { %4153 = vrcp.f32 %v2506_v18 }
0x3153   :  { %v4154_v19 = vpop.eup %4153 }
0x3154   :  { %v2509_v20 = vsel %vm4669_vm11, %v4152_v23, %v4154_v19 }
0x3155   :  { %2512 = vrot.lane.b32.xlu1 %v2509_v20, %s4395_s3  ;;  %v2510_v26 = vmul.f32 %v2509_v20, %v2419_v3 }
0x31c7   :  { %v2513_v21 = vpop.permute.xlu1 %2512 }
0x31c8   :  { %v2515_v24 = vmul.f32 %v2513_v21, %v2509_v20 }
0x31ca   :  { %2517 = vrot.lane.b32.xlu0 %v2515_v24, %s4396_s24 }
0x323c   :  { %v2518_v27 = vpop.permute.xlu0 %2517 }
0x323d   :  { %v2520_v29 = vadd.f32 %v2518_v27, %v2510_v26 }
0x323f   :  { %4155 = vtanh.f32 %v2520_v29 }
0x3249   :  { %v4156_v30 = vpop.eup %4155 }
0x324a   :  { %2523 = vrot.lane.b32.xlu1 %v4156_v30, %s4395_s3 }
0x32bc   :  { %v2524_v13 = vpop.permute.xlu1 %2523 }
0x32bd   :  { %v5075_v62 = vmul.f32 %v2524_v13, %v2509_v20 }
0x32bf   :  { %2528 = vrot.lane.b32.xlu0 %v5075_v62, %s4396_s24 }
0x3331   :  { %v2529_v31 = vpop.permute.xlu0 %2528 }
0x3332   :  { %3743 = vmatmul.mubr.msk.f32.vlgmr.msra.gmra.mrb[24].mxu0 %vm327_vm12, %v2529_v31 }
0x3333   :  { %3960 = vmatpush3.bf16.msra.mxu0 %v5007_v25  ;;  %3764 = vmatprep.mubr.msk.f32.mxu0 %vm4393_vm0, %v4394_v1 }
0x3334   :  { %3961 = vmatprep.subr.bf16.mxu0 %v4392_v0 }
0x3337   :  { %3963 = vmatpush3.bf16.msra.mxu0 %v5011_v37 }
0x3338   :  { %3970 = vmatprep.subr.bf16.mxu0 %v4392_v0 }
0x3405   :  { %v2598_v32 = vpop.f32.mrb[24].mxu0 }
0x3406   :  { %v2602_v33 = vadd.f32 %v2598_v32, %v5033_v8  ;;  %v3744_v7 = vpop.f32.mrb[25].mxu0 }
0x3408   :  { %v3322_v34 = vmul.f32 -1.442695, %v2602_v33 }
0x340a   :  { %4157 = vpow2.f32 %v3322_v34 }
0x340b   :  { %4159 = vtanh.f32 %v2602_v33 }
0x3414   :  { %v4158_v35 = vpop.eup %4157 }
0x3415   :  { %v2607_v11 = vadd.f32 1.0, %v4158_v35  ;;  %v4160_v38 = vpop.eup %4159 }
0x3417   :  { %4161 = vrcp.f32 %v2607_v11 }
0x3421   :  { %v4162_v39 = vpop.eup %4161 }
0x3422   :  { %v2610_v40 = vsel %vm4669_vm11, %v4160_v38, %v4162_v39 }
0x3423   :  { %2613 = vrot.lane.b32.xlu1 %v2610_v40, %s4395_s3  ;;  %v2611_v41 = vmul.f32 %v2610_v40, %v2520_v29 }
0x3495   :  { %v2614_v44 = vpop.permute.xlu1 %2613 }
0x3496   :  { %v2616_v36 = vmul.f32 %v2614_v44, %v2610_v40 }
0x3498   :  { %2618 = vrot.lane.b32.xlu0 %v2616_v36, %s4396_s24 }
0x350a   :  { %v2619_v43 = vpop.permute.xlu0 %2618 }
0x350b   :  { %v2621_v45 = vadd.f32 %v2619_v43, %v2611_v41 }
0x350d   :  { %4163 = vtanh.f32 %v2621_v45 }
0x3517   :  { %v4164_v47 = vpop.eup %4163 }
0x3518   :  { %2624 = vrot.lane.b32.xlu1 %v4164_v47, %s4395_s3 }
0x358a   :  { %v2625_v49 = vpop.permute.xlu1 %2624 }
0x358b   :  { %v5092_v50 = vmul.f32 %v2625_v49, %v2610_v40 }
0x358d   :  { %2629 = vrot.lane.b32.xlu0 %v5092_v50, %s4396_s24 }
0x35ff   :  { %v2630_v51 = vpop.permute.xlu0 %2629 }
0x3600   :  { %3754 = vmatmul.mubr.msk.f32.vlgmr.msra.gmra.mrb[24].mxu1 %vm327_vm12, %v2630_v51 }
0x3601   :  { %3966 = vmatpush3.bf16.msra.mxu1 %v5007_v25  ;;  %3775 = vmatprep.mubr.msk.f32.mxu1 %vm4393_vm0, %v4394_v1 }
0x3602   :  { %3967 = vmatprep.subr.bf16.mxu1 %v4392_v0 }
0x3605   :  { %3969 = vmatpush3.bf16.msra.mxu1 %v5011_v37 }
0x36d3   :  { %v2699_v4 = vpop.f32.mrb[24].mxu1 }
0x36d4   :  { %v2703_v28 = vadd.f32 %v2699_v4, %v5033_v8  ;;  %v3755_v52 = vpop.f32.mrb[25].mxu1 }
0x36d6   :  { %v3324_v48 = vmul.f32 -1.442695, %v2703_v28 }
0x36d8   :  { %4165 = vpow2.f32 %v3324_v48 }
0x36d9   :  { %4167 = vtanh.f32 %v2703_v28 }
0x36e2   :  { %v4166_v54 = vpop.eup %4165 }
0x36e3   :  { %v2708_v56 = vadd.f32 1.0, %v4166_v54  ;;  %v4168_v57 = vpop.eup %4167 }
0x36e5   :  { %4169 = vrcp.f32 %v2708_v56 }
0x36ef   :  { %v4170_v10 = vpop.eup %4169 }
0x36f0   :  { %v2711_v59 = vsel %vm4669_vm11, %v4168_v57, %v4170_v10 }
0x36f1   :  { %2714 = vrot.lane.b32.xlu1 %v2711_v59, %s4395_s3  ;;  %v2712_v61 = vmul.f32 %v2711_v59, %v2621_v45 }
0x3763   :  { %v2715_v58 = vpop.permute.xlu1 %2714 }
0x3764   :  { %v2717_v60 = vmul.f32 %v2715_v58, %v2711_v59 }
0x3766   :  { %2719 = vrot.lane.b32.xlu0 %v2717_v60, %s4396_s24  ;;  %v3045_v60 = vld [vmem:[%s5229_s10] sm:$0xff] }
0x37d8   :  { %v2720_v22 = vpop.permute.xlu0 %2719 }
0x37d9   :  { %v2722_v42 = vadd.f32 %v2720_v22, %v2712_v61  ;;  %v3976_v61 = vpack.c.bf16 %v3046_v55, %v3045_v60  ;;  %v3048_v22 = vld [vmem:[%s5229_s10 + $0x18] sm:$0xff] }
0x37db   :  { %4171 = vtanh.f32 %v2722_v42  ;;  %3977 = vmatprep.subr.bf16.mxu1 %v3976_v61 }
0x37e5   :  { %v4172_v63 = vpop.eup %4171 }
0x37e6   :  { %2725 = vrot.lane.b32.xlu1 %v4172_v63, %s4395_s3 }
0x3858   :  { %v2726_v2 = vpop.permute.xlu1 %2725 }
0x3859   :  { %v5108_v3 = vmul.f32 %v2726_v2, %v2711_v59 }
0x385b   :  { %2730 = vrot.lane.b32.xlu0 %v5108_v3, %s4396_s24 }
0x38cd   :  { %v2731_v6 = vpop.permute.xlu0 %2730 }
0x38ce   :  { %3765 = vmatmul.mubr.msk.f32.vlgmr.msra.gmra.mrb[26].mxu0 %vm327_vm12, %v2731_v6 }
0x38cf   :  { %3972 = vmatpush3.bf16.msra.mxu0 %v5007_v25  ;;  %3786 = vmatprep.mubr.msk.f32.mxu0 %vm4393_vm0, %v4394_v1 }
0x38d0   :  { %3973 = vmatprep.subr.bf16.mxu0 %v4392_v0 }
0x38d3   :  { %3975 = vmatpush3.bf16.msra.mxu0 %v5011_v37 }
0x38d4   :  { %3984 = vmatprep.subr.bf16.mxu0 %v4392_v0 }
0x39a1   :  { %v2800_v9 = vpop.f32.mrb[26].mxu0 }
0x39a2   :  { %v2804_v15 = vadd.f32 %v2800_v9, %v5033_v8  ;;  %v3766_v53 = vpop.f32.mrb[27].mxu0  ;;  %v3165_v9 = vld [vmem:[%s5231_s12] sm:$0xff] }
0x39a3   :  { %v3167_v53 = vld [vmem:[%s5231_s12 + $0x10] sm:$0xff] }
0x39a4   :  { %v3326_v16 = vmul.f32 -1.442695, %v2804_v15 }
0x39a6   :  { %4173 = vpow2.f32 %v3326_v16 }
0x39a7   :  { %4175 = vtanh.f32 %v2804_v15  ;;  %v3166_v15 = vld [vmem:[%s5231_s12 + $0x8] sm:$0xff] }
0x39a8   :  { %v3985_v16 = vpack.c.bf16 %v3166_v15, %v3165_v9 }
0x39b0   :  { %v4174_v46 = vpop.eup %4173 }
0x39b1   :  { %v2809_v5 = vadd.f32 1.0, %v4174_v46  ;;  %v4176_v25 = vpop.eup %4175  ;;  %v3168_v46 = vld [vmem:[%s5231_s12 + $0x18] sm:$0xff] }
0x39b3   :  { %4177 = vrcp.f32 %v2809_v5  ;;  %v3988_v5 = vpack.c.bf16 %v3168_v46, %v3167_v53 }
0x39bd   :  { %v4178_v17 = vpop.eup %4177 }
0x39be   :  { %v2812_v18 = vsel %vm4669_vm11, %v4176_v25, %v4178_v17  ;;  %v3034_v17 = vrot.slane %v5092_v50, 4 }
0x39bf   :  { %2815 = vrot.lane.b32.xlu1 %v2812_v18, %s4395_s3  ;;  %v2813_v19 = vmul.f32 %v2812_v18, %v2722_v42 }
0x3a31   :  { %v2816_v37 = vpop.permute.xlu1 %2815 }
0x3a32   :  { %v2818_v23 = vmul.f32 %v2816_v37, %v2812_v18 }
0x3a34   :  { %2820 = vrot.lane.b32.xlu0 %v2818_v23, %s4396_s24 }
0x3aa6   :  { %v2821_v20 = vpop.permute.xlu0 %2820 }
0x3aa7   :  { %v2823_v21 = vadd.f32 %v2821_v20, %v2813_v19 }
0x3aa9   :  { %4179 = vtanh.f32 %v2823_v21 }
0x3ab3   :  { %v4180_v24 = vpop.eup %4179 }
0x3ab4   :  { %2826 = vrot.lane.b32.xlu1 %v4180_v24, %s4395_s3  ;;  %v3331_v24 = vld [vmem:[#allocation11] ss:$0 sm:$0xff] }
0x3b26   :  { %v2827_v26 = vpop.permute.xlu1 %2826 }
0x3b27   :  { %v2829_v27 = vmul.f32 %v2827_v26, %v2812_v18  ;;  %v3042_v18 = vsel %vm211_vm7, %v5075_v62, %v3034_v17 }
0x3b29   :  { %2831 = vrot.lane.b32.xlu0 %v2829_v27, %s4396_s24 }
0x3b9b   :  { %v2832_v29 = vpop.permute.xlu0 %2831 }
0x3b9c   :  { %3776 = vmatmul.mubr.msk.f32.vlgmr.msra.gmra.mrb[26].mxu1 %vm327_vm12, %v2832_v29 }
0x3b9d   :  { %3979 = vmatpush3.bf16.msra.mxu1 %v3976_v61 }
0x3c6f   :  { %v2901_v30 = vpop.f32.mrb[26].mxu1 }
0x3c70   :  { %v2905_v13 = vadd.f32 %v2901_v30, %v5033_v8  ;;  %v3777_v31 = vpop.f32.mrb[27].mxu1 }
0x3c72   :  { %v3328_v32 = vmul.f32 -1.442695, %v2905_v13 }
0x3c74   :  { %4181 = vpow2.f32 %v3328_v32 }
0x3c75   :  { %4183 = vtanh.f32 %v2905_v13  ;;  %v3336_v13 = vld [vmem:[#allocation13] ss:$0 sm:$0xff] }
0x3c7e   :  { %v4182_v33 = vpop.eup %4181 }
0x3c7f   :  { %v2910_v7 = vadd.f32 1.0, %v4182_v33  ;;  %v4184_v34 = vpop.eup %4183 }
0x3c81   :  { %4185 = vrcp.f32 %v2910_v7 }
0x3c8b   :  { %v4186_v35 = vpop.eup %4185 }
0x3c8c   :  { %v2913_v11 = vsel %vm4669_vm11, %v4184_v34, %v4186_v35 }
0x3c8d   :  { %2916 = vrot.lane.b32.xlu1 %v2913_v11, %s4395_s3  ;;  %v2914_v40 = vmul.f32 %v2913_v11, %v2823_v21 }
0x3cff   :  { %v2917_v38 = vpop.permute.xlu1 %2916 }
0x3d00   :  { %v2919_v39 = vmul.f32 %v2917_v38, %v2913_v11 }
0x3d02   :  { %2921 = vrot.lane.b32.xlu0 %v2919_v39, %s4396_s24 }
0x3d74   :  { %v2922_v44 = vpop.permute.xlu0 %2921 }
0x3d75   :  { %v2924_v36 = vadd.f32 %v2922_v44, %v2914_v40 }
0x3d77   :  { %4187 = vtanh.f32 %v2924_v36 }
0x3d81   :  { %v4188_v41 = vpop.eup %4187 }
0x3d82   :  { %2927 = vrot.lane.b32.xlu1 %v4188_v41, %s4395_s3 }
0x3df4   :  { %v2928_v43 = vpop.permute.xlu1 %2927 }
0x3df5   :  { %v5133_v45 = vmul.f32 %v2928_v43, %v2913_v11 }
0x3df7   :  { %2932 = vrot.lane.b32.xlu0 %v5133_v45, %s4396_s24 }
0x3e69   :  { %v2933_v47 = vpop.permute.xlu0 %2932 }
0x3e6a   :  { %3787 = vmatmul.mubr.msk.f32.vlgmr.msra.gmra.mrb[28].mxu0 %vm327_vm12, %v2933_v47 }
0x3e6b   :  { %3811 = vmatprep.mubr.msk.f32.mxu0 %vm4393_vm0, %v4394_v1  ;;  %v3032_v1 = vrot.slane %v5058_v14, 4  ;;  %3986 = vmatpush3.bf16.msra.mxu0 %v3985_v16 }
0x3e6c   :  { %3987 = vmatprep.subr.bf16.mxu0 %v4392_v0 }
0x3e6d   :  { %v3041_v58 = vsel %vm211_vm7, %v5041_v12, %v3032_v1  ;;  %v3047_v12 = vld [vmem:[%s5229_s10 + $0x10] sm:$0xff] }
0x3e6e   :  { %v3980_v63 = vpack.c.bf16 %v3048_v22, %v3047_v12 }
0x3e6f   :  { %3989 = vmatpush3.bf16.msra.mxu0 %v3988_v5 }
0x3e70   :  { %3981 = vmatprep.subr.bf16.mxu1 %v3980_v63 }
0x3e71   :  { %3983 = vmatpush3.bf16.msra.mxu1 %v3980_v63 }
0x3f3d   :  { %v3002_v49 = vpop.f32.mrb[28].mxu0 }
0x3f3e   :  { %v3006_v51 = vadd.f32 %v3002_v49, %v5033_v8  ;;  %v3788_v4 = vpop.f32.mrb[29].mxu0  ;;  %v3036_v8 = vrot.slane %v2829_v27, 4 }
0x3f40   :  { %v3330_v28 = vmul.f32 -1.442695, %v3006_v51  ;;  %v3043_v14 = vsel %vm211_vm7, %v5108_v3, %v3036_v8 }
0x3f42   :  { %4189 = vpow2.f32 %v3330_v28 }
0x3f43   :  { %4191 = vtanh.f32 %v3006_v51 }
0x3f4c   :  { %v4190_v52 = vpop.eup %4189 }
0x3f4d   :  { %v3011_v48 = vadd.f32 1.0, %v4190_v52  ;;  %v4192_v54 = vpop.eup %4191 }
0x3f4f   :  { %4193 = vrcp.f32 %v3011_v48 }
0x3f59   :  { %v4194_v56 = vpop.eup %4193 }
0x3f5a   :  { %v3014_v57 = vsel %vm4669_vm11, %v4192_v54, %v4194_v56 }
0x3f5b   :  { %3017 = vrot.lane.b32.xlu1 %v3014_v57, %s4395_s3  ;;  %v3015_v42 = vmul.f32 %v3014_v57, %v2924_v36 }
0x3fcd   :  { %v3018_v10 = vpop.permute.xlu1 %3017 }
0x3fce   :  { %v3020_v59 = vmul.f32 %v3018_v10, %v3014_v57 }
0x3fd0   :  { %3022 = vrot.lane.b32.xlu0 %v3020_v59, %s4396_s24 }
0x3fd4   :  { %3060 = vrot.lane.b32.xlu0 %v3041_v58, %s4396_s24 }
0x3fd8   :  { %3064 = vrot.lane.b32.xlu0 %v3043_v14, %s4396_s24 }
0x4042   :  { %v3023_v2 = vpop.permute.xlu0 %3022 }
0x4043   :  { %v3025_v6 = vadd.f32 %v3023_v2, %v3015_v42 }
0x4045   :  { %4195 = vtanh.f32 %v3025_v6 }
0x4046   :  { %v3061_v3 = vpop.permute.xlu0 %3060 }
0x4047   :  { %3797 = vmatprep.mubr.msk.f32.mxu1 %vm327_vm12, %v3061_v3 }
0x404a   :  { %v3065_v21 = vpop.permute.xlu0 %3064 }
0x404f   :  { %v4196_v25 = vpop.eup %4195 }
0x4050   :  { %3028 = vrot.lane.b32.xlu1 %v4196_v25, %s4395_s3 }
0x4054   :  { %3062 = vrot.lane.b32.xlu1 %v3042_v18, %s4396_s24 }
0x40c2   :  { %v3029_v37 = vpop.permute.xlu1 %3028 }
0x40c3   :  { %v3031_v23 = vmul.f32 %v3029_v37, %v3014_v57 }
0x40c5   :  { %v3039_v19 = vrot.slane %v3031_v23, 4  ;;  %3176 = vrot.lane.b32.xlu0 %v3031_v23, %s4396_s24 }
0x40c6   :  { %v3063_v20 = vpop.permute.xlu1 %3062 }
0x40c7   :  { %3798 = vmatmul.mubr.msk.f32.vlgmr.msra.gmra.mrb[28].mxu1 %vm327_vm12, %v3063_v20  ;;  %v3044_v0 = vsel %vm211_vm7, %v5133_v45, %v3039_v19 }
0x40c8   :  { %3066 = vrot.lane.b32.xlu1 %v3044_v0, %s4396_s24  ;;  %3800 = vmatprep.mubr.msk.f32.mxu1 %vm327_vm12, %v3065_v21 }
0x4137   :  { %v3177_v50 = vpop.permute.xlu0 %3176 }
0x4138   :  { %3812 = vmatmul.mubr.msk.f32.vlgmr.msra.gmra.mrb[30].mxu0 %vm327_vm12, %v3177_v50 }
0x413a   :  { %v3067_v62 = vpop.permute.xlu1 %3066 }
0x413b   :  { %3801 = vmatmul.mubr.msk.f32.gmra.mrb[30].mxu1 %vm327_vm12, %v3067_v62 }
0x419a   :  { %v3799_v26 = vpop.f32.mrb[28].mxu1 }
0x419b   :  { %v3148_v27 = vadd.f32 %v3799_v26, %v3331_v24  ;;  %v3142_v29 = vpop.f32.mrb[29].mxu1 }
0x419c   :  { %v3143_v30 = vadd.f32 %v3331_v24, %v3142_v29 }
0x419d   :  { %3162 = vst.msk [vmem:[%s5233_s14 + $0x8] sm:$0xff] %vm225_vm8, %v3148_v27 }
0x419e   :  { %3161 = vst.msk [vmem:[%s5233_s14] sm:$0xff] %vm225_vm8, %v3143_v30 }
0x420b   :  { %v3246_v31 = vpop.f32.mrb[30].mxu0 }
0x420c   :  { %v3247_v32 = vadd.f32 %v3336_v13, %v3246_v31  ;;  %v3813_v33 = vpop.f32.mrb[31].mxu0 }
0x420e   :  { %v3802_v7 = vpop.f32.mrb[30].mxu1  ;;  %3251 = vst.msk [vmem:[#allocation14] sm:$0xf] %vm3250_vm13, %v3247_v32 }
0x420f   :  { %v3158_v34 = vadd.f32 %v3802_v7, %v3331_v24  ;;  %v3152_v35 = vpop.f32.mrb[31].mxu1 }
0x4210   :  { %4362 = shalt.err (!%p4359_p4)
}
0x4211   :  { %s4363_s18 = scalar_lea.hbm %s5234_s15, 64 }
0x4212   :  { %p4364_p5 = scmp.ne.s32.totalorder %s5234_s15, %s4363_s18  ;;  %p4367_p6 = scmp.lt.u32.totalorder %s4363_s18, %s5234_s15 }
0x4214   :  { %p4369_p7 = pnand %p4367_p6, %p4364_p5 }
0x4216   :  { %4372 = shalt.err (!%p4369_p7)
}
0x4217   :  { %3263 = dma.vmem_to_hbm [thread:$0]  %s3261_s4, 64, %s5234_s15, [#allocation4]   ;;  %v3153_v11 = vadd.f32 %v3331_v24, %v3152_v35  ;;  %3164 = vst.msk [vmem:[%s5233_s14 + $0x18] sm:$0xff] %vm225_vm8, %v3158_v34 }
0x4219   :  { %3163 = vst.msk [vmem:[%s5233_s14 + $0x10] sm:$0xff] %vm225_vm8, %v3153_v11 }
0x421a   :  { %4381 = dma.done.wait [#allocation4], 64  }
0x421b   :  { %4382 = vsyncadd [#allocation4], 4294967232 }
0x421c   :  { %3269 = vsyncpa [#allocation3], 1 }
0x421d   :  { %3270 = vsyncpa [#allocation6], 1 }
0x421e   :  { %3271 = vsyncpa [#allocation9], 1 }
0x421f   :  { %3272 = vsyncpa [#allocation12], 1 }
0x4220   :  { %3273 = vsyncpa [#allocation4], 1 }

</bundles_post_ra>
